<compile_context>
chip_gen: v6e
topology: v6e:2x2x1
jax: 0.10.0
libtpu: 0.0.40
codegen_flags: <defaults>
</compile_context>

<pallas_src>
import math
import functools

import numpy as np
import jax
import jax.numpy as jnp
from jax.experimental import pallas as pl
from jax.experimental.pallas import tpu as pltpu

D_MODEL = 32
NUM_HEADS = 4
NUM_LAYERS = 2
DIM_FF = 2048          # nn.TransformerDecoderLayer default (module ignores d_ff)
FF_CHUNK = 1024        # chunk the FFN hidden dim to bound live ranges
IN_DIM = 768
LN_EPS = 1e-5
N_CLS = 4
N_REG = 100
NEG_BIG = -1e30

# lane-dense (128-padded) merged-head / output layout
CLS_PAD = 128
REG_PAD = 128
CLS_OFF = IN_DIM                      # 768
REG_OFF = IN_DIM + CLS_PAD            # 896
OUT_W = IN_DIM + CLS_PAD + REG_PAD    # 1024  ([final | cls(+pad) | reg/var(+pad)])

WEIGHT_DTYPE = jnp.bfloat16           # storage dtype for the large weights (DMA-bound kernel)


# ----------------------------- in-kernel helpers -----------------------------
def _erf_poly(z):
    # Abramowitz & Stegun 7.1.26; max abs error ~1.5e-7 -> f32-exact for GELU purposes.
    a1, a2, a3, a4, a5 = 0.254829592, -0.284496736, 1.421413741, -1.453152027, 1.061405429
    p = 0.3275911
    sign = jnp.where(z >= 0.0, 1.0, -1.0)
    az = jnp.abs(z)
    t = 1.0 / (1.0 + p * az)
    poly = ((((a5 * t + a4) * t + a3) * t + a2) * t + a1) * t
    return sign * (1.0 - poly * jnp.exp(-az * az))


def _gelu_exact(x):
    return 0.5 * x * (1.0 + _erf_poly(x * (1.0 / math.sqrt(2.0))))


# ------------------------------ fused forward kernel -------------------------
def _decoder_stack_kernel(
    # activations / tables (resident for the whole grid)
    seq_ref, emb_ref, syn_ref, pad_ref, pe_ref,
    # precomputed attention masks (hoisted out of the layer loop)
    vmask_s_ref, ones_s_ref, negc_ref, vmask_c_ref, ones_c_ref,
    # init projections + embeddings
    w_io_ref, b_io_ref, w_ie_ref, b_ie_ref, syn_emb_ref,
    # fused cross-attention K/V projection for all layers ([D, L*2*D], lane-dense)
    w_kvc_ref, b_kvc_ref,
    # per-layer weights (leading L axis streamed by the grid, double buffered)
    wqkv_s_ref, bqkv_s_ref, wo_s_ref, bo_s_ref,
    wq_c_ref, bq_c_ref, wo_c_ref, bo_c_ref,
    w1_ref, b1_ref, w2_ref, b2_ref,
    ln1w_ref, ln1b_ref, ln2w_ref, ln2b_ref, ln3w_ref, ln3b_ref,
    # merged (128-lane padded) output heads
    w_heads_ref, b_heads_ref, w_reg2_ref, b_reg2_ref,
    # output
    out_ref,
    # scratch
    x_scr, kv_scr,
    *, batch, seq_len, mem_len):
    B, S, M = batch, seq_len, mem_len
    D, H = D_MODEL, NUM_HEADS
    hd = D // H
    scale = 1.0 / math.sqrt(hd)
    l = pl.program_id(0)
    last = pl.num_programs(0) - 1

    def layernorm(v, w, b):
        mu = jnp.mean(v, axis=-1, keepdims=True)
        var = jnp.mean((v - mu) ** 2, axis=-1, keepdims=True)
        return (v - mu) * jax.lax.rsqrt(var + LN_EPS) * w + b

    def block_mha(q, k, v, lq, lkv, vmask, ones_blk, neg):
        # q: [B*lq, D]; k, v: [B*lkv, D].  All H heads of one batch are computed with a
        # single score matmul / single P@V matmul using head-block-diagonal masked K/V
        # expansions (no per-head lane slices, no per-head matmuls, no head concats).
        outs = []
        for b in range(B):
            qb = q[b * lq:(b + 1) * lq]                       # [lq, D]
            kb = k[b * lkv:(b + 1) * lkv]                     # [lkv, D]
            vb = v[b * lkv:(b + 1) * lkv]
            k_exp = jnp.concatenate([kb] * H, axis=0) * vmask  # [H*lkv, D]
            v_exp = jnp.concatenate([vb] * H, axis=0) * vmask  # [H*lkv, D]
            # s[i, h*lkv+j] = sum_{d in head h} q[i,d]*k[j,d]
            s = jax.lax.dot_general(qb, k_exp, (((1,), (1,)), ((), ())),
                                    preferred_element_type=jnp.float32) * scale
            if neg is not None:
                s = s + neg
            # Row-wide max is a constant shift within each head block -> softmax-safe.
            s = s - jnp.max(s, axis=-1, keepdims=True)
            p = jnp.exp(s)
            # Per-head-group sums, broadcast back to every lane, via one block-ones matmul.
            denom = jnp.dot(p, ones_blk, preferred_element_type=jnp.float32)
            p = p / denom                                      # exact division (f32)
            outs.append(jnp.dot(p, v_exp, preferred_element_type=jnp.float32))  # [lq, D]
        return jnp.concatenate(outs, axis=0)                   # [B*lq, D], heads interleaved

    # ---------------- prologue (first grid step only) -----------------------------
    @pl.when(l == 0)
    def _prologue():
        x0 = jnp.dot(seq_ref[...].astype(jnp.bfloat16), w_io_ref[...],
                     preferred_element_type=jnp.float32) + b_io_ref[...]
        x0 = x0 + pe_ref[...]                                  # PE over BATCH index (module quirk)
        # syntax embedding lookup as a 4-way VPU select (no K=4 MXU matmul)
        syn = syn_ref[...]                                     # [B*S, 1] int32
        rows = syn_emb_ref[...]                                # [4, D]
        syn_add = rows[0:1, :]
        for i in range(1, 4):
            syn_add = jnp.where(syn == i, rows[i:i + 1, :], syn_add)
        x_scr[...] = x0 + syn_add

        mem = jnp.dot(emb_ref[...].astype(jnp.bfloat16), w_ie_ref[...],
                      preferred_element_type=jnp.float32) + b_ie_ref[...]
        mem = mem * (1 - pad_ref[...]).astype(jnp.float32)     # emb *= ~mb_pad (post-projection)
        # cross-attention K/V for BOTH layers in one lane-dense [D, L*2*D] matmul
        kv_all = jnp.dot(mem, w_kvc_ref[...],
                         preferred_element_type=jnp.float32) + b_kvc_ref[...]
        for ll in range(NUM_LAYERS):
            kv_scr[ll] = kv_all[:, ll * 2 * D:(ll + 1) * 2 * D]

    # ---------------- one decoder layer (pre-LN); weights streamed by the grid ----
    x = x_scr[...]
    vmask_s = vmask_s_ref[...]
    ones_s = ones_s_ref[...]
    negc = negc_ref[...]
    vmask_c = vmask_c_ref[...]
    ones_c = ones_c_ref[...]

    # self-attention (causal)
    sa_in = layernorm(x, ln1w_ref[...], ln1b_ref[...])
    qkv = jnp.dot(sa_in, wqkv_s_ref[...], preferred_element_type=jnp.float32) + bqkv_s_ref[...]
    attn = block_mha(qkv[:, 0:D], qkv[:, D:2 * D], qkv[:, 2 * D:3 * D],
                     S, S, vmask_s, ones_s, negc)
    x = x + jnp.dot(attn, wo_s_ref[...], preferred_element_type=jnp.float32) + bo_s_ref[...]

    # cross-attention over the precomputed memory K/V of this layer
    ca_in = layernorm(x, ln2w_ref[...], ln2b_ref[...])
    qc = jnp.dot(ca_in, wq_c_ref[...], preferred_element_type=jnp.float32) + bq_c_ref[...]
    kv_l = kv_scr[l]                                           # [B*M, 2*D]
    attn_c = block_mha(qc, kv_l[:, 0:D], kv_l[:, D:2 * D],
                       S, M, vmask_c, ones_c, None)
    x = x + jnp.dot(attn_c, wo_c_ref[...], preferred_element_type=jnp.float32) + bo_c_ref[...]

    # feed-forward (ReLU), chunked over DIM_FF; bf16 weights, f32 accumulation
    ff_in = layernorm(x, ln3w_ref[...], ln3b_ref[...]).astype(jnp.bfloat16)
    ff_out = None
    for c in range(DIM_FF // FF_CHUNK):
        sl = slice(c * FF_CHUNK, (c + 1) * FF_CHUNK)
        h = jnp.dot(ff_in, w1_ref[:, sl], preferred_element_type=jnp.float32) + b1_ref[:, sl]
        h = jnp.maximum(h, 0.0).astype(jnp.bfloat16)
        part = jnp.dot(h, w2_ref[sl, :], preferred_element_type=jnp.float32)
        ff_out = part if ff_out is None else ff_out + part
    x = x + ff_out + b2_ref[...]

    x_scr[...] = x

    # ---------------- epilogue: merged, 128-lane-padded output heads --------------
    @pl.when(l == last)
    def _epilogue():
        heads = jnp.dot(x.astype(jnp.bfloat16), w_heads_ref[...],
                        preferred_element_type=jnp.float32) + b_heads_ref[...]   # [B*S, 1024]
        r1 = heads[:, REG_OFF:OUT_W]                           # reg1 section (128-lane aligned)
        var = jnp.dot(_gelu_exact(r1).astype(jnp.bfloat16), w_reg2_ref[...],
                      preferred_element_type=jnp.float32) + b_reg2_ref[...]      # [B*S, 128]
        out_ref[:, 0:REG_OFF] = heads[:, 0:REG_OFF]            # [final | cls(+pad)], unmasked vst
        out_ref[:, REG_OFF:OUT_W] = var                        # var(+pad), unmasked vst


# ------------------------------ params / constants ---------------------------
def init_params(key):
    keys = jax.random.split(key, 40)
    it = iter(keys)

    def w(shape, scale=0.02, dtype=jnp.float32):
        return (scale * jax.random.normal(next(it), shape)).astype(dtype)

    L, D, FF = NUM_LAYERS, D_MODEL, DIM_FF
    WD = WEIGHT_DTYPE

    # merged output heads, zero-padded to 128-lane section boundaries
    w_final, b_final = w((D, IN_DIM)), w((1, IN_DIM))
    w_cls, b_cls = w((D, N_CLS)), w((1, N_CLS))
    w_reg1, b_reg1 = w((D, D)), w((1, D))

    def zpad(a, cols):
        return jnp.concatenate([a, jnp.zeros((a.shape[0], cols), jnp.float32)], axis=1)

    w_heads = jnp.concatenate([w_final, zpad(w_cls, CLS_PAD - N_CLS),
                               zpad(w_reg1, REG_PAD - D)], axis=1)      # [D, 1024]
    b_heads = jnp.concatenate([b_final, zpad(b_cls, CLS_PAD - N_CLS),
                               zpad(b_reg1, REG_PAD - D)], axis=1)      # [1, 1024]
    w_reg2 = jnp.zeros((REG_PAD, REG_PAD), jnp.float32).at[:D, :N_REG].set(w((D, N_REG)))
    b_reg2 = jnp.zeros((1, REG_PAD), jnp.float32).at[:, :N_REG].set(w((1, N_REG)))

    return {
        "seq_proj_w": w((IN_DIM, D), dtype=WD), "seq_proj_b": w((1, D)),
        "emb_proj_w": w((IN_DIM, D), dtype=WD), "emb_proj_b": w((1, D)),
        "syntax_embed": w((4, D), scale=1.0),
        # cross-attention K/V projection, both layers fused: columns [K_l0|V_l0|K_l1|V_l1]
        "w_kvc": w((D, L * 2 * D)), "b_kvc": w((1, L * 2 * D)),
        # per-layer weights stacked on a leading [L] axis (streamed by the grid)
        "wqkv_self": w((L, D, 3 * D)), "bqkv_self": w((L, 1, 3 * D)),
        "wo_self": w((L, D, D)), "bo_self": w((L, 1, D)),
        "wq_cross": w((L, D, D)), "bq_cross": w((L, 1, D)),
        "wo_cross": w((L, D, D)), "bo_cross": w((L, 1, D)),
        "w1": w((L, D, FF), dtype=WD), "b1": w((L, 1, FF)),
        "w2": w((L, FF, D), dtype=WD), "b2": w((L, 1, D)),
        "ln1_w": jnp.ones((L, 1, D), jnp.float32), "ln1_b": jnp.zeros((L, 1, D), jnp.float32),
        "ln2_w": jnp.ones((L, 1, D), jnp.float32), "ln2_b": jnp.zeros((L, 1, D), jnp.float32),
        "ln3_w": jnp.ones((L, 1, D), jnp.float32), "ln3_b": jnp.zeros((L, 1, D), jnp.float32),
        "w_heads": w_heads.astype(WD), "b_heads": b_heads,
        "w_reg2": w_reg2.astype(WD), "b_reg2": b_reg2,
    }


def positional_encoding_table(n, d):
    pos = jnp.arange(n, dtype=jnp.float32)[:, None]
    div = jnp.exp(jnp.arange(0, d, 2, dtype=jnp.float32) * (-math.log(10000.0) / d))
    pe = jnp.zeros((n, d), jnp.float32)
    pe = pe.at[:, 0::2].set(jnp.sin(pos * div))
    pe = pe.at[:, 1::2].set(jnp.cos(pos * div))
    return pe


def _head_group_masks(lkv):
    # vmask [H*lkv, D]: row h*lkv+j keeps only head-h columns; ones_blk [H*lkv, H*lkv].
    hd = D_MODEL // NUM_HEADS
    g = np.arange(NUM_HEADS * lkv) // lkv
    c = np.arange(D_MODEL) // hd
    vmask = (g[:, None] == c[None, :]).astype(np.float32)
    ones_blk = (g[:, None] == g[None, :]).astype(np.float32)
    return jnp.asarray(vmask), jnp.asarray(ones_blk)


def _causal_neg(lq):
    i = np.arange(lq)[:, None]
    j = np.arange(NUM_HEADS * lq)[None, :] % lq
    return jnp.asarray(np.where(j > i, NEG_BIG, 0.0).astype(np.float32))


# ------------------------------ wrapper --------------------------------------
def forward(params, seq, seq_syntax, emb, mb_pad):
    """custom=False branch; dropout disabled (eval). One pallas_call, grid over layers."""
    B, S, _ = seq.shape
    M = emb.shape[1]

    seq_slab = seq.reshape(B * S, IN_DIM)
    emb_slab = emb.reshape(B * M, IN_DIM)
    syn_slab = seq_syntax.reshape(B * S, 1).astype(jnp.int32)
    pad_slab = mb_pad.reshape(B * M, 1).astype(jnp.int32)
    # PositionalEncoding applied to a batch-first tensor -> position == batch index,
    # broadcast over seq; materialized as a [B*S, D] table row-matched to the slab.
    pe_slab = jnp.repeat(positional_encoding_table(B, D_MODEL), S, axis=0)

    vmask_s, ones_s = _head_group_masks(S)
    vmask_c, ones_c = _head_group_masks(M)
    negc = _causal_neg(S)

    def fixed(a):
        return pl.BlockSpec(a.shape, lambda l: (0,) * a.ndim)

    def per_layer(a):
        return pl.BlockSpec((None,) + a.shape[1:], lambda l: (l,) + (0,) * (a.ndim - 1))

    fixed_args = [seq_slab, emb_slab, syn_slab, pad_slab, pe_slab,
                  vmask_s, ones_s, negc, vmask_c, ones_c,
                  params["seq_proj_w"], params["seq_proj_b"],
                  params["emb_proj_w"], params["emb_proj_b"],
                  params["syntax_embed"],
                  params["w_kvc"], params["b_kvc"]]
    layer_keys = ("wqkv_self", "bqkv_self", "wo_self", "bo_self",
                  "wq_cross", "bq_cross", "wo_cross", "bo_cross",
                  "w1", "b1", "w2", "b2",
                  "ln1_w", "ln1_b", "ln2_w", "ln2_b", "ln3_w", "ln3_b")
    layer_args = [params[k] for k in layer_keys]
    head_args = [params["w_heads"], params["b_heads"], params["w_reg2"], params["b_reg2"]]

    args = fixed_args + layer_args + head_args
    in_specs = ([fixed(a) for a in fixed_args]
                + [per_layer(a) for a in layer_args]
                + [fixed(a) for a in head_args])

    fused = pl.pallas_call(
        functools.partial(_decoder_stack_kernel, batch=B, seq_len=S, mem_len=M),
        out_shape=jax.ShapeDtypeStruct((B * S, OUT_W), jnp.float32),
        grid_spec=pltpu.PrefetchScalarGridSpec(
            num_scalar_prefetch=0,
            grid=(NUM_LAYERS,),
            in_specs=in_specs,
            out_specs=pl.BlockSpec((B * S, OUT_W), lambda l: (0, 0)),
            scratch_shapes=[pltpu.VMEM((B * S, D_MODEL), jnp.float32),
                            pltpu.VMEM((NUM_LAYERS, B * M, 2 * D_MODEL), jnp.float32)]),
        compiler_params=pltpu.CompilerParams(
            dimension_semantics=("arbitrary",),
            vmem_limit_bytes=32 * 1024 * 1024),
    )(*args)

    fused = fused.reshape(B, S, OUT_W)
    final = fused[..., :IN_DIM]
    classified = fused[..., CLS_OFF:CLS_OFF + N_CLS]
    var_emb = fused[..., REG_OFF:REG_OFF + N_REG]
    return final, classified, var_emb


if __name__ == "__main__":
    key = jax.random.PRNGKey(0)
    kp, ks, ke, ksyn, kpad = jax.random.split(key, 5)
    params = init_params(kp)

    B, S, M = 2, 8, 8
    seq = jax.random.normal(ks, (B, S, IN_DIM), jnp.float32)       # seq
    emb = jax.random.normal(ke, (B, M, IN_DIM), jnp.float32)       # emb (memory)
    seq_syntax = jax.random.randint(ksyn, (B, S), 0, 4)            # syntax ids
    mb_pad = jax.random.bernoulli(kpad, 0.25, (B, M))              # memory pad mask (bool)

    fwd = jax.jit(forward)
    outputs, classified, var_emb = fwd(params, seq, seq_syntax, emb, mb_pad)
    jax.block_until_ready((outputs, classified, var_emb))
    assert outputs.shape == (B, S, IN_DIM)
    assert classified.shape == (B, S, N_CLS)
    assert var_emb.shape == (B, S, N_REG)
    print("KERNEL_OK")
</pallas_src>

<mosaic_0001>
module attributes {stable_mosaic.version = 11 : i64} {
  func.func @_decoder_stack_kernel(%arg0: i32, %arg1: memref<16x768xf32, #tpu.memory_space<vmem>>, %arg2: memref<16x768xf32, #tpu.memory_space<vmem>>, %arg3: memref<16x1xi32, #tpu.memory_space<vmem>>, %arg4: memref<16x1xi32, #tpu.memory_space<vmem>>, %arg5: memref<16x32xf32, #tpu.memory_space<vmem>>, %arg6: memref<32x32xf32, #tpu.memory_space<vmem>>, %arg7: memref<32x32xf32, #tpu.memory_space<vmem>>, %arg8: memref<8x32xf32, #tpu.memory_space<vmem>>, %arg9: memref<32x32xf32, #tpu.memory_space<vmem>>, %arg10: memref<32x32xf32, #tpu.memory_space<vmem>>, %arg11: memref<768x32xbf16, #tpu.memory_space<vmem>>, %arg12: memref<1x32xf32, #tpu.memory_space<vmem>>, %arg13: memref<768x32xbf16, #tpu.memory_space<vmem>>, %arg14: memref<1x32xf32, #tpu.memory_space<vmem>>, %arg15: memref<4x32xf32, #tpu.memory_space<vmem>>, %arg16: memref<32x128xf32, #tpu.memory_space<vmem>>, %arg17: memref<1x128xf32, #tpu.memory_space<vmem>>, %arg18: memref<1x32x96xf32, #tpu.memory_space<vmem>>, %arg19: memref<1x1x96xf32, #tpu.memory_space<vmem>>, %arg20: memref<1x32x32xf32, #tpu.memory_space<vmem>>, %arg21: memref<1x1x32xf32, #tpu.memory_space<vmem>>, %arg22: memref<1x32x32xf32, #tpu.memory_space<vmem>>, %arg23: memref<1x1x32xf32, #tpu.memory_space<vmem>>, %arg24: memref<1x32x32xf32, #tpu.memory_space<vmem>>, %arg25: memref<1x1x32xf32, #tpu.memory_space<vmem>>, %arg26: memref<1x32x2048xbf16, #tpu.memory_space<vmem>>, %arg27: memref<1x1x2048xf32, #tpu.memory_space<vmem>>, %arg28: memref<1x2048x32xbf16, #tpu.memory_space<vmem>>, %arg29: memref<1x1x32xf32, #tpu.memory_space<vmem>>, %arg30: memref<1x1x32xf32, #tpu.memory_space<vmem>>, %arg31: memref<1x1x32xf32, #tpu.memory_space<vmem>>, %arg32: memref<1x1x32xf32, #tpu.memory_space<vmem>>, %arg33: memref<1x1x32xf32, #tpu.memory_space<vmem>>, %arg34: memref<1x1x32xf32, #tpu.memory_space<vmem>>, %arg35: memref<1x1x32xf32, #tpu.memory_space<vmem>>, %arg36: memref<32x1024xbf16, #tpu.memory_space<vmem>>, %arg37: memref<1x1024xf32, #tpu.memory_space<vmem>>, %arg38: memref<128x128xbf16, #tpu.memory_space<vmem>>, %arg39: memref<1x128xf32, #tpu.memory_space<vmem>>, %arg40: memref<16x1024xf32, #tpu.memory_space<vmem>>, %arg41: memref<16x32xf32, #tpu.memory_space<vmem>>, %arg42: memref<2x16x64xf32, #tpu.memory_space<vmem>>) attributes {dimension_semantics = [#tpu.dimension_semantics<arbitrary>], iteration_bounds = array<i64: 2>, scalar_prefetch = 0 : i64, scratch_operands = 2 : i64, tpu.core_type = #tpu.core_type<tc>, window_params = [{pipeline_mode = #tpu.pipeline_mode<synchronous>, transform_indices = @transform_0, window_bounds = array<i64: 16, 768>}, {pipeline_mode = #tpu.pipeline_mode<synchronous>, transform_indices = @transform_1, window_bounds = array<i64: 16, 768>}, {pipeline_mode = #tpu.pipeline_mode<synchronous>, transform_indices = @transform_2, window_bounds = array<i64: 16, 1>}, {pipeline_mode = #tpu.pipeline_mode<synchronous>, transform_indices = @transform_3, window_bounds = array<i64: 16, 1>}, {pipeline_mode = #tpu.pipeline_mode<synchronous>, transform_indices = @transform_4, window_bounds = array<i64: 16, 32>}, {pipeline_mode = #tpu.pipeline_mode<synchronous>, transform_indices = @transform_5, window_bounds = array<i64: 32, 32>}, {pipeline_mode = #tpu.pipeline_mode<synchronous>, transform_indices = @transform_6, window_bounds = array<i64: 32, 32>}, {pipeline_mode = #tpu.pipeline_mode<synchronous>, transform_indices = @transform_7, window_bounds = array<i64: 8, 32>}, {pipeline_mode = #tpu.pipeline_mode<synchronous>, transform_indices = @transform_8, window_bounds = array<i64: 32, 32>}, {pipeline_mode = #tpu.pipeline_mode<synchronous>, transform_indices = @transform_9, window_bounds = array<i64: 32, 32>}, {pipeline_mode = #tpu.pipeline_mode<synchronous>, transform_indices = @transform_10, window_bounds = array<i64: 768, 32>}, {pipeline_mode = #tpu.pipeline_mode<synchronous>, transform_indices = @transform_11, window_bounds = array<i64: 1, 32>}, {pipeline_mode = #tpu.pipeline_mode<synchronous>, transform_indices = @transform_12, window_bounds = array<i64: 768, 32>}, {pipeline_mode = #tpu.pipeline_mode<synchronous>, transform_indices = @transform_13, window_bounds = array<i64: 1, 32>}, {pipeline_mode = #tpu.pipeline_mode<synchronous>, transform_indices = @transform_14, window_bounds = array<i64: 4, 32>}, {pipeline_mode = #tpu.pipeline_mode<synchronous>, transform_indices = @transform_15, window_bounds = array<i64: 32, 128>}, {pipeline_mode = #tpu.pipeline_mode<synchronous>, transform_indices = @transform_16, window_bounds = array<i64: 1, 128>}, {transform_indices = @transform_17, window_bounds = array<i64: 1, 32, 96>}, {transform_indices = @transform_18, window_bounds = array<i64: 1, 1, 96>}, {transform_indices = @transform_19, window_bounds = array<i64: 1, 32, 32>}, {transform_indices = @transform_20, window_bounds = array<i64: 1, 1, 32>}, {transform_indices = @transform_21, window_bounds = array<i64: 1, 32, 32>}, {transform_indices = @transform_22, window_bounds = array<i64: 1, 1, 32>}, {transform_indices = @transform_23, window_bounds = array<i64: 1, 32, 32>}, {transform_indices = @transform_24, window_bounds = array<i64: 1, 1, 32>}, {transform_indices = @transform_25, window_bounds = array<i64: 1, 32, 2048>}, {transform_indices = @transform_26, window_bounds = array<i64: 1, 1, 2048>}, {transform_indices = @transform_27, window_bounds = array<i64: 1, 2048, 32>}, {transform_indices = @transform_28, window_bounds = array<i64: 1, 1, 32>}, {transform_indices = @transform_29, window_bounds = array<i64: 1, 1, 32>}, {transform_indices = @transform_30, window_bounds = array<i64: 1, 1, 32>}, {transform_indices = @transform_31, window_bounds = array<i64: 1, 1, 32>}, {transform_indices = @transform_32, window_bounds = array<i64: 1, 1, 32>}, {transform_indices = @transform_33, window_bounds = array<i64: 1, 1, 32>}, {transform_indices = @transform_34, window_bounds = array<i64: 1, 1, 32>}, {pipeline_mode = #tpu.pipeline_mode<synchronous>, transform_indices = @transform_35, window_bounds = array<i64: 32, 1024>}, {pipeline_mode = #tpu.pipeline_mode<synchronous>, transform_indices = @transform_36, window_bounds = array<i64: 1, 1024>}, {pipeline_mode = #tpu.pipeline_mode<synchronous>, transform_indices = @transform_37, window_bounds = array<i64: 128, 128>}, {pipeline_mode = #tpu.pipeline_mode<synchronous>, transform_indices = @transform_38, window_bounds = array<i64: 1, 128>}, {pipeline_mode = #tpu.pipeline_mode<synchronous>, transform_indices = @transform_39, window_bounds = array<i64: 16, 1024>}]} {
    %c0_i32 = arith.constant 0 : i32
    %0 = arith.cmpi eq, %arg0, %c0_i32 : i32
    %1 = arith.extui %0 : i1 to i32
    %c0_i32_0 = arith.constant 0 : i32
    %2 = arith.cmpi ne, %1, %c0_i32_0 : i32
    scf.if %2 {
      %c0_123 = arith.constant 0 : index
      %c0_124 = arith.constant 0 : index
      %238 = vector.load %arg1[%c0_123, %c0_124] : memref<16x768xf32, #tpu.memory_space<vmem>>, vector<16x768xf32>
      %239 = arith.truncf %238 : vector<16x768xf32> to vector<16x768xbf16>
      %c0_125 = arith.constant 0 : index
      %c0_126 = arith.constant 0 : index
      %240 = vector.load %arg11[%c0_125, %c0_126] : memref<768x32xbf16, #tpu.memory_space<vmem>>, vector<768x32xbf16>
      %cst_127 = arith.constant dense<0.000000e+00> : vector<16x32xf32>
      %241 = tpu.matmul %239, %240, %cst_127 {dimension_numbers = #tpu.dot_dimension_numbers<[1], [0], [0], [1], [0, 0, 1, 1], [], []>} : vector<16x768xbf16>, vector<768x32xbf16>, vector<16x32xf32> -> vector<16x32xf32>
      %c0_128 = arith.constant 0 : index
      %c0_129 = arith.constant 0 : index
      %242 = vector.load %arg12[%c0_128, %c0_129] : memref<1x32xf32, #tpu.memory_space<vmem>>, vector<1x32xf32>
      %243 = vector.broadcast %242 : vector<1x32xf32> to vector<16x32xf32>
      %244 = arith.addf %241, %243 : vector<16x32xf32>
      %c0_130 = arith.constant 0 : index
      %c0_131 = arith.constant 0 : index
      %245 = vector.load %arg5[%c0_130, %c0_131] : memref<16x32xf32, #tpu.memory_space<vmem>>, vector<16x32xf32>
      %246 = arith.addf %244, %245 : vector<16x32xf32>
      %c0_132 = arith.constant 0 : index
      %c0_133 = arith.constant 0 : index
      %247 = vector.load %arg3[%c0_132, %c0_133] : memref<16x1xi32, #tpu.memory_space<vmem>>, vector<16x1xi32>
      %c0_134 = arith.constant 0 : index
      %c0_135 = arith.constant 0 : index
      %248 = vector.load %arg15[%c0_134, %c0_135] : memref<4x32xf32, #tpu.memory_space<vmem>>, vector<4x32xf32>
      %249 = vector.extract_strided_slice %248 {offsets = [0, 0], sizes = [1, 32], strides = [1, 1]} : vector<4x32xf32> to vector<1x32xf32>
      %c1_i32_136 = arith.constant 1 : i32
      %250 = vector.broadcast %c1_i32_136 : i32 to vector<16x1xi32>
      %251 = arith.cmpi eq, %247, %250 : vector<16x1xi32>
      %252 = vector.extract_strided_slice %248 {offsets = [1, 0], sizes = [1, 32], strides = [1, 1]} : vector<4x32xf32> to vector<1x32xf32>
      %253 = vector.shape_cast %251 : vector<16x1xi1> to vector<16x1xi1>
      %254 = vector.broadcast %253 : vector<16x1xi1> to vector<16x32xi1>
      %255 = vector.shape_cast %252 : vector<1x32xf32> to vector<1x32xf32>
      %256 = vector.broadcast %255 : vector<1x32xf32> to vector<16x32xf32>
      %257 = vector.shape_cast %249 : vector<1x32xf32> to vector<1x32xf32>
      %258 = vector.broadcast %257 : vector<1x32xf32> to vector<16x32xf32>
      %259 = arith.select %254, %256, %258 : vector<16x32xi1>, vector<16x32xf32>
      %c2_i32 = arith.constant 2 : i32
      %260 = vector.broadcast %c2_i32 : i32 to vector<16x1xi32>
      %261 = arith.cmpi eq, %247, %260 : vector<16x1xi32>
      %262 = vector.extract_strided_slice %248 {offsets = [2, 0], sizes = [1, 32], strides = [1, 1]} : vector<4x32xf32> to vector<1x32xf32>
      %263 = vector.shape_cast %261 : vector<16x1xi1> to vector<16x1xi1>
      %264 = vector.broadcast %263 : vector<16x1xi1> to vector<16x32xi1>
      %265 = vector.shape_cast %262 : vector<1x32xf32> to vector<1x32xf32>
      %266 = vector.broadcast %265 : vector<1x32xf32> to vector<16x32xf32>
      %267 = arith.select %264, %266, %259 : vector<16x32xi1>, vector<16x32xf32>
      %c3_i32 = arith.constant 3 : i32
      %268 = vector.broadcast %c3_i32 : i32 to vector<16x1xi32>
      %269 = arith.cmpi eq, %247, %268 : vector<16x1xi32>
      %270 = vector.extract_strided_slice %248 {offsets = [3, 0], sizes = [1, 32], strides = [1, 1]} : vector<4x32xf32> to vector<1x32xf32>
      %271 = vector.shape_cast %269 : vector<16x1xi1> to vector<16x1xi1>
      %272 = vector.broadcast %271 : vector<16x1xi1> to vector<16x32xi1>
      %273 = vector.shape_cast %270 : vector<1x32xf32> to vector<1x32xf32>
      %274 = vector.broadcast %273 : vector<1x32xf32> to vector<16x32xf32>
      %275 = arith.select %272, %274, %267 : vector<16x32xi1>, vector<16x32xf32>
      %276 = arith.addf %246, %275 : vector<16x32xf32>
      %c0_137 = arith.constant 0 : index
      %c0_138 = arith.constant 0 : index
      %277 = vector.load %arg41[%c0_137, %c0_138] : memref<16x32xf32, #tpu.memory_space<vmem>>, vector<16x32xf32>
      tpu.vector_store %arg41[%c0_137, %c0_138], %276 {strides = array<i32>} : memref<16x32xf32, #tpu.memory_space<vmem>>, vector<16x32xf32>,
      %c0_139 = arith.constant 0 : index
      %c0_140 = arith.constant 0 : index
      %278 = vector.load %arg2[%c0_139, %c0_140] : memref<16x768xf32, #tpu.memory_space<vmem>>, vector<16x768xf32>
      %279 = arith.truncf %278 : vector<16x768xf32> to vector<16x768xbf16>
      %c0_141 = arith.constant 0 : index
      %c0_142 = arith.constant 0 : index
      %280 = vector.load %arg13[%c0_141, %c0_142] : memref<768x32xbf16, #tpu.memory_space<vmem>>, vector<768x32xbf16>
      %cst_143 = arith.constant dense<0.000000e+00> : vector<16x32xf32>
      %281 = tpu.matmul %279, %280, %cst_143 {dimension_numbers = #tpu.dot_dimension_numbers<[1], [0], [0], [1], [0, 0, 1, 1], [], []>} : vector<16x768xbf16>, vector<768x32xbf16>, vector<16x32xf32> -> vector<16x32xf32>
      %c0_144 = arith.constant 0 : index
      %c0_145 = arith.constant 0 : index
      %282 = vector.load %arg14[%c0_144, %c0_145] : memref<1x32xf32, #tpu.memory_space<vmem>>, vector<1x32xf32>
      %283 = vector.broadcast %282 : vector<1x32xf32> to vector<16x32xf32>
      %284 = arith.addf %281, %283 : vector<16x32xf32>
      %c0_146 = arith.constant 0 : index
      %c0_147 = arith.constant 0 : index
      %285 = vector.load %arg4[%c0_146, %c0_147] : memref<16x1xi32, #tpu.memory_space<vmem>>, vector<16x1xi32>
      %c1_i32_148 = arith.constant 1 : i32
      %286 = vector.broadcast %c1_i32_148 : i32 to vector<16x1xi32>
      %287 = arith.subi %286, %285 : vector<16x1xi32>
      %288 = arith.sitofp %287 : vector<16x1xi32> to vector<16x1xf32>
      %289 = vector.broadcast %288 : vector<16x1xf32> to vector<16x32xf32>
      %290 = arith.mulf %284, %289 : vector<16x32xf32>
      %c0_149 = arith.constant 0 : index
      %c0_150 = arith.constant 0 : index
      %291 = vector.load %arg16[%c0_149, %c0_150] : memref<32x128xf32, #tpu.memory_space<vmem>>, vector<32x128xf32>
      %cst_151 = arith.constant dense<0.000000e+00> : vector<16x128xf32>
      %292 = tpu.matmul %290, %291, %cst_151 {dimension_numbers = #tpu.dot_dimension_numbers<[1], [0], [0], [1], [0, 0, 1, 1], [], []>} : vector<16x32xf32>, vector<32x128xf32>, vector<16x128xf32> -> vector<16x128xf32>
      %c0_152 = arith.constant 0 : index
      %c0_153 = arith.constant 0 : index
      %293 = vector.load %arg17[%c0_152, %c0_153] : memref<1x128xf32, #tpu.memory_space<vmem>>, vector<1x128xf32>
      %294 = vector.broadcast %293 : vector<1x128xf32> to vector<16x128xf32>
      %295 = arith.addf %292, %294 : vector<16x128xf32>
      %296 = vector.extract_strided_slice %295 {offsets = [0, 0], sizes = [16, 64], strides = [1, 1]} : vector<16x128xf32> to vector<16x64xf32>
      %c0_154 = arith.constant 0 : index
      %c0_155 = arith.constant 0 : index
      %c0_156 = arith.constant 0 : index
      %297 = vector.load %arg42[%c0_154, %c0_155, %c0_156] : memref<2x16x64xf32, #tpu.memory_space<vmem>>, vector<1x16x64xf32>
      %298 = vector.shape_cast %297 : vector<1x16x64xf32> to vector<16x64xf32>
      %299 = vector.shape_cast %296 : vector<16x64xf32> to vector<1x16x64xf32>
      tpu.vector_store %arg42[%c0_154, %c0_155, %c0_156], %299 {strides = array<i32>} : memref<2x16x64xf32, #tpu.memory_space<vmem>>, vector<1x16x64xf32>,
      %300 = vector.extract_strided_slice %295 {offsets = [0, 64], sizes = [16, 64], strides = [1, 1]} : vector<16x128xf32> to vector<16x64xf32>
      %c1 = arith.constant 1 : index
      %c0_157 = arith.constant 0 : index
      %c0_158 = arith.constant 0 : index
      %301 = vector.load %arg42[%c1, %c0_157, %c0_158] : memref<2x16x64xf32, #tpu.memory_space<vmem>>, vector<1x16x64xf32>
      %302 = vector.shape_cast %301 : vector<1x16x64xf32> to vector<16x64xf32>
      %303 = vector.shape_cast %300 : vector<16x64xf32> to vector<1x16x64xf32>
      tpu.vector_store %arg42[%c1, %c0_157, %c0_158], %303 {strides = array<i32>} : memref<2x16x64xf32, #tpu.memory_space<vmem>>, vector<1x16x64xf32>,
    } else {
    }
    %c0 = arith.constant 0 : index
    %c0_1 = arith.constant 0 : index
    %3 = vector.load %arg41[%c0, %c0_1] : memref<16x32xf32, #tpu.memory_space<vmem>>, vector<16x32xf32>
    %c0_2 = arith.constant 0 : index
    %c0_3 = arith.constant 0 : index
    %4 = vector.load %arg6[%c0_2, %c0_3] : memref<32x32xf32, #tpu.memory_space<vmem>>, vector<32x32xf32>
    %c0_4 = arith.constant 0 : index
    %c0_5 = arith.constant 0 : index
    %5 = vector.load %arg7[%c0_4, %c0_5] : memref<32x32xf32, #tpu.memory_space<vmem>>, vector<32x32xf32>
    %c0_6 = arith.constant 0 : index
    %c0_7 = arith.constant 0 : index
    %6 = vector.load %arg8[%c0_6, %c0_7] : memref<8x32xf32, #tpu.memory_space<vmem>>, vector<8x32xf32>
    %c0_8 = arith.constant 0 : index
    %c0_9 = arith.constant 0 : index
    %7 = vector.load %arg9[%c0_8, %c0_9] : memref<32x32xf32, #tpu.memory_space<vmem>>, vector<32x32xf32>
    %c0_10 = arith.constant 0 : index
    %c0_11 = arith.constant 0 : index
    %8 = vector.load %arg10[%c0_10, %c0_11] : memref<32x32xf32, #tpu.memory_space<vmem>>, vector<32x32xf32>
    %c0_12 = arith.constant 0 : index
    %c0_13 = arith.constant 0 : index
    %c0_14 = arith.constant 0 : index
    %9 = vector.load %arg30[%c0_12, %c0_13, %c0_14] : memref<1x1x32xf32, #tpu.memory_space<vmem>>, vector<1x1x32xf32>
    %10 = vector.shape_cast %9 : vector<1x1x32xf32> to vector<1x32xf32>
    %c0_15 = arith.constant 0 : index
    %c0_16 = arith.constant 0 : index
    %c0_17 = arith.constant 0 : index
    %11 = vector.load %arg31[%c0_15, %c0_16, %c0_17] : memref<1x1x32xf32, #tpu.memory_space<vmem>>, vector<1x1x32xf32>
    %12 = vector.shape_cast %11 : vector<1x1x32xf32> to vector<1x32xf32>
    %cst = arith.constant dense<0.000000e+00> : vector<16xf32>
    %13 = vector.multi_reduction <add>, %3, %cst [1] : vector<16x32xf32> to vector<16xf32>
    %14 = vector.shape_cast %13 : vector<16xf32> to vector<16x1xf32>
    %cst_18 = arith.constant 3.200000e+01 : f32
    %15 = vector.broadcast %cst_18 : f32 to vector<16x1xf32>
    %16 = arith.divf %14, %15 : vector<16x1xf32>
    %17 = vector.broadcast %16 : vector<16x1xf32> to vector<16x32xf32>
    %18 = arith.subf %3, %17 : vector<16x32xf32>
    %19 = arith.mulf %18, %18 : vector<16x32xf32>
    %cst_19 = arith.constant dense<0.000000e+00> : vector<16xf32>
    %20 = vector.multi_reduction <add>, %19, %cst_19 [1] : vector<16x32xf32> to vector<16xf32>
    %21 = vector.shape_cast %20 : vector<16xf32> to vector<16x1xf32>
    %cst_20 = arith.constant 3.200000e+01 : f32
    %22 = vector.broadcast %cst_20 : f32 to vector<16x1xf32>
    %23 = arith.divf %21, %22 : vector<16x1xf32>
    %24 = vector.broadcast %16 : vector<16x1xf32> to vector<16x32xf32>
    %25 = arith.subf %3, %24 : vector<16x32xf32>
    %cst_21 = arith.constant 9.99999974E-6 : f32
    %26 = vector.broadcast %cst_21 : f32 to vector<16x1xf32>
    %27 = arith.addf %23, %26 : vector<16x1xf32>
    %28 = math.rsqrt %27 : vector<16x1xf32>
    %29 = vector.broadcast %28 : vector<16x1xf32> to vector<16x32xf32>
    %30 = arith.mulf %25, %29 : vector<16x32xf32>
    %31 = vector.broadcast %10 : vector<1x32xf32> to vector<16x32xf32>
    %32 = arith.mulf %30, %31 : vector<16x32xf32>
    %33 = vector.broadcast %12 : vector<1x32xf32> to vector<16x32xf32>
    %34 = arith.addf %32, %33 : vector<16x32xf32>
    %c0_22 = arith.constant 0 : index
    %c0_23 = arith.constant 0 : index
    %c0_24 = arith.constant 0 : index
    %35 = vector.load %arg18[%c0_22, %c0_23, %c0_24] : memref<1x32x96xf32, #tpu.memory_space<vmem>>, vector<1x32x96xf32>
    %36 = vector.shape_cast %35 : vector<1x32x96xf32> to vector<32x96xf32>
    %cst_25 = arith.constant dense<0.000000e+00> : vector<16x96xf32>
    %37 = tpu.matmul %34, %36, %cst_25 {dimension_numbers = #tpu.dot_dimension_numbers<[1], [0], [0], [1], [0, 0, 1, 1], [], []>} : vector<16x32xf32>, vector<32x96xf32>, vector<16x96xf32> -> vector<16x96xf32>
    %c0_26 = arith.constant 0 : index
    %c0_27 = arith.constant 0 : index
    %c0_28 = arith.constant 0 : index
    %38 = vector.load %arg19[%c0_26, %c0_27, %c0_28] : memref<1x1x96xf32, #tpu.memory_space<vmem>>, vector<1x1x96xf32>
    %39 = vector.shape_cast %38 : vector<1x1x96xf32> to vector<1x96xf32>
    %40 = vector.broadcast %39 : vector<1x96xf32> to vector<16x96xf32>
    %41 = arith.addf %37, %40 : vector<16x96xf32>
    %42 = vector.extract_strided_slice %41 {offsets = [0, 0], sizes = [16, 32], strides = [1, 1]} : vector<16x96xf32> to vector<16x32xf32>
    %43 = vector.extract_strided_slice %41 {offsets = [0, 32], sizes = [16, 32], strides = [1, 1]} : vector<16x96xf32> to vector<16x32xf32>
    %44 = vector.extract_strided_slice %41 {offsets = [0, 64], sizes = [16, 32], strides = [1, 1]} : vector<16x96xf32> to vector<16x32xf32>
    %45 = vector.extract_strided_slice %42 {offsets = [0, 0], sizes = [8, 32], strides = [1, 1]} : vector<16x32xf32> to vector<8x32xf32>
    %46 = vector.extract_strided_slice %43 {offsets = [0, 0], sizes = [8, 32], strides = [1, 1]} : vector<16x32xf32> to vector<8x32xf32>
    %47 = vector.extract_strided_slice %44 {offsets = [0, 0], sizes = [8, 32], strides = [1, 1]} : vector<16x32xf32> to vector<8x32xf32>
    %48 = tpu.concatenate %46, %46, %46, %46 in 0 : vector<8x32xf32>, vector<8x32xf32>, vector<8x32xf32>, vector<8x32xf32> -> vector<32x32xf32>
    %49 = arith.mulf %48, %4 : vector<32x32xf32>
    %50 = tpu.concatenate %47, %47, %47, %47 in 0 : vector<8x32xf32>, vector<8x32xf32>, vector<8x32xf32>, vector<8x32xf32> -> vector<32x32xf32>
    %51 = arith.mulf %50, %4 : vector<32x32xf32>
    %cst_29 = arith.constant dense<0.000000e+00> : vector<8x32xf32>
    %52 = tpu.matmul %45, %49, %cst_29 {dimension_numbers = #tpu.dot_dimension_numbers<[1], [1], [0], [0], [0, 0, 1, 0], [], []>} : vector<8x32xf32>, vector<32x32xf32>, vector<8x32xf32> -> vector<8x32xf32>
    %cst_30 = arith.constant 0.353553385 : f32
    %53 = vector.broadcast %cst_30 : f32 to vector<8x32xf32>
    %54 = arith.mulf %52, %53 : vector<8x32xf32>
    %55 = arith.addf %54, %6 : vector<8x32xf32>
    %cst_31 = arith.constant dense<0xFF800000> : vector<8xf32>
    %56 = vector.multi_reduction <maximumf>, %55, %cst_31 [1] : vector<8x32xf32> to vector<8xf32>
    %57 = vector.shape_cast %56 : vector<8xf32> to vector<8x1xf32>
    %58 = vector.broadcast %57 : vector<8x1xf32> to vector<8x32xf32>
    %59 = arith.subf %55, %58 : vector<8x32xf32>
    %60 = math.exp %59 : vector<8x32xf32>
    %cst_32 = arith.constant dense<0.000000e+00> : vector<8x32xf32>
    %61 = tpu.matmul %60, %5, %cst_32 {dimension_numbers = #tpu.dot_dimension_numbers<[1], [0], [0], [1], [0, 0, 1, 1], [], []>} : vector<8x32xf32>, vector<32x32xf32>, vector<8x32xf32> -> vector<8x32xf32>
    %62 = arith.divf %60, %61 : vector<8x32xf32>
    %cst_33 = arith.constant dense<0.000000e+00> : vector<8x32xf32>
    %63 = tpu.matmul %62, %51, %cst_33 {dimension_numbers = #tpu.dot_dimension_numbers<[1], [0], [0], [1], [0, 0, 1, 1], [], []>} : vector<8x32xf32>, vector<32x32xf32>, vector<8x32xf32> -> vector<8x32xf32>
    %64 = vector.extract_strided_slice %42 {offsets = [8, 0], sizes = [8, 32], strides = [1, 1]} : vector<16x32xf32> to vector<8x32xf32>
    %65 = vector.extract_strided_slice %43 {offsets = [8, 0], sizes = [8, 32], strides = [1, 1]} : vector<16x32xf32> to vector<8x32xf32>
    %66 = vector.extract_strided_slice %44 {offsets = [8, 0], sizes = [8, 32], strides = [1, 1]} : vector<16x32xf32> to vector<8x32xf32>
    %67 = tpu.concatenate %65, %65, %65, %65 in 0 : vector<8x32xf32>, vector<8x32xf32>, vector<8x32xf32>, vector<8x32xf32> -> vector<32x32xf32>
    %68 = arith.mulf %67, %4 : vector<32x32xf32>
    %69 = tpu.concatenate %66, %66, %66, %66 in 0 : vector<8x32xf32>, vector<8x32xf32>, vector<8x32xf32>, vector<8x32xf32> -> vector<32x32xf32>
    %70 = arith.mulf %69, %4 : vector<32x32xf32>
    %cst_34 = arith.constant dense<0.000000e+00> : vector<8x32xf32>
    %71 = tpu.matmul %64, %68, %cst_34 {dimension_numbers = #tpu.dot_dimension_numbers<[1], [1], [0], [0], [0, 0, 1, 0], [], []>} : vector<8x32xf32>, vector<32x32xf32>, vector<8x32xf32> -> vector<8x32xf32>
    %cst_35 = arith.constant 0.353553385 : f32
    %72 = vector.broadcast %cst_35 : f32 to vector<8x32xf32>
    %73 = arith.mulf %71, %72 : vector<8x32xf32>
    %74 = arith.addf %73, %6 : vector<8x32xf32>
    %cst_36 = arith.constant dense<0xFF800000> : vector<8xf32>
    %75 = vector.multi_reduction <maximumf>, %74, %cst_36 [1] : vector<8x32xf32> to vector<8xf32>
    %76 = vector.shape_cast %75 : vector<8xf32> to vector<8x1xf32>
    %77 = vector.broadcast %76 : vector<8x1xf32> to vector<8x32xf32>
    %78 = arith.subf %74, %77 : vector<8x32xf32>
    %79 = math.exp %78 : vector<8x32xf32>
    %cst_37 = arith.constant dense<0.000000e+00> : vector<8x32xf32>
    %80 = tpu.matmul %79, %5, %cst_37 {dimension_numbers = #tpu.dot_dimension_numbers<[1], [0], [0], [1], [0, 0, 1, 1], [], []>} : vector<8x32xf32>, vector<32x32xf32>, vector<8x32xf32> -> vector<8x32xf32>
    %81 = arith.divf %79, %80 : vector<8x32xf32>
    %cst_38 = arith.constant dense<0.000000e+00> : vector<8x32xf32>
    %82 = tpu.matmul %81, %70, %cst_38 {dimension_numbers = #tpu.dot_dimension_numbers<[1], [0], [0], [1], [0, 0, 1, 1], [], []>} : vector<8x32xf32>, vector<32x32xf32>, vector<8x32xf32> -> vector<8x32xf32>
    %83 = tpu.concatenate %63, %82 in 0 : vector<8x32xf32>, vector<8x32xf32> -> vector<16x32xf32>
    %c0_39 = arith.constant 0 : index
    %c0_40 = arith.constant 0 : index
    %c0_41 = arith.constant 0 : index
    %84 = vector.load %arg20[%c0_39, %c0_40, %c0_41] : memref<1x32x32xf32, #tpu.memory_space<vmem>>, vector<1x32x32xf32>
    %85 = vector.shape_cast %84 : vector<1x32x32xf32> to vector<32x32xf32>
    %cst_42 = arith.constant dense<0.000000e+00> : vector<16x32xf32>
    %86 = tpu.matmul %83, %85, %cst_42 {dimension_numbers = #tpu.dot_dimension_numbers<[1], [0], [0], [1], [0, 0, 1, 1], [], []>} : vector<16x32xf32>, vector<32x32xf32>, vector<16x32xf32> -> vector<16x32xf32>
    %87 = arith.addf %3, %86 : vector<16x32xf32>
    %c0_43 = arith.constant 0 : index
    %c0_44 = arith.constant 0 : index
    %c0_45 = arith.constant 0 : index
    %88 = vector.load %arg21[%c0_43, %c0_44, %c0_45] : memref<1x1x32xf32, #tpu.memory_space<vmem>>, vector<1x1x32xf32>
    %89 = vector.shape_cast %88 : vector<1x1x32xf32> to vector<1x32xf32>
    %90 = vector.broadcast %89 : vector<1x32xf32> to vector<16x32xf32>
    %91 = arith.addf %87, %90 : vector<16x32xf32>
    %c0_46 = arith.constant 0 : index
    %c0_47 = arith.constant 0 : index
    %c0_48 = arith.constant 0 : index
    %92 = vector.load %arg32[%c0_46, %c0_47, %c0_48] : memref<1x1x32xf32, #tpu.memory_space<vmem>>, vector<1x1x32xf32>
    %93 = vector.shape_cast %92 : vector<1x1x32xf32> to vector<1x32xf32>
    %c0_49 = arith.constant 0 : index
    %c0_50 = arith.constant 0 : index
    %c0_51 = arith.constant 0 : index
    %94 = vector.load %arg33[%c0_49, %c0_50, %c0_51] : memref<1x1x32xf32, #tpu.memory_space<vmem>>, vector<1x1x32xf32>
    %95 = vector.shape_cast %94 : vector<1x1x32xf32> to vector<1x32xf32>
    %cst_52 = arith.constant dense<0.000000e+00> : vector<16xf32>
    %96 = vector.multi_reduction <add>, %91, %cst_52 [1] : vector<16x32xf32> to vector<16xf32>
    %97 = vector.shape_cast %96 : vector<16xf32> to vector<16x1xf32>
    %cst_53 = arith.constant 3.200000e+01 : f32
    %98 = vector.broadcast %cst_53 : f32 to vector<16x1xf32>
    %99 = arith.divf %97, %98 : vector<16x1xf32>
    %100 = vector.broadcast %99 : vector<16x1xf32> to vector<16x32xf32>
    %101 = arith.subf %91, %100 : vector<16x32xf32>
    %102 = arith.mulf %101, %101 : vector<16x32xf32>
    %cst_54 = arith.constant dense<0.000000e+00> : vector<16xf32>
    %103 = vector.multi_reduction <add>, %102, %cst_54 [1] : vector<16x32xf32> to vector<16xf32>
    %104 = vector.shape_cast %103 : vector<16xf32> to vector<16x1xf32>
    %cst_55 = arith.constant 3.200000e+01 : f32
    %105 = vector.broadcast %cst_55 : f32 to vector<16x1xf32>
    %106 = arith.divf %104, %105 : vector<16x1xf32>
    %107 = vector.broadcast %99 : vector<16x1xf32> to vector<16x32xf32>
    %108 = arith.subf %91, %107 : vector<16x32xf32>
    %cst_56 = arith.constant 9.99999974E-6 : f32
    %109 = vector.broadcast %cst_56 : f32 to vector<16x1xf32>
    %110 = arith.addf %106, %109 : vector<16x1xf32>
    %111 = math.rsqrt %110 : vector<16x1xf32>
    %112 = vector.broadcast %111 : vector<16x1xf32> to vector<16x32xf32>
    %113 = arith.mulf %108, %112 : vector<16x32xf32>
    %114 = vector.broadcast %93 : vector<1x32xf32> to vector<16x32xf32>
    %115 = arith.mulf %113, %114 : vector<16x32xf32>
    %116 = vector.broadcast %95 : vector<1x32xf32> to vector<16x32xf32>
    %117 = arith.addf %115, %116 : vector<16x32xf32>
    %c0_57 = arith.constant 0 : index
    %c0_58 = arith.constant 0 : index
    %c0_59 = arith.constant 0 : index
    %118 = vector.load %arg22[%c0_57, %c0_58, %c0_59] : memref<1x32x32xf32, #tpu.memory_space<vmem>>, vector<1x32x32xf32>
    %119 = vector.shape_cast %118 : vector<1x32x32xf32> to vector<32x32xf32>
    %cst_60 = arith.constant dense<0.000000e+00> : vector<16x32xf32>
    %120 = tpu.matmul %117, %119, %cst_60 {dimension_numbers = #tpu.dot_dimension_numbers<[1], [0], [0], [1], [0, 0, 1, 1], [], []>} : vector<16x32xf32>, vector<32x32xf32>, vector<16x32xf32> -> vector<16x32xf32>
    %c0_61 = arith.constant 0 : index
    %c0_62 = arith.constant 0 : index
    %c0_63 = arith.constant 0 : index
    %121 = vector.load %arg23[%c0_61, %c0_62, %c0_63] : memref<1x1x32xf32, #tpu.memory_space<vmem>>, vector<1x1x32xf32>
    %122 = vector.shape_cast %121 : vector<1x1x32xf32> to vector<1x32xf32>
    %123 = vector.broadcast %122 : vector<1x32xf32> to vector<16x32xf32>
    %124 = arith.addf %120, %123 : vector<16x32xf32>
    %125 = arith.index_cast %arg0 : i32 to index
    %c0_64 = arith.constant 0 : index
    %c0_65 = arith.constant 0 : index
    %126 = vector.load %arg42[%125, %c0_64, %c0_65] : memref<2x16x64xf32, #tpu.memory_space<vmem>>, vector<1x16x64xf32>
    %127 = vector.shape_cast %126 : vector<1x16x64xf32> to vector<16x64xf32>
    %128 = vector.extract_strided_slice %127 {offsets = [0, 0], sizes = [16, 32], strides = [1, 1]} : vector<16x64xf32> to vector<16x32xf32>
    %129 = vector.extract_strided_slice %127 {offsets = [0, 32], sizes = [16, 32], strides = [1, 1]} : vector<16x64xf32> to vector<16x32xf32>
    %130 = vector.extract_strided_slice %124 {offsets = [0, 0], sizes = [8, 32], strides = [1, 1]} : vector<16x32xf32> to vector<8x32xf32>
    %131 = vector.extract_strided_slice %128 {offsets = [0, 0], sizes = [8, 32], strides = [1, 1]} : vector<16x32xf32> to vector<8x32xf32>
    %132 = vector.extract_strided_slice %129 {offsets = [0, 0], sizes = [8, 32], strides = [1, 1]} : vector<16x32xf32> to vector<8x32xf32>
    %133 = tpu.concatenate %131, %131, %131, %131 in 0 : vector<8x32xf32>, vector<8x32xf32>, vector<8x32xf32>, vector<8x32xf32> -> vector<32x32xf32>
    %134 = arith.mulf %133, %7 : vector<32x32xf32>
    %135 = tpu.concatenate %132, %132, %132, %132 in 0 : vector<8x32xf32>, vector<8x32xf32>, vector<8x32xf32>, vector<8x32xf32> -> vector<32x32xf32>
    %136 = arith.mulf %135, %7 : vector<32x32xf32>
    %cst_66 = arith.constant dense<0.000000e+00> : vector<8x32xf32>
    %137 = tpu.matmul %130, %134, %cst_66 {dimension_numbers = #tpu.dot_dimension_numbers<[1], [1], [0], [0], [0, 0, 1, 0], [], []>} : vector<8x32xf32>, vector<32x32xf32>, vector<8x32xf32> -> vector<8x32xf32>
    %cst_67 = arith.constant 0.353553385 : f32
    %138 = vector.broadcast %cst_67 : f32 to vector<8x32xf32>
    %139 = arith.mulf %137, %138 : vector<8x32xf32>
    %cst_68 = arith.constant dense<0xFF800000> : vector<8xf32>
    %140 = vector.multi_reduction <maximumf>, %139, %cst_68 [1] : vector<8x32xf32> to vector<8xf32>
    %141 = vector.shape_cast %140 : vector<8xf32> to vector<8x1xf32>
    %142 = vector.broadcast %141 : vector<8x1xf32> to vector<8x32xf32>
    %143 = arith.subf %139, %142 : vector<8x32xf32>
    %144 = math.exp %143 : vector<8x32xf32>
    %cst_69 = arith.constant dense<0.000000e+00> : vector<8x32xf32>
    %145 = tpu.matmul %144, %8, %cst_69 {dimension_numbers = #tpu.dot_dimension_numbers<[1], [0], [0], [1], [0, 0, 1, 1], [], []>} : vector<8x32xf32>, vector<32x32xf32>, vector<8x32xf32> -> vector<8x32xf32>
    %146 = arith.divf %144, %145 : vector<8x32xf32>
    %cst_70 = arith.constant dense<0.000000e+00> : vector<8x32xf32>
    %147 = tpu.matmul %146, %136, %cst_70 {dimension_numbers = #tpu.dot_dimension_numbers<[1], [0], [0], [1], [0, 0, 1, 1], [], []>} : vector<8x32xf32>, vector<32x32xf32>, vector<8x32xf32> -> vector<8x32xf32>
    %148 = vector.extract_strided_slice %124 {offsets = [8, 0], sizes = [8, 32], strides = [1, 1]} : vector<16x32xf32> to vector<8x32xf32>
    %149 = vector.extract_strided_slice %128 {offsets = [8, 0], sizes = [8, 32], strides = [1, 1]} : vector<16x32xf32> to vector<8x32xf32>
    %150 = vector.extract_strided_slice %129 {offsets = [8, 0], sizes = [8, 32], strides = [1, 1]} : vector<16x32xf32> to vector<8x32xf32>
    %151 = tpu.concatenate %149, %149, %149, %149 in 0 : vector<8x32xf32>, vector<8x32xf32>, vector<8x32xf32>, vector<8x32xf32> -> vector<32x32xf32>
    %152 = arith.mulf %151, %7 : vector<32x32xf32>
    %153 = tpu.concatenate %150, %150, %150, %150 in 0 : vector<8x32xf32>, vector<8x32xf32>, vector<8x32xf32>, vector<8x32xf32> -> vector<32x32xf32>
    %154 = arith.mulf %153, %7 : vector<32x32xf32>
    %cst_71 = arith.constant dense<0.000000e+00> : vector<8x32xf32>
    %155 = tpu.matmul %148, %152, %cst_71 {dimension_numbers = #tpu.dot_dimension_numbers<[1], [1], [0], [0], [0, 0, 1, 0], [], []>} : vector<8x32xf32>, vector<32x32xf32>, vector<8x32xf32> -> vector<8x32xf32>
    %cst_72 = arith.constant 0.353553385 : f32
    %156 = vector.broadcast %cst_72 : f32 to vector<8x32xf32>
    %157 = arith.mulf %155, %156 : vector<8x32xf32>
    %cst_73 = arith.constant dense<0xFF800000> : vector<8xf32>
    %158 = vector.multi_reduction <maximumf>, %157, %cst_73 [1] : vector<8x32xf32> to vector<8xf32>
    %159 = vector.shape_cast %158 : vector<8xf32> to vector<8x1xf32>
    %160 = vector.broadcast %159 : vector<8x1xf32> to vector<8x32xf32>
    %161 = arith.subf %157, %160 : vector<8x32xf32>
    %162 = math.exp %161 : vector<8x32xf32>
    %cst_74 = arith.constant dense<0.000000e+00> : vector<8x32xf32>
    %163 = tpu.matmul %162, %8, %cst_74 {dimension_numbers = #tpu.dot_dimension_numbers<[1], [0], [0], [1], [0, 0, 1, 1], [], []>} : vector<8x32xf32>, vector<32x32xf32>, vector<8x32xf32> -> vector<8x32xf32>
    %164 = arith.divf %162, %163 : vector<8x32xf32>
    %cst_75 = arith.constant dense<0.000000e+00> : vector<8x32xf32>
    %165 = tpu.matmul %164, %154, %cst_75 {dimension_numbers = #tpu.dot_dimension_numbers<[1], [0], [0], [1], [0, 0, 1, 1], [], []>} : vector<8x32xf32>, vector<32x32xf32>, vector<8x32xf32> -> vector<8x32xf32>
    %166 = tpu.concatenate %147, %165 in 0 : vector<8x32xf32>, vector<8x32xf32> -> vector<16x32xf32>
    %c0_76 = arith.constant 0 : index
    %c0_77 = arith.constant 0 : index
    %c0_78 = arith.constant 0 : index
    %167 = vector.load %arg24[%c0_76, %c0_77, %c0_78] : memref<1x32x32xf32, #tpu.memory_space<vmem>>, vector<1x32x32xf32>
    %168 = vector.shape_cast %167 : vector<1x32x32xf32> to vector<32x32xf32>
    %cst_79 = arith.constant dense<0.000000e+00> : vector<16x32xf32>
    %169 = tpu.matmul %166, %168, %cst_79 {dimension_numbers = #tpu.dot_dimension_numbers<[1], [0], [0], [1], [0, 0, 1, 1], [], []>} : vector<16x32xf32>, vector<32x32xf32>, vector<16x32xf32> -> vector<16x32xf32>
    %170 = arith.addf %91, %169 : vector<16x32xf32>
    %c0_80 = arith.constant 0 : index
    %c0_81 = arith.constant 0 : index
    %c0_82 = arith.constant 0 : index
    %171 = vector.load %arg25[%c0_80, %c0_81, %c0_82] : memref<1x1x32xf32, #tpu.memory_space<vmem>>, vector<1x1x32xf32>
    %172 = vector.shape_cast %171 : vector<1x1x32xf32> to vector<1x32xf32>
    %173 = vector.broadcast %172 : vector<1x32xf32> to vector<16x32xf32>
    %174 = arith.addf %170, %173 : vector<16x32xf32>
    %c0_83 = arith.constant 0 : index
    %c0_84 = arith.constant 0 : index
    %c0_85 = arith.constant 0 : index
    %175 = vector.load %arg34[%c0_83, %c0_84, %c0_85] : memref<1x1x32xf32, #tpu.memory_space<vmem>>, vector<1x1x32xf32>
    %176 = vector.shape_cast %175 : vector<1x1x32xf32> to vector<1x32xf32>
    %c0_86 = arith.constant 0 : index
    %c0_87 = arith.constant 0 : index
    %c0_88 = arith.constant 0 : index
    %177 = vector.load %arg35[%c0_86, %c0_87, %c0_88] : memref<1x1x32xf32, #tpu.memory_space<vmem>>, vector<1x1x32xf32>
    %178 = vector.shape_cast %177 : vector<1x1x32xf32> to vector<1x32xf32>
    %cst_89 = arith.constant dense<0.000000e+00> : vector<16xf32>
    %179 = vector.multi_reduction <add>, %174, %cst_89 [1] : vector<16x32xf32> to vector<16xf32>
    %180 = vector.shape_cast %179 : vector<16xf32> to vector<16x1xf32>
    %cst_90 = arith.constant 3.200000e+01 : f32
    %181 = vector.broadcast %cst_90 : f32 to vector<16x1xf32>
    %182 = arith.divf %180, %181 : vector<16x1xf32>
    %183 = vector.broadcast %182 : vector<16x1xf32> to vector<16x32xf32>
    %184 = arith.subf %174, %183 : vector<16x32xf32>
    %185 = arith.mulf %184, %184 : vector<16x32xf32>
    %cst_91 = arith.constant dense<0.000000e+00> : vector<16xf32>
    %186 = vector.multi_reduction <add>, %185, %cst_91 [1] : vector<16x32xf32> to vector<16xf32>
    %187 = vector.shape_cast %186 : vector<16xf32> to vector<16x1xf32>
    %cst_92 = arith.constant 3.200000e+01 : f32
    %188 = vector.broadcast %cst_92 : f32 to vector<16x1xf32>
    %189 = arith.divf %187, %188 : vector<16x1xf32>
    %190 = vector.broadcast %182 : vector<16x1xf32> to vector<16x32xf32>
    %191 = arith.subf %174, %190 : vector<16x32xf32>
    %cst_93 = arith.constant 9.99999974E-6 : f32
    %192 = vector.broadcast %cst_93 : f32 to vector<16x1xf32>
    %193 = arith.addf %189, %192 : vector<16x1xf32>
    %194 = math.rsqrt %193 : vector<16x1xf32>
    %195 = vector.broadcast %194 : vector<16x1xf32> to vector<16x32xf32>
    %196 = arith.mulf %191, %195 : vector<16x32xf32>
    %197 = vector.broadcast %176 : vector<1x32xf32> to vector<16x32xf32>
    %198 = arith.mulf %196, %197 : vector<16x32xf32>
    %199 = vector.broadcast %178 : vector<1x32xf32> to vector<16x32xf32>
    %200 = arith.addf %198, %199 : vector<16x32xf32>
    %201 = arith.truncf %200 : vector<16x32xf32> to vector<16x32xbf16>
    %c0_94 = arith.constant 0 : index
    %c0_95 = arith.constant 0 : index
    %c0_96 = arith.constant 0 : index
    %202 = vector.load %arg26[%c0_94, %c0_95, %c0_96] : memref<1x32x2048xbf16, #tpu.memory_space<vmem>>, vector<1x32x1024xbf16>
    %203 = vector.shape_cast %202 : vector<1x32x1024xbf16> to vector<32x1024xbf16>
    %cst_97 = arith.constant dense<0.000000e+00> : vector<16x1024xf32>
    %204 = tpu.matmul %201, %203, %cst_97 {dimension_numbers = #tpu.dot_dimension_numbers<[1], [0], [0], [1], [0, 0, 1, 1], [], []>} : vector<16x32xbf16>, vector<32x1024xbf16>, vector<16x1024xf32> -> vector<16x1024xf32>
    %c0_98 = arith.constant 0 : index
    %c0_99 = arith.constant 0 : index
    %c0_100 = arith.constant 0 : index
    %205 = vector.load %arg27[%c0_98, %c0_99, %c0_100] : memref<1x1x2048xf32, #tpu.memory_space<vmem>>, vector<1x1x1024xf32>
    %206 = vector.shape_cast %205 : vector<1x1x1024xf32> to vector<1x1024xf32>
    %207 = vector.broadcast %206 : vector<1x1024xf32> to vector<16x1024xf32>
    %208 = arith.addf %204, %207 : vector<16x1024xf32>
    %cst_101 = arith.constant 0.000000e+00 : f32
    %209 = vector.broadcast %cst_101 : f32 to vector<16x1024xf32>
    %210 = arith.maximumf %208, %209 : vector<16x1024xf32>
    %211 = arith.truncf %210 : vector<16x1024xf32> to vector<16x1024xbf16>
    %c0_102 = arith.constant 0 : index
    %c0_103 = arith.constant 0 : index
    %c0_104 = arith.constant 0 : index
    %212 = vector.load %arg28[%c0_102, %c0_103, %c0_104] : memref<1x2048x32xbf16, #tpu.memory_space<vmem>>, vector<1x1024x32xbf16>
    %213 = vector.shape_cast %212 : vector<1x1024x32xbf16> to vector<1024x32xbf16>
    %cst_105 = arith.constant dense<0.000000e+00> : vector<16x32xf32>
    %214 = tpu.matmul %211, %213, %cst_105 {dimension_numbers = #tpu.dot_dimension_numbers<[1], [0], [0], [1], [0, 0, 1, 1], [], []>} : vector<16x1024xbf16>, vector<1024x32xbf16>, vector<16x32xf32> -> vector<16x32xf32>
    %c0_106 = arith.constant 0 : index
    %c0_107 = arith.constant 0 : index
    %c1024 = arith.constant 1024 : index
    %215 = vector.load %arg26[%c0_106, %c0_107, %c1024] : memref<1x32x2048xbf16, #tpu.memory_space<vmem>>, vector<1x32x1024xbf16>
    %216 = vector.shape_cast %215 : vector<1x32x1024xbf16> to vector<32x1024xbf16>
    %cst_108 = arith.constant dense<0.000000e+00> : vector<16x1024xf32>
    %217 = tpu.matmul %201, %216, %cst_108 {dimension_numbers = #tpu.dot_dimension_numbers<[1], [0], [0], [1], [0, 0, 1, 1], [], []>} : vector<16x32xbf16>, vector<32x1024xbf16>, vector<16x1024xf32> -> vector<16x1024xf32>
    %c0_109 = arith.constant 0 : index
    %c0_110 = arith.constant 0 : index
    %c1024_111 = arith.constant 1024 : index
    %218 = vector.load %arg27[%c0_109, %c0_110, %c1024_111] : memref<1x1x2048xf32, #tpu.memory_space<vmem>>, vector<1x1x1024xf32>
    %219 = vector.shape_cast %218 : vector<1x1x1024xf32> to vector<1x1024xf32>
    %220 = vector.broadcast %219 : vector<1x1024xf32> to vector<16x1024xf32>
    %221 = arith.addf %217, %220 : vector<16x1024xf32>
    %cst_112 = arith.constant 0.000000e+00 : f32
    %222 = vector.broadcast %cst_112 : f32 to vector<16x1024xf32>
    %223 = arith.maximumf %221, %222 : vector<16x1024xf32>
    %224 = arith.truncf %223 : vector<16x1024xf32> to vector<16x1024xbf16>
    %c0_113 = arith.constant 0 : index
    %c1024_114 = arith.constant 1024 : index
    %c0_115 = arith.constant 0 : index
    %225 = vector.load %arg28[%c0_113, %c1024_114, %c0_115] : memref<1x2048x32xbf16, #tpu.memory_space<vmem>>, vector<1x1024x32xbf16>
    %226 = vector.shape_cast %225 : vector<1x1024x32xbf16> to vector<1024x32xbf16>
    %cst_116 = arith.constant dense<0.000000e+00> : vector<16x32xf32>
    %227 = tpu.matmul %224, %226, %cst_116 {dimension_numbers = #tpu.dot_dimension_numbers<[1], [0], [0], [1], [0, 0, 1, 1], [], []>} : vector<16x1024xbf16>, vector<1024x32xbf16>, vector<16x32xf32> -> vector<16x32xf32>
    %228 = arith.addf %214, %227 : vector<16x32xf32>
    %229 = arith.addf %174, %228 : vector<16x32xf32>
    %c0_117 = arith.constant 0 : index
    %c0_118 = arith.constant 0 : index
    %c0_119 = arith.constant 0 : index
    %230 = vector.load %arg29[%c0_117, %c0_118, %c0_119] : memref<1x1x32xf32, #tpu.memory_space<vmem>>, vector<1x1x32xf32>
    %231 = vector.shape_cast %230 : vector<1x1x32xf32> to vector<1x32xf32>
    %232 = vector.broadcast %231 : vector<1x32xf32> to vector<16x32xf32>
    %233 = arith.addf %229, %232 : vector<16x32xf32>
    %c0_120 = arith.constant 0 : index
    %c0_121 = arith.constant 0 : index
    %234 = vector.load %arg41[%c0_120, %c0_121] : memref<16x32xf32, #tpu.memory_space<vmem>>, vector<16x32xf32>
    tpu.vector_store %arg41[%c0_120, %c0_121], %233 {strides = array<i32>} : memref<16x32xf32, #tpu.memory_space<vmem>>, vector<16x32xf32>,
    %c1_i32 = arith.constant 1 : i32
    %235 = arith.cmpi eq, %arg0, %c1_i32 : i32
    %236 = arith.extui %235 : i1 to i32
    %c0_i32_122 = arith.constant 0 : i32
    %237 = arith.cmpi ne, %236, %c0_i32_122 : i32
    scf.if %237 {
      %238 = arith.truncf %233 : vector<16x32xf32> to vector<16x32xbf16>
      %c0_123 = arith.constant 0 : index
      %c0_124 = arith.constant 0 : index
      %239 = vector.load %arg36[%c0_123, %c0_124] : memref<32x1024xbf16, #tpu.memory_space<vmem>>, vector<32x1024xbf16>
      %cst_125 = arith.constant dense<0.000000e+00> : vector<16x1024xf32>
      %240 = tpu.matmul %238, %239, %cst_125 {dimension_numbers = #tpu.dot_dimension_numbers<[1], [0], [0], [1], [0, 0, 1, 1], [], []>} : vector<16x32xbf16>, vector<32x1024xbf16>, vector<16x1024xf32> -> vector<16x1024xf32>
      %c0_126 = arith.constant 0 : index
      %c0_127 = arith.constant 0 : index
      %241 = vector.load %arg37[%c0_126, %c0_127] : memref<1x1024xf32, #tpu.memory_space<vmem>>, vector<1x1024xf32>
      %242 = vector.broadcast %241 : vector<1x1024xf32> to vector<16x1024xf32>
      %243 = arith.addf %240, %242 : vector<16x1024xf32>
      %244 = vector.extract_strided_slice %243 {offsets = [0, 896], sizes = [16, 128], strides = [1, 1]} : vector<16x1024xf32> to vector<16x128xf32>
      %cst_128 = arith.constant 5.000000e-01 : f32
      %245 = vector.broadcast %cst_128 : f32 to vector<16x128xf32>
      %246 = arith.mulf %245, %244 : vector<16x128xf32>
      %cst_129 = arith.constant 0.707106769 : f32
      %247 = vector.broadcast %cst_129 : f32 to vector<16x128xf32>
      %248 = arith.mulf %244, %247 : vector<16x128xf32>
      %cst_130 = arith.constant 0.000000e+00 : f32
      %249 = vector.broadcast %cst_130 : f32 to vector<16x128xf32>
      %250 = arith.cmpf oge, %248, %249 : vector<16x128xf32>
      %cst_131 = arith.constant 1.000000e+00 : f32
      %cst_132 = arith.constant -1.000000e+00 : f32
      %251 = vector.broadcast %cst_131 : f32 to vector<16x128xf32>
      %252 = vector.broadcast %cst_132 : f32 to vector<16x128xf32>
      %253 = arith.select %250, %251, %252 : vector<16x128xi1>, vector<16x128xf32>
      %254 = math.absf %248 : vector<16x128xf32>
      %cst_133 = arith.constant 0.327591091 : f32
      %255 = vector.broadcast %cst_133 : f32 to vector<16x128xf32>
      %256 = arith.mulf %255, %254 : vector<16x128xf32>
      %cst_134 = arith.constant 1.000000e+00 : f32
      %257 = vector.broadcast %cst_134 : f32 to vector<16x128xf32>
      %258 = arith.addf %257, %256 : vector<16x128xf32>
      %cst_135 = arith.constant 1.000000e+00 : f32
      %259 = vector.broadcast %cst_135 : f32 to vector<16x128xf32>
      %260 = arith.divf %259, %258 : vector<16x128xf32>
      %cst_136 = arith.constant 1.06140542 : f32
      %261 = vector.broadcast %cst_136 : f32 to vector<16x128xf32>
      %262 = arith.mulf %261, %260 : vector<16x128xf32>
      %cst_137 = arith.constant -1.45315206 : f32
      %263 = vector.broadcast %cst_137 : f32 to vector<16x128xf32>
      %264 = arith.addf %262, %263 : vector<16x128xf32>
      %265 = arith.mulf %264, %260 : vector<16x128xf32>
      %cst_138 = arith.constant 1.42141378 : f32
      %266 = vector.broadcast %cst_138 : f32 to vector<16x128xf32>
      %267 = arith.addf %265, %266 : vector<16x128xf32>
      %268 = arith.mulf %267, %260 : vector<16x128xf32>
      %cst_139 = arith.constant -0.284496725 : f32
      %269 = vector.broadcast %cst_139 : f32 to vector<16x128xf32>
      %270 = arith.addf %268, %269 : vector<16x128xf32>
      %271 = arith.mulf %270, %260 : vector<16x128xf32>
      %cst_140 = arith.constant 0.254829586 : f32
      %272 = vector.broadcast %cst_140 : f32 to vector<16x128xf32>
      %273 = arith.addf %271, %272 : vector<16x128xf32>
      %274 = arith.mulf %273, %260 : vector<16x128xf32>
      %cst_141 = arith.constant 0.000000e+00 : f32
      %275 = vector.broadcast %cst_141 : f32 to vector<16x128xf32>
      %276 = arith.subf %275, %254 : vector<16x128xf32>
      %277 = arith.mulf %276, %254 : vector<16x128xf32>
      %278 = math.exp %277 : vector<16x128xf32>
      %279 = arith.mulf %274, %278 : vector<16x128xf32>
      %cst_142 = arith.constant 1.000000e+00 : f32
      %280 = vector.broadcast %cst_142 : f32 to vector<16x128xf32>
      %281 = arith.subf %280, %279 : vector<16x128xf32>
      %282 = arith.mulf %253, %281 : vector<16x128xf32>
      %cst_143 = arith.constant 1.000000e+00 : f32
      %283 = vector.broadcast %cst_143 : f32 to vector<16x128xf32>
      %284 = arith.addf %283, %282 : vector<16x128xf32>
      %285 = arith.mulf %246, %284 : vector<16x128xf32>
      %286 = arith.truncf %285 : vector<16x128xf32> to vector<16x128xbf16>
      %c0_144 = arith.constant 0 : index
      %c0_145 = arith.constant 0 : index
      %287 = vector.load %arg38[%c0_144, %c0_145] : memref<128x128xbf16, #tpu.memory_space<vmem>>, vector<128x128xbf16>
      %cst_146 = arith.constant dense<0.000000e+00> : vector<16x128xf32>
      %288 = tpu.matmul %286, %287, %cst_146 {dimension_numbers = #tpu.dot_dimension_numbers<[1], [0], [0], [1], [0, 0, 1, 1], [], []>} : vector<16x128xbf16>, vector<128x128xbf16>, vector<16x128xf32> -> vector<16x128xf32>
      %c0_147 = arith.constant 0 : index
      %c0_148 = arith.constant 0 : index
      %289 = vector.load %arg39[%c0_147, %c0_148] : memref<1x128xf32, #tpu.memory_space<vmem>>, vector<1x128xf32>
      %290 = vector.broadcast %289 : vector<1x128xf32> to vector<16x128xf32>
      %291 = arith.addf %288, %290 : vector<16x128xf32>
      %292 = vector.extract_strided_slice %243 {offsets = [0, 0], sizes = [16, 896], strides = [1, 1]} : vector<16x1024xf32> to vector<16x896xf32>
      %c0_149 = arith.constant 0 : index
      %c0_150 = arith.constant 0 : index
      %293 = vector.load %arg40[%c0_149, %c0_150] : memref<16x1024xf32, #tpu.memory_space<vmem>>, vector<16x896xf32>
      tpu.vector_store %arg40[%c0_149, %c0_150], %292 {strides = array<i32>} : memref<16x1024xf32, #tpu.memory_space<vmem>>, vector<16x896xf32>,
      %c0_151 = arith.constant 0 : index
      %c896 = arith.constant 896 : index
      %294 = vector.load %arg40[%c0_151, %c896] : memref<16x1024xf32, #tpu.memory_space<vmem>>, vector<16x128xf32>
      tpu.vector_store %arg40[%c0_151, %c896], %291 {strides = array<i32>} : memref<16x1024xf32, #tpu.memory_space<vmem>>, vector<16x128xf32>,
    } else {
    }
    return
  }
  func.func @transform_0(%arg0: i32) -> (i32, i32) {
    %c0_i32 = arith.constant 0 : i32
    %c0_i32_0 = arith.constant 0 : i32
    %c0_i32_1 = arith.constant 0 : i32
    return %c0_i32, %c0_i32_0 : i32, i32
  }
  func.func @transform_1(%arg0: i32) -> (i32, i32) {
    %c0_i32 = arith.constant 0 : i32
    %c0_i32_0 = arith.constant 0 : i32
    %c0_i32_1 = arith.constant 0 : i32
    return %c0_i32, %c0_i32_0 : i32, i32
  }
  func.func @transform_2(%arg0: i32) -> (i32, i32) {
    %c0_i32 = arith.constant 0 : i32
    %c0_i32_0 = arith.constant 0 : i32
    %c0_i32_1 = arith.constant 0 : i32
    return %c0_i32, %c0_i32_0 : i32, i32
  }
  func.func @transform_3(%arg0: i32) -> (i32, i32) {
    %c0_i32 = arith.constant 0 : i32
    %c0_i32_0 = arith.constant 0 : i32
    %c0_i32_1 = arith.constant 0 : i32
    return %c0_i32, %c0_i32_0 : i32, i32
  }
  func.func @transform_4(%arg0: i32) -> (i32, i32) {
    %c0_i32 = arith.constant 0 : i32
    %c0_i32_0 = arith.constant 0 : i32
    %c0_i32_1 = arith.constant 0 : i32
    return %c0_i32, %c0_i32_0 : i32, i32
  }
  func.func @transform_5(%arg0: i32) -> (i32, i32) {
    %c0_i32 = arith.constant 0 : i32
    %c0_i32_0 = arith.constant 0 : i32
    %c0_i32_1 = arith.constant 0 : i32
    return %c0_i32, %c0_i32_0 : i32, i32
  }
  func.func @transform_6(%arg0: i32) -> (i32, i32) {
    %c0_i32 = arith.constant 0 : i32
    %c0_i32_0 = arith.constant 0 : i32
    %c0_i32_1 = arith.constant 0 : i32
    return %c0_i32, %c0_i32_0 : i32, i32
  }
  func.func @transform_7(%arg0: i32) -> (i32, i32) {
    %c0_i32 = arith.constant 0 : i32
    %c0_i32_0 = arith.constant 0 : i32
    %c0_i32_1 = arith.constant 0 : i32
    return %c0_i32, %c0_i32_0 : i32, i32
  }
  func.func @transform_8(%arg0: i32) -> (i32, i32) {
    %c0_i32 = arith.constant 0 : i32
    %c0_i32_0 = arith.constant 0 : i32
    %c0_i32_1 = arith.constant 0 : i32
    return %c0_i32, %c0_i32_0 : i32, i32
  }
  func.func @transform_9(%arg0: i32) -> (i32, i32) {
    %c0_i32 = arith.constant 0 : i32
    %c0_i32_0 = arith.constant 0 : i32
    %c0_i32_1 = arith.constant 0 : i32
    return %c0_i32, %c0_i32_0 : i32, i32
  }
  func.func @transform_10(%arg0: i32) -> (i32, i32) {
    %c0_i32 = arith.constant 0 : i32
    %c0_i32_0 = arith.constant 0 : i32
    %c0_i32_1 = arith.constant 0 : i32
    return %c0_i32, %c0_i32_0 : i32, i32
  }
  func.func @transform_11(%arg0: i32) -> (i32, i32) {
    %c0_i32 = arith.constant 0 : i32
    %c0_i32_0 = arith.constant 0 : i32
    %c0_i32_1 = arith.constant 0 : i32
    return %c0_i32, %c0_i32_0 : i32, i32
  }
  func.func @transform_12(%arg0: i32) -> (i32, i32) {
    %c0_i32 = arith.constant 0 : i32
    %c0_i32_0 = arith.constant 0 : i32
    %c0_i32_1 = arith.constant 0 : i32
    return %c0_i32, %c0_i32_0 : i32, i32
  }
  func.func @transform_13(%arg0: i32) -> (i32, i32) {
    %c0_i32 = arith.constant 0 : i32
    %c0_i32_0 = arith.constant 0 : i32
    %c0_i32_1 = arith.constant 0 : i32
    return %c0_i32, %c0_i32_0 : i32, i32
  }
  func.func @transform_14(%arg0: i32) -> (i32, i32) {
    %c0_i32 = arith.constant 0 : i32
    %c0_i32_0 = arith.constant 0 : i32
    %c0_i32_1 = arith.constant 0 : i32
    return %c0_i32, %c0_i32_0 : i32, i32
  }
  func.func @transform_15(%arg0: i32) -> (i32, i32) {
    %c0_i32 = arith.constant 0 : i32
    %c0_i32_0 = arith.constant 0 : i32
    %c0_i32_1 = arith.constant 0 : i32
    return %c0_i32, %c0_i32_0 : i32, i32
  }
  func.func @transform_16(%arg0: i32) -> (i32, i32) {
    %c0_i32 = arith.constant 0 : i32
    %c0_i32_0 = arith.constant 0 : i32
    %c0_i32_1 = arith.constant 0 : i32
    return %c0_i32, %c0_i32_0 : i32, i32
  }
  func.func @transform_17(%arg0: i32) -> (i32, i32, i32) {
    %c0_i32 = arith.constant 0 : i32
    %c0_i32_0 = arith.constant 0 : i32
    %c0_i32_1 = arith.constant 0 : i32
    return %arg0, %c0_i32, %c0_i32_0 : i32, i32, i32
  }
  func.func @transform_18(%arg0: i32) -> (i32, i32, i32) {
    %c0_i32 = arith.constant 0 : i32
    %c0_i32_0 = arith.constant 0 : i32
    %c0_i32_1 = arith.constant 0 : i32
    return %arg0, %c0_i32, %c0_i32_0 : i32, i32, i32
  }
  func.func @transform_19(%arg0: i32) -> (i32, i32, i32) {
    %c0_i32 = arith.constant 0 : i32
    %c0_i32_0 = arith.constant 0 : i32
    %c0_i32_1 = arith.constant 0 : i32
    return %arg0, %c0_i32, %c0_i32_0 : i32, i32, i32
  }
  func.func @transform_20(%arg0: i32) -> (i32, i32, i32) {
    %c0_i32 = arith.constant 0 : i32
    %c0_i32_0 = arith.constant 0 : i32
    %c0_i32_1 = arith.constant 0 : i32
    return %arg0, %c0_i32, %c0_i32_0 : i32, i32, i32
  }
  func.func @transform_21(%arg0: i32) -> (i32, i32, i32) {
    %c0_i32 = arith.constant 0 : i32
    %c0_i32_0 = arith.constant 0 : i32
    %c0_i32_1 = arith.constant 0 : i32
    return %arg0, %c0_i32, %c0_i32_0 : i32, i32, i32
  }
  func.func @transform_22(%arg0: i32) -> (i32, i32, i32) {
    %c0_i32 = arith.constant 0 : i32
    %c0_i32_0 = arith.constant 0 : i32
    %c0_i32_1 = arith.constant 0 : i32
    return %arg0, %c0_i32, %c0_i32_0 : i32, i32, i32
  }
  func.func @transform_23(%arg0: i32) -> (i32, i32, i32) {
    %c0_i32 = arith.constant 0 : i32
    %c0_i32_0 = arith.constant 0 : i32
    %c0_i32_1 = arith.constant 0 : i32
    return %arg0, %c0_i32, %c0_i32_0 : i32, i32, i32
  }
  func.func @transform_24(%arg0: i32) -> (i32, i32, i32) {
    %c0_i32 = arith.constant 0 : i32
    %c0_i32_0 = arith.constant 0 : i32
    %c0_i32_1 = arith.constant 0 : i32
    return %arg0, %c0_i32, %c0_i32_0 : i32, i32, i32
  }
  func.func @transform_25(%arg0: i32) -> (i32, i32, i32) {
    %c0_i32 = arith.constant 0 : i32
    %c0_i32_0 = arith.constant 0 : i32
    %c0_i32_1 = arith.constant 0 : i32
    return %arg0, %c0_i32, %c0_i32_0 : i32, i32, i32
  }
  func.func @transform_26(%arg0: i32) -> (i32, i32, i32) {
    %c0_i32 = arith.constant 0 : i32
    %c0_i32_0 = arith.constant 0 : i32
    %c0_i32_1 = arith.constant 0 : i32
    return %arg0, %c0_i32, %c0_i32_0 : i32, i32, i32
  }
  func.func @transform_27(%arg0: i32) -> (i32, i32, i32) {
    %c0_i32 = arith.constant 0 : i32
    %c0_i32_0 = arith.constant 0 : i32
    %c0_i32_1 = arith.constant 0 : i32
    return %arg0, %c0_i32, %c0_i32_0 : i32, i32, i32
  }
  func.func @transform_28(%arg0: i32) -> (i32, i32, i32) {
    %c0_i32 = arith.constant 0 : i32
    %c0_i32_0 = arith.constant 0 : i32
    %c0_i32_1 = arith.constant 0 : i32
    return %arg0, %c0_i32, %c0_i32_0 : i32, i32, i32
  }
  func.func @transform_29(%arg0: i32) -> (i32, i32, i32) {
    %c0_i32 = arith.constant 0 : i32
    %c0_i32_0 = arith.constant 0 : i32
    %c0_i32_1 = arith.constant 0 : i32
    return %arg0, %c0_i32, %c0_i32_0 : i32, i32, i32
  }
  func.func @transform_30(%arg0: i32) -> (i32, i32, i32) {
    %c0_i32 = arith.constant 0 : i32
    %c0_i32_0 = arith.constant 0 : i32
    %c0_i32_1 = arith.constant 0 : i32
    return %arg0, %c0_i32, %c0_i32_0 : i32, i32, i32
  }
  func.func @transform_31(%arg0: i32) -> (i32, i32, i32) {
    %c0_i32 = arith.constant 0 : i32
    %c0_i32_0 = arith.constant 0 : i32
    %c0_i32_1 = arith.constant 0 : i32
    return %arg0, %c0_i32, %c0_i32_0 : i32, i32, i32
  }
  func.func @transform_32(%arg0: i32) -> (i32, i32, i32) {
    %c0_i32 = arith.constant 0 : i32
    %c0_i32_0 = arith.constant 0 : i32
    %c0_i32_1 = arith.constant 0 : i32
    return %arg0, %c0_i32, %c0_i32_0 : i32, i32, i32
  }
  func.func @transform_33(%arg0: i32) -> (i32, i32, i32) {
    %c0_i32 = arith.constant 0 : i32
    %c0_i32_0 = arith.constant 0 : i32
    %c0_i32_1 = arith.constant 0 : i32
    return %arg0, %c0_i32, %c0_i32_0 : i32, i32, i32
  }
  func.func @transform_34(%arg0: i32) -> (i32, i32, i32) {
    %c0_i32 = arith.constant 0 : i32
    %c0_i32_0 = arith.constant 0 : i32
    %c0_i32_1 = arith.constant 0 : i32
    return %arg0, %c0_i32, %c0_i32_0 : i32, i32, i32
  }
  func.func @transform_35(%arg0: i32) -> (i32, i32) {
    %c0_i32 = arith.constant 0 : i32
    %c0_i32_0 = arith.constant 0 : i32
    %c0_i32_1 = arith.constant 0 : i32
    return %c0_i32, %c0_i32_0 : i32, i32
  }
  func.func @transform_36(%arg0: i32) -> (i32, i32) {
    %c0_i32 = arith.constant 0 : i32
    %c0_i32_0 = arith.constant 0 : i32
    %c0_i32_1 = arith.constant 0 : i32
    return %c0_i32, %c0_i32_0 : i32, i32
  }
  func.func @transform_37(%arg0: i32) -> (i32, i32) {
    %c0_i32 = arith.constant 0 : i32
    %c0_i32_0 = arith.constant 0 : i32
    %c0_i32_1 = arith.constant 0 : i32
    return %c0_i32, %c0_i32_0 : i32, i32
  }
  func.func @transform_38(%arg0: i32) -> (i32, i32) {
    %c0_i32 = arith.constant 0 : i32
    %c0_i32_0 = arith.constant 0 : i32
    %c0_i32_1 = arith.constant 0 : i32
    return %c0_i32, %c0_i32_0 : i32, i32
  }
  func.func @transform_39(%arg0: i32) -> (i32, i32) {
    %c0_i32 = arith.constant 0 : i32
    %c0_i32_0 = arith.constant 0 : i32
    %c0_i32_1 = arith.constant 0 : i32
    return %c0_i32, %c0_i32_0 : i32, i32
  }
}

</mosaic_0001>

<bundles_post_ra>
// kernel: forward.1
= control target key start
LH: loop header
LB: loop body
LE: loop exit
PB: predicated region body
PF: predicated region fallthrough
CT: control target
= control target key end

     0   :  { %s8455_s6 = smov 1   ;;  %s8456_s10 = smov 2   ;;  %s9597_s0 = inlined_call_operand.smem [shape: u32[40], index: -1, kind: input, shape index: {}] }
   0x1   :  { %s8514_s5 = sld [smem:[%s9597_s0]]   ;;  %s8457_s14 = smov 3  }
   0x2   :  { %s8519_s9 = sld [smem:[%s9597_s0 + %s8455_s6]]   ;;  %s8458_s18 = smov 4  }
   0x3   :  { %s8524_s13 = sld [smem:[%s9597_s0 + %s8456_s10]]   ;;  %s8459_s22 = smov 5  }
   0x4   :  { %s8529_s17 = sld [smem:[%s9597_s0 + %s8457_s14]]   ;;  %s8460_s26 = smov 6  }
   0x5   :  { %s8534_s21 = sld [smem:[%s9597_s0 + %s8458_s18]]   ;;  %s8461_s30 = smov 7  }
   0x6   :  { %s8539_s25 = sld [smem:[%s9597_s0 + %s8459_s22]]   ;;  %s8462_s4 = smov 8  }
   0x7   :  { %9623 = sst [smem:[#allocation4_spill]] %s8514_s5  ;;  %s8463_s10 = smov 9  }
   0x8   :  { %9624 = sst [smem:[#allocation5_spill]] %s8519_s9  ;;  %s8464_s15 = smov 10  }
   0x9   :  { %9625 = sst [smem:[#allocation6_spill]] %s8524_s13  ;;  %s8465_s20 = smov 11  }
   0xa   :  { %9626 = sst [smem:[#allocation7_spill]] %s8529_s17  ;;  %s8467_s1 = smov 13  }
   0xb   :  { %9627 = sst [smem:[#allocation8_spill]] %s8534_s21  ;;  %s8468_s7 = smov 14  }
   0xc   :  { %9628 = sst [smem:[#allocation9_spill]] %s8539_s25  ;;  %s8470_s22 = smov 16  }
   0xd   :  { %s8544_s29 = sld [smem:[%s9597_s0 + %s8460_s26]]   ;;  %s8466_s26 = smov 12  }
   0xe   :  { %s8549_s3 = sld [smem:[%s9597_s0 + %s8461_s30]]   ;;  %s8471_s28 = smov 17  }
   0xf   :  { %s8554_s8 = sld [smem:[%s9597_s0 + %s8462_s4]]  }
  0x10   :  { %s8559_s14 = sld [smem:[%s9597_s0 + %s8463_s10]]  }
  0x11   :  { %s8564_s19 = sld [smem:[%s9597_s0 + %s8464_s15]]   ;;  %s8469_s15 = smov 15  }
  0x12   :  { %s8569_s24 = sld [smem:[%s9597_s0 + %s8465_s20]]  }
  0x13   :  { %9629 = sst [smem:[#allocation10_spill]] %s8544_s29 }
  0x14   :  { %9630 = sst [smem:[#allocation11_spill]] %s8549_s3 }
  0x15   :  { %9631 = sst [smem:[#allocation12_spill]] %s8554_s8 }
  0x16   :  { %9632 = sst [smem:[#allocation13_spill]] %s8559_s14 }
  0x17   :  { %9633 = sst [smem:[#allocation14_spill]] %s8564_s19 }
  0x18   :  { %9634 = sst [smem:[#allocation15_spill]] %s8569_s24 }
  0x19   :  { %s8574_s30 = sld [smem:[%s9597_s0 + %s8466_s26]]  }
  0x1a   :  { %s8579_s6 = sld [smem:[%s9597_s0 + %s8467_s1]]  }
  0x1b   :  { %s8584_s12 = sld [smem:[%s9597_s0 + %s8468_s7]]   ;;  %s8472_s7 = smov 18  }
  0x1c   :  { %s8589_s20 = sld [smem:[%s9597_s0 + %s8469_s15]]   ;;  %s8473_s15 = smov 19  }
  0x1d   :  { %s8594_s27 = sld [smem:[%s9597_s0 + %s8470_s22]]   ;;  %s8474_s22 = smov 20  }
  0x1e   :  { %s8599_s4 = sld [smem:[%s9597_s0 + %s8471_s28]]   ;;  %s8475_s28 = smov 21  }
  0x1f   :  { %9635 = sst [smem:[#allocation16_spill]] %s8574_s30 }
  0x20   :  { %9636 = sst [smem:[#allocation17_spill]] %s8579_s6 }
  0x21   :  { %9637 = sst [smem:[#allocation18_spill]] %s8584_s12 }
  0x22   :  { %9638 = sst [smem:[#allocation19_spill]] %s8589_s20 }
  0x23   :  { %9639 = sst [smem:[#allocation20_spill]] %s8594_s27 }
  0x24   :  { %9640 = sst [smem:[#allocation21_spill]] %s8599_s4 }
  0x25   :  { %s8604_s14 = sld [smem:[%s9597_s0 + %s8472_s7]]   ;;  %s8476_s7 = smov 22  }
  0x26   :  { %s8609_s8 = sld [smem:[%s9597_s0 + %s8473_s15]]   ;;  %s8477_s15 = smov 23  }
  0x27   :  { %s8614_s29 = sld [smem:[%s9597_s0 + %s8474_s22]]   ;;  %s8478_s22 = smov 24  }
  0x28   :  { %s8619_s3 = sld [smem:[%s9597_s0 + %s8475_s28]]   ;;  %s8479_s28 = smov 25  }
  0x29   :  { %s8624_s25 = sld [smem:[%s9597_s0 + %s8476_s7]]   ;;  %s8480_s7 = smov 26  }
  0x2a   :  { %s8629_s27 = sld [smem:[%s9597_s0 + %s8477_s15]]   ;;  %s8481_s15 = smov 27  }
  0x2b   :  { %9641 = sst [smem:[#allocation22_spill]] %s8604_s14 }
  0x2c   :  { %9642 = sst [smem:[#allocation23_spill]] %s8609_s8 }
  0x2d   :  { %9643 = sst [smem:[#allocation24_spill]] %s8614_s29 }
  0x2e   :  { %9644 = sst [smem:[#allocation25_spill]] %s8619_s3 }
  0x2f   :  { %s8634_s6 = sld [smem:[%s9597_s0 + %s8478_s22]]   ;;  %s8482_s22 = smov 28  }
  0x30   :  { %s8639_s21 = sld [smem:[%s9597_s0 + %s8479_s28]]   ;;  %s8483_s28 = smov 29  }
  0x31   :  { %s8644_s24 = sld [smem:[%s9597_s0 + %s8480_s7]]   ;;  %s8484_s7 = smov 30  }
  0x32   :  { %s8649_s12 = sld [smem:[%s9597_s0 + %s8481_s15]]   ;;  %s8485_s15 = smov 31  }
  0x33   :  { %s8654_s20 = sld [smem:[%s9597_s0 + %s8482_s22]]   ;;  %s8486_s22 = smov 32  }
  0x34   :  { %s8659_s13 = sld [smem:[%s9597_s0 + %s8483_s28]]   ;;  %s8487_s28 = smov 33  }
  0x35   :  { %s8664_s17 = sld [smem:[%s9597_s0 + %s8484_s7]]   ;;  %s8488_s7 = smov 34  }
  0x36   :  { %s8669_s9 = sld [smem:[%s9597_s0 + %s8485_s15]]   ;;  %s8489_s15 = smov 35  }
  0x37   :  { %s8674_s30 = sld [smem:[%s9597_s0 + %s8486_s22]]   ;;  %s8490_s22 = smov 36  }
  0x38   :  { %s8679_s5 = sld [smem:[%s9597_s0 + %s8487_s28]]   ;;  %s8491_s28 = smov 37  }
  0x39   :  { %s8684_s19 = sld [smem:[%s9597_s0 + %s8488_s7]]   ;;  %s8492_s7 = smov 38  }
  0x3c   :  { %9645 = sst [smem:[#allocation26_spill]] %s8669_s9 }
  0x3d   :  { %9646 = sst [smem:[#allocation27_spill]] %s8674_s30 }
  0x3e   :  { %9647 = sst [smem:[#allocation28_spill]] %s8679_s5 }
  0x3f   :  { %9648 = sst [smem:[#allocation29_spill]] %s8684_s19 }
  0x40   :  { %s8689_s9 = sld [smem:[%s9597_s0 + %s8489_s15]]   ;;  %s8493_s15 = smov 39  }
  0x41   :  { %s8694_s30 = sld [smem:[%s9597_s0 + %s8490_s22]]   ;;  %s8711_s22 = smov 0  }
  0x42   :  { %s8699_s5 = sld [smem:[%s9597_s0 + %s8491_s28]]  }
  0x43   :  { %s8704_s19 = sld [smem:[%s9597_s0 + %s8492_s7]]  }
  0x46   :  { %9649 = sst [smem:[#allocation30_spill]] %s8689_s9 }
  0x47   :  { %9650 = sst [smem:[#allocation31_spill]] %s8694_s30 }
  0x48   :  { %9651 = sst [smem:[#allocation32_spill]] %s8699_s5 }
  0x49   :  { %9652 = sst [smem:[#allocation33_spill]] %s8704_s19 }
  0x4a   :  { %s8709_s9 = sld [smem:[%s9597_s0 + %s8493_s15]]  }
  0x50   :  { %9653 = sst [smem:[#allocation34_spill]] %s8709_s9 }
  0x51 LB: > { %9654 = sst [smem:[#allocation35_spill]] %s8453_s22  ;;  %s8717_s23 = sadd.s32 4294967295, %s8453_s22   ;;  %s8453_s22 = sphi %s8711_s22, %s89_s22  }
  0x52   : > { %9655 = sst [smem:[#allocation36_spill]] %s8717_s23  ;;  %p7134_p0 = scmp.ge.s32.totalorder %s8453_s22, 1 }
  0x53   : > { %p1219_p1 = scmp.lt.s32.totalorder %s8453_s22, 3 }
  0x55   : > { %p1220_p2 = pnand %p7134_p0, %p1219_p1 }
  0x57   : > { %1223 = sbr.rel (%p1220_p2) target bundleno = 5560 (0x15b8), region = 176 }
  0x5c   : > { %s9657_s4 = sld [smem:[#allocation21_spill]]  ;;  %p1372_p3 = scmp.lt.s32.totalorder %s8717_s23, 1 }
  0x5d   : > { %s9658_s8 = sld [smem:[#allocation23_spill]] }
  0x5e   : > { %s9660_s3 = sld [smem:[#allocation25_spill]] }
  0x5f   : > { %s8723_s0 = scalar_select %p1372_p3, %s8717_s23, 1 }
  0x60   : > { %s9662_s2 = sld [smem:[#allocation26_spill]] }
  0x61   : > { %s7498_s26 = sshll.u32 %s8723_s0, 5  ;;  %s7502_s9 = sshll.u32 %s8723_s0, 8 }
  0x62   : > { %s8729_s1 = scalar_lea.vmem %s9657_s4, %s7498_s26  ;;  %s8742_s19 = scalar_lea.vmem %s8629_s27, %s7498_s26 }
  0x63   : > { %9661 = sst [smem:[#allocation37_spill]] %s8729_s1  ;;  %s8732_s7 = scalar_lea.vmem %s9658_s8, %s7498_s26 }
  0x64   : > { %9663 = sst [smem:[#allocation38_spill]] %s8732_s7  ;;  %s8737_s16 = scalar_lea.vmem %s9660_s3, %s7498_s26 }
  0x65   : > { %9666 = sst [smem:[#allocation39_spill]] %s8737_s16  ;;  %s8748_s4 = scalar_lea.vmem %s8639_s21, %s7502_s9 }
  0x66   : > { %s7145_s30 = sshll.u32 %s8723_s0, 4  ;;  %s7503_s8 = sshll.u32 %s8723_s0, 10 }
  0x67   : > { %s8752_s5 = scalar_lea.vmem %s8644_s24, %s7145_s30  ;;  %s8756_s7 = scalar_lea.vmem %s8649_s12, %s7503_s8 }
  0x68   : > { %s1423_s29 = scalar_lea.vmem %s8659_s13, %s8723_s0  ;;  %s1426_s14 = scalar_lea.vmem %s8664_s17, %s8723_s0 }
  0x69   : > { %s1429_s3 = scalar_lea.vmem %s9662_s2, %s8723_s0  ;;  %s9668_s22 = sld [smem:[#allocation36_spill]] }
  0x6f   : > { %p7148_p4 = scmp.ne.s32.totalorder %s9668_s22, 0 }
  0x70   : > { %s9669_s26 = sld [smem:[#allocation14_spill]] (!%p7148_p4) }
  0x71   : > { %1443 = sbr.rel (%p7148_p4) target bundleno = 736 (0x2e0), region = 180  ;;  %s9670_s9 = sld [smem:[#allocation4_spill]] (!%p7148_p4) }
  0x72   : > { %s9671_s8 = sld [smem:[#allocation16_spill]] (!%p7148_p4) }
  0x73   : > { %s9672_s30 = sld [smem:[#allocation5_spill]] (!%p7148_p4) }
  0x74   : > { %s9673_s22 = sld [smem:[#allocation7_spill]] (!%p7148_p4) }
  0x75   : > { %s9675_s10 = sld [smem:[#allocation6_spill]] (!%p7148_p4) }
  0x76   : > { %v8179_v0 = vld [vmem:[%s9669_s26 + $0x78] sm:$0xff]   ;;  %v8494_v2 = vmov 0   ;;  %v8183_v5 = vld [vmem:[%s9669_s26 + $0x70] sm:$0xff]   ;;  %v8187_v9 = vld [vmem:[%s9669_s26 + $0x68] sm:$0xff]   ;;  %s9676_s15 = sld [smem:[#allocation19_spill]]  ;;  %vm2043_vm12 = vcmask 261120  }
  0x77   : > { %v8180_v1 = vld [vmem:[%s9669_s26 + $0xf8] sm:$0xff]   ;;  %8177 = vset.pattern.permute.xlu0 %v8494_v2  ;;  %8178 = vset.pattern.permute.xlu1 %v8494_v2  ;;  %v8184_v6 = vld [vmem:[%s9669_s26 + $0xf0] sm:$0xff]   ;;  %v8188_v10 = vld [vmem:[%s9669_s26 + $0xe8] sm:$0xff]   ;;  %s9677_s18 = sld [smem:[#allocation18_spill]]  ;;  %vm2688_vm13 = vcmask 523264  }
  0x78   : > { %7504 = vmatprep.subr.bf16.mxu0 %v8179_v0  ;;  %v8181_v3 = vld [vmem:[%s9669_s26 + $0x38] sm:$0xff]   ;;  %7526 = vmatprep.subr.bf16.mxu1 %v8180_v1  ;;  %v8185_v7 = vld [vmem:[%s9669_s26 + $0x30] sm:$0xff]   ;;  %v8189_v11 = vld [vmem:[%s9669_s26 + $0x28] sm:$0xff]   ;;  %s9679_s11 = sld [smem:[#allocation8_spill]] }
  0x79   : > { %v8182_v4 = vld [vmem:[%s9669_s26 + $0xb8] sm:$0xff]   ;;  %7505 = vmatpush3.bf16.msra.mxu0 %v8181_v3  ;;  %v8186_v8 = vld [vmem:[%s9669_s26 + $0xb0] sm:$0xff]   ;;  %v8190_v12 = vld [vmem:[%s9669_s26 + $0xa8] sm:$0xff]  }
  0x7a   : > { %7527 = vmatpush3.bf16.msra.mxu1 %v8182_v4  ;;  %7506 = vmatprep.subr.bf16.mxu0 %v8183_v5  ;;  %v8191_v13 = vld [vmem:[%s9669_s26 + $0x60] sm:$0xff]   ;;  %v8195_v17 = vld [vmem:[%s9669_s26 + $0x58] sm:$0xff]   ;;  %v8199_v21 = vld [vmem:[%s9669_s26 + $0x50] sm:$0xff]   ;;  %s9674_s2 = smov %s9673_s22 }
  0x7b   : > { %7528 = vmatprep.subr.bf16.mxu1 %v8184_v6  ;;  %v8192_v14 = vld [vmem:[%s9669_s26 + $0xe0] sm:$0xff]   ;;  %v8196_v18 = vld [vmem:[%s9669_s26 + $0xd8] sm:$0xff]   ;;  %v8200_v22 = vld [vmem:[%s9669_s26 + $0xd0] sm:$0xff]  }
  0x7c   : > { %v8193_v15 = vld [vmem:[%s9669_s26 + $0x20] sm:$0xff]   ;;  %v8197_v19 = vld [vmem:[%s9669_s26 + $0x18] sm:$0xff]   ;;  %v8201_v23 = vld [vmem:[%s9669_s26 + $0x10] sm:$0xff]  }
  0x7d   : > { %7507 = vmatpush3.bf16.msra.mxu0 %v8185_v7  ;;  %v8194_v16 = vld [vmem:[%s9669_s26 + $0xa0] sm:$0xff]   ;;  %v8198_v20 = vld [vmem:[%s9669_s26 + $0x98] sm:$0xff]   ;;  %v8202_v24 = vld [vmem:[%s9669_s26 + $0x90] sm:$0xff]  }
  0x7e   : > { %7529 = vmatpush3.bf16.msra.mxu1 %v8186_v8  ;;  %7508 = vmatprep.subr.bf16.mxu0 %v8187_v9  ;;  %v8203_v25 = vld [vmem:[%s9669_s26 + $0x48] sm:$0xff]   ;;  %v8207_v29 = vld [vmem:[%s9669_s26 + $0x40] sm:$0xff]   ;;  %v1451_v34 = vld [vmem:[%s9670_s9 + $0x38] sm:$0xff] }
  0x7f   : > { %7530 = vmatprep.subr.bf16.mxu1 %v8188_v10  ;;  %v8204_v26 = vld [vmem:[%s9669_s26 + $0xc8] sm:$0xff]   ;;  %v8208_v30 = vld [vmem:[%s9669_s26 + $0xc0] sm:$0xff]   ;;  %v1447_v35 = vld [vmem:[%s9670_s9 + $0x18] sm:$0xff] }
  0x80   : > { %v8205_v27 = vld [vmem:[%s9669_s26 + $0x8] sm:$0xff]   ;;  %v8209_v31 = vld [vmem:[%s9669_s26] sm:$0xff]   ;;  %v1450_v39 = vld [vmem:[%s9670_s9 + $0x30] sm:$0xff] }
  0x81   : > { %7509 = vmatpush3.bf16.msra.mxu0 %v8189_v11  ;;  %v8206_v28 = vld [vmem:[%s9669_s26 + $0x88] sm:$0xff]   ;;  %v8210_v32 = vld [vmem:[%s9669_s26 + $0x80] sm:$0xff]   ;;  %v1446_v42 = vld [vmem:[%s9670_s9 + $0x10] sm:$0xff] }
  0x82   : > { %7531 = vmatpush3.bf16.msra.mxu1 %v8190_v12  ;;  %7510 = vmatprep.subr.bf16.mxu0 %v8191_v13  ;;  %v1445_v33 = vld [vmem:[%s9670_s9 + $0x8] sm:$0xff]  ;;  %v1444_v38 = vld [vmem:[%s9670_s9] sm:$0xff]  ;;  %v8211_v45 = vld [vmem:[%s9669_s26 + $0x178] sm:$0xff]  }
  0x83   : > { %7532 = vmatprep.subr.bf16.mxu1 %v8192_v14  ;;  %v1457_v36 = vpack.c.bf16 %v1451_v34, %v1445_v33  ;;  %v1453_v37 = vld [vmem:[%s9670_s9 + $0x48] sm:$0xff]  ;;  %v1456_v41 = vpack.c.bf16 %v1450_v39, %v1444_v38  ;;  %v1452_v43 = vld [vmem:[%s9670_s9 + $0x40] sm:$0xff]  ;;  %v8212_v46 = vld [vmem:[%s9671_s8 + $0x78] sm:$0xff]  }
  0x84   : > { %v1459_v40 = vpack.c.bf16 %v1453_v37, %v1447_v35  ;;  %v1458_v44 = vpack.c.bf16 %v1452_v43, %v1446_v42  ;;  %v8213_v47 = vld [vmem:[%s9669_s26 + $0x138] sm:$0xff]   ;;  %v8215_v49 = vld [vmem:[%s9669_s26 + $0x170] sm:$0xff]   ;;  %v8219_v53 = vld [vmem:[%s9669_s26 + $0x168] sm:$0xff]  }
  0x85   : > { %7511 = vmatpush3.bf16.msra.mxu0 %v8193_v15  ;;  %1885 = vmatprep.mubr.bf16.mxu0 %v1457_v36  ;;  %v8214_v48 = vld [vmem:[%s9671_s8 + $0x38] sm:$0xff]   ;;  %v8216_v50 = vld [vmem:[%s9671_s8 + $0x70] sm:$0xff]   ;;  %v8220_v54 = vld [vmem:[%s9671_s8 + $0x68] sm:$0xff]  }
  0x86   : > { %7533 = vmatpush3.bf16.msra.mxu1 %v8194_v16  ;;  %7512 = vmatprep.subr.bf16.mxu0 %v8195_v17  ;;  %v8217_v51 = vld [vmem:[%s9669_s26 + $0x130] sm:$0xff]   ;;  %v8221_v55 = vld [vmem:[%s9669_s26 + $0x128] sm:$0xff]   ;;  %v8223_v57 = vld [vmem:[%s9669_s26 + $0x160] sm:$0xff]  }
  0x87   : > { %7534 = vmatprep.subr.bf16.mxu1 %v8196_v18  ;;  %1926 = vmatprep.mubr.bf16.mxu1 %v1459_v40  ;;  %v8218_v52 = vld [vmem:[%s9671_s8 + $0x30] sm:$0xff]   ;;  %v8222_v56 = vld [vmem:[%s9671_s8 + $0x28] sm:$0xff]   ;;  %v8224_v58 = vld [vmem:[%s9671_s8 + $0x60] sm:$0xff]  }
  0x88   : > { %v8225_v59 = vld [vmem:[%s9669_s26 + $0x120] sm:$0xff]   ;;  %v8227_v61 = vld [vmem:[%s9669_s26 + $0x158] sm:$0xff]   ;;  %v8231_v1 = vld [vmem:[%s9669_s26 + $0x150] sm:$0xff]  }
  0x89   : > { %7513 = vmatpush3.bf16.msra.mxu0 %v8197_v19  ;;  %v8226_v60 = vld [vmem:[%s9671_s8 + $0x20] sm:$0xff]   ;;  %v8228_v62 = vld [vmem:[%s9671_s8 + $0x58] sm:$0xff]   ;;  %v8232_v3 = vld [vmem:[%s9671_s8 + $0x50] sm:$0xff]  }
  0x8a   : > { %7535 = vmatpush3.bf16.msra.mxu1 %v8198_v20  ;;  %7514 = vmatprep.subr.bf16.mxu0 %v8199_v21  ;;  %v8229_v63 = vld [vmem:[%s9669_s26 + $0x118] sm:$0xff]   ;;  %v8233_v4 = vld [vmem:[%s9669_s26 + $0x110] sm:$0xff]   ;;  %v8235_v6 = vld [vmem:[%s9669_s26 + $0x148] sm:$0xff]  }
  0x8b   : > { %7536 = vmatprep.subr.bf16.mxu1 %v8200_v22  ;;  %v8230_v0 = vld [vmem:[%s9671_s8 + $0x18] sm:$0xff]   ;;  %v8234_v5 = vld [vmem:[%s9671_s8 + $0x10] sm:$0xff]   ;;  %v8236_v7 = vld [vmem:[%s9671_s8 + $0x48] sm:$0xff]  }
  0x8c   : > { %v8237_v8 = vld [vmem:[%s9669_s26 + $0x108] sm:$0xff]   ;;  %v8239_v10 = vld [vmem:[%s9669_s26 + $0x140] sm:$0xff]   ;;  %v1455_v15 = vld [vmem:[%s9670_s9 + $0x58] sm:$0xff] }
  0x8d   : > { %7515 = vmatpush3.bf16.msra.mxu0 %v8201_v23  ;;  %v8238_v9 = vld [vmem:[%s9671_s8 + $0x8] sm:$0xff]   ;;  %v8240_v11 = vld [vmem:[%s9671_s8 + $0x40] sm:$0xff]   ;;  %v2053_v17 = vld [vmem:[%s9672_s30 + $0x38] sm:$0xff] }
  0x8e   : > { %7537 = vmatpush3.bf16.msra.mxu1 %v8202_v24  ;;  %7516 = vmatprep.subr.bf16.mxu0 %v8203_v25  ;;  %v8241_v12 = vld [vmem:[%s9669_s26 + $0x100] sm:$0xff]   ;;  %v1449_v14 = vld [vmem:[%s9670_s9 + $0x28] sm:$0xff]  ;;  %v1454_v21 = vld [vmem:[%s9670_s9 + $0x50] sm:$0xff] }
  0x8f   : > { %7538 = vmatprep.subr.bf16.mxu1 %v8204_v26  ;;  %v8242_v13 = vld [vmem:[%s9671_s8] sm:$0xff]   ;;  %v2047_v16 = vld [vmem:[%s9672_s30 + $0x8] sm:$0xff]  ;;  %v1461_v18 = vpack.c.bf16 %v1455_v15, %v1449_v14  ;;  %v2052_v24 = vld [vmem:[%s9672_s30 + $0x30] sm:$0xff] }
  0x90   : > { %v2059_v19 = vpack.c.bf16 %v2053_v17, %v2047_v16  ;;  %v1448_v20 = vld [vmem:[%s9670_s9 + $0x20] sm:$0xff]  ;;  %v8243_v26 = vld [vmem:[%s9671_s8 + $0xf8] sm:$0xff]   ;;  %v8250_v33 = vld [vmem:[%s9671_s8 + $0x130] sm:$0xff]  }
  0x91   : > { %7517 = vmatpush3.bf16.msra.mxu0 %v8205_v27  ;;  %v2046_v22 = vld [vmem:[%s9672_s30] sm:$0xff]  ;;  %v1460_v23 = vpack.c.bf16 %v1454_v21, %v1448_v20  ;;  %v8244_v27 = vld [vmem:[%s9671_s8 + $0x178] sm:$0xff]   ;;  %v8251_v34 = vld [vmem:[%s9671_s8 + $0xe8] sm:$0xff]  }
  0x92   : > { %7539 = vmatpush3.bf16.msra.mxu1 %v8206_v28  ;;  %7518 = vmatprep.subr.bf16.mxu0 %v8207_v29  ;;  %v2058_v25 = vpack.c.bf16 %v2052_v24, %v2046_v22  ;;  %v8245_v28 = vld [vmem:[%s9671_s8 + $0xb8] sm:$0xff]   ;;  %v8252_v35 = vld [vmem:[%s9671_s8 + $0x168] sm:$0xff]   ;;  %v8255_v38 = vld [vmem:[%s9671_s8 + $0xe0] sm:$0xff]  }
  0x93   : > { %7540 = vmatprep.subr.bf16.mxu1 %v8208_v30  ;;  %v8246_v29 = vld [vmem:[%s9671_s8 + $0x138] sm:$0xff]   ;;  %v8247_v30 = vld [vmem:[%s9671_s8 + $0xf0] sm:$0xff]   ;;  %v8253_v36 = vld [vmem:[%s9671_s8 + $0xa8] sm:$0xff]  }
  0x94   : > { %v8254_v37 = vld [vmem:[%s9671_s8 + $0x128] sm:$0xff]   ;;  %v8256_v39 = vld [vmem:[%s9671_s8 + $0x160] sm:$0xff]   ;;  %v8259_v42 = vld [vmem:[%s9671_s8 + $0xd8] sm:$0xff]  }
  0x95   : > { %7519 = vmatpush3.bf16.msra.mxu0 %v8209_v31  ;;  %v8248_v31 = vld [vmem:[%s9671_s8 + $0x170] sm:$0xff]   ;;  %v8257_v40 = vld [vmem:[%s9671_s8 + $0xa0] sm:$0xff]   ;;  %v8260_v43 = vld [vmem:[%s9671_s8 + $0x158] sm:$0xff]  }
  0x96   : > { %7541 = vmatpush3.bf16.msra.mxu1 %v8210_v32  ;;  %7548 = vmatprep.subr.bf16.mxu0 %v8211_v45  ;;  %v8249_v32 = vld [vmem:[%s9671_s8 + $0xb0] sm:$0xff]   ;;  %v8262_v45 = vld [vmem:[%s9671_s8 + $0x118] sm:$0xff]   ;;  %v2596_v24 = vld [vmem:[%s9676_s15] sm:$0xff] }
  0x97   : > { %7570 = vmatprep.subr.bf16.mxu1 %v8212_v46  ;;  %v8263_v46 = vld [vmem:[%s9671_s8 + $0xd0] sm:$0xff]   ;;  %v2599_v21 = vld [vmem:[%s9676_s15 + $0x18] sm:$0xff] }
  0x98   : > { %1886 = vmatmul.mubr.bf16.vlgmr.msra.gmra.mxu0 %v1456_v41  ;;  %v8258_v41 = vld [vmem:[%s9671_s8 + $0x120] sm:$0xff]   ;;  %v2598_v22 = vld [vmem:[%s9676_s15 + $0x10] sm:$0xff] }
  0x99   : > { %1927 = vmatmul.mubr.bf16.vlgmr.msra.gmra.mxu1 %v1458_v44  ;;  %7549 = vmatpush3.bf16.msra.mxu0 %v8213_v47  ;;  %v8261_v44 = vld [vmem:[%s9671_s8 + $0x98] sm:$0xff]   ;;  %v8264_v47 = vld [vmem:[%s9671_s8 + $0x150] sm:$0xff]  }
  0x9a   : > { %7571 = vmatpush3.bf16.msra.mxu1 %v8214_v48  ;;  %7550 = vmatprep.subr.bf16.mxu0 %v8215_v49  ;;  %v8265_v48 = vld [vmem:[%s9671_s8 + $0x90] sm:$0xff]  }
  0x9b   : > { %7572 = vmatprep.subr.bf16.mxu1 %v8216_v50  ;;  %1967 = vmatprep.mubr.bf16.mxu0 %v1461_v18  ;;  %v8266_v49 = vld [vmem:[%s9671_s8 + $0x110] sm:$0xff]   ;;  %v8267_v50 = vld [vmem:[%s9671_s8 + $0xc8] sm:$0xff]  }
  0x9c   : > { %2487 = vmatprep.mubr.bf16.mxu1 %v2059_v19 }
  0x9d   : > { %7551 = vmatpush3.bf16.msra.mxu0 %v8217_v51  ;;  %v8268_v51 = vld [vmem:[%s9671_s8 + $0x148] sm:$0xff]  }
  0x9e   : > { %7573 = vmatpush3.bf16.msra.mxu1 %v8218_v52  ;;  %7552 = vmatprep.subr.bf16.mxu0 %v8219_v53  ;;  %v8269_v52 = vld [vmem:[%s9671_s8 + $0x88] sm:$0xff]  }
  0x9f   : > { %7574 = vmatprep.subr.bf16.mxu1 %v8220_v54  ;;  %v8270_v53 = vld [vmem:[%s9671_s8 + $0x108] sm:$0xff]   ;;  %v8271_v54 = vld [vmem:[%s9671_s8 + $0xc0] sm:$0xff]  }
  0xa1   : > { %7553 = vmatpush3.bf16.msra.mxu0 %v8221_v55  ;;  %v8272_v55 = vld [vmem:[%s9671_s8 + $0x140] sm:$0xff]  }
  0xa2   : > { %7575 = vmatpush3.bf16.msra.mxu1 %v8222_v56  ;;  %7554 = vmatprep.subr.bf16.mxu0 %v8223_v57  ;;  %v8273_v56 = vld [vmem:[%s9671_s8 + $0x80] sm:$0xff]  }
  0xa3   : > { %7576 = vmatprep.subr.bf16.mxu1 %v8224_v58  ;;  %v8274_v57 = vld [vmem:[%s9671_s8 + $0x100] sm:$0xff]   ;;  %v2049_v58 = vld [vmem:[%s9672_s30 + $0x18] sm:$0xff] }
  0xa5   : > { %7555 = vmatpush3.bf16.msra.mxu0 %v8225_v59  ;;  %v2055_v59 = vld [vmem:[%s9672_s30 + $0x48] sm:$0xff] }
  0xa6   : > { %7577 = vmatpush3.bf16.msra.mxu1 %v8226_v60  ;;  %7556 = vmatprep.subr.bf16.mxu0 %v8227_v61  ;;  %v2061_v60 = vpack.c.bf16 %v2055_v59, %v2049_v58  ;;  %v2051_v61 = vld [vmem:[%s9672_s30 + $0x28] sm:$0xff] }
  0xa7   : > { %7578 = vmatprep.subr.bf16.mxu1 %v8228_v62  ;;  %v2057_v62 = vld [vmem:[%s9672_s30 + $0x58] sm:$0xff] }
  0xa9   : > { %7557 = vmatpush3.bf16.msra.mxu0 %v8229_v63  ;;  %v2048_v63 = vld [vmem:[%s9672_s30 + $0x10] sm:$0xff] }
  0xaa   : > { %7579 = vmatpush3.bf16.msra.mxu1 %v8230_v0  ;;  %7558 = vmatprep.subr.bf16.mxu0 %v8231_v1  ;;  %v2063_v0 = vpack.c.bf16 %v2057_v62, %v2051_v61  ;;  %v2054_v1 = vld [vmem:[%s9672_s30 + $0x40] sm:$0xff] }
  0xab   : > { %7580 = vmatprep.subr.bf16.mxu1 %v8232_v3  ;;  %v2050_v3 = vld [vmem:[%s9672_s30 + $0x20] sm:$0xff] }
  0xad   : > { %7559 = vmatpush3.bf16.msra.mxu0 %v8233_v4  ;;  %v2056_v4 = vld [vmem:[%s9672_s30 + $0x50] sm:$0xff] }
  0xae   : > { %7581 = vmatpush3.bf16.msra.mxu1 %v8234_v5  ;;  %7560 = vmatprep.subr.bf16.mxu0 %v8235_v6  ;;  %v2060_v5 = vpack.c.bf16 %v2054_v1, %v2048_v63  ;;  %v2062_v6 = vpack.c.bf16 %v2056_v4, %v2050_v3 }
  0xaf   : > { %7582 = vmatprep.subr.bf16.mxu1 %v8236_v7  ;;  %v2578_v7 = vld [vmem:[%s9673_s22] sm:$0xff]  ;;  %s9678_s22 = sld [smem:[#allocation15_spill]] }
  0xb1   : > { %7561 = vmatpush3.bf16.msra.mxu0 %v8237_v8  ;;  %v2579_v8 = vld [vmem:[%s9674_s2 + $0x8] sm:$0xff] }
  0xb2   : > { %7583 = vmatpush3.bf16.msra.mxu1 %v8238_v9  ;;  %7562 = vmatprep.subr.bf16.mxu0 %v8239_v10  ;;  %v1980_v9 = vld [vmem:[%s9675_s10] sm:$0xff]  ;;  %v2580_v10 = vsub.s32 1, %v2578_v7 }
  0xb3   : > { %7584 = vmatprep.subr.bf16.mxu1 %v8240_v11  ;;  %v2581_v11 = vsub.s32 1, %v2579_v8  ;;  %vm1983_vm0 = vcmp.eq.s32.totalorder %v1980_v9, 1  ;;  %vm2005_vm3 = vcmp.eq.s32.totalorder %v1980_v9, 2  ;;  %vm2023_vm5 = vcmp.eq.s32.totalorder %v1980_v9, 3 }
  0xb4   : > { %v2582_v14 = vcvt.s32.f32 %v2580_v10  ;;  %v2007_v18 = vsel %vm2005_vm3, 1, %v8494_v2  ;;  %v2025_v20 = vsel %vm2023_vm5, 1, %v8494_v2 }
  0xb5   : > { %7563 = vmatpush3.bf16.msra.mxu0 %v8241_v12  ;;  %v1981_v12 = vld [vmem:[%s9675_s10 + $0x8] sm:$0xff]  ;;  %v2583_v16 = vcvt.s32.f32 %v2581_v11 }
  0xb6   : > { %7585 = vmatpush3.bf16.msra.mxu1 %v8242_v13  ;;  %7592 = vmatprep.subr.bf16.mxu0 %v8243_v26  ;;  %v1985_v13 = vsel %vm1983_vm0, 1, %v8494_v2  ;;  %vm1984_vm1 = vcmp.eq.s32.totalorder %v1981_v12, 1  ;;  %vm2006_vm2 = vcmp.eq.s32.totalorder %v1981_v12, 2  ;;  %vm2024_vm4 = vcmp.eq.s32.totalorder %v1981_v12, 3  ;;  %v1977_v11 = vld [vmem:[%s9679_s11 + $0x8] sm:$0xff] }
  0xb7   : > { %7614 = vmatprep.subr.bf16.mxu1 %v8244_v27  ;;  %1988 = vperm.xlu1 %8178, %v1985_v13   ;;  %v1986_v15 = vsel %vm1984_vm1, 1, %v8494_v2  ;;  %v2008_v17 = vsel %vm2006_vm2, 1, %v8494_v2  ;;  %v2026_v19 = vsel %vm2024_vm4, 1, %v8494_v2  ;;  %v1995_v27 = vlaneseq }
  0xb8   : > { %1968 = vmatmul.mubr.bf16.vlgmr.msra.gmra.mxu0 %v1460_v23  ;;  %2586 = vperm.xlu0 %8177, %v2582_v14   ;;  %v2597_v23 = vld [vmem:[%s9676_s15 + $0x8] sm:$0xff] }
  0xb9   : > { %2488 = vmatmul.mubr.bf16.vlgmr.msra.gmra.mxu1 %v2058_v25  ;;  %7593 = vmatpush3.bf16.msra.mxu0 %v8245_v28 }
  0xba   : > { %7615 = vmatpush3.bf16.msra.mxu1 %v8246_v29  ;;  %7594 = vmatprep.subr.bf16.mxu0 %v8247_v30  ;;  %v1996_v30 = vshrl.u32 %v1995_v27, 7 }
  0xbb   : > { %7616 = vmatprep.subr.bf16.mxu1 %v8248_v31  ;;  %2528 = vmatprep.mubr.bf16.mxu0 %v2061_v60 }
  0xbc   : > { %2569 = vmatprep.mubr.bf16.mxu1 %v2063_v0  ;;  %1991 = vperm.xlu1 %8178, %v1986_v15   ;;  %v1976_v0 = vld [vmem:[%s9679_s11] sm:$0xff] }
  0xbd   : > { %7595 = vmatpush3.bf16.msra.mxu0 %v8249_v32  ;;  %2591 = vperm.xlu0 %8177, %v2583_v16  }
  0xbe   : > { %7617 = vmatpush3.bf16.msra.mxu1 %v8250_v33  ;;  %7596 = vmatprep.subr.bf16.mxu0 %v8251_v34  ;;  %v1997_v33 = vsub.s32 1, %v1996_v30  ;;  %v2001_v34 = vsub.s32 0, %v1996_v30 }
  0xbf   : > { %7618 = vmatprep.subr.bf16.mxu1 %v8252_v35 }
  0xc0   : > { %2013 = vperm.xlu1 %8178, %v2008_v17  }
  0xc1   : > { %7597 = vmatpush3.bf16.msra.mxu0 %v8253_v36  ;;  %2010 = vperm.xlu0 %8177, %v2007_v18  }
  0xc2   : > { %7619 = vmatpush3.bf16.msra.mxu1 %v8254_v37  ;;  %7598 = vmatprep.subr.bf16.mxu0 %v8255_v38  ;;  %v1982_v37 = vld [vmem:[%s9677_s18] sm:$0xf]  ;;  %s9680_s18 = sld [smem:[#allocation17_spill]] }
  0xc3   : > { %7620 = vmatprep.subr.bf16.mxu1 %v8256_v39 }
  0xc4   : > { %2031 = vperm.xlu1 %8178, %v2026_v19  }
  0xc5   : > { %7599 = vmatpush3.bf16.msra.mxu0 %v8257_v40  ;;  %2028 = vperm.xlu0 %8177, %v2025_v20  }
  0xc6   : > { %7621 = vmatpush3.bf16.msra.mxu1 %v8258_v41  ;;  %7600 = vmatprep.subr.bf16.mxu0 %v8259_v42  ;;  %v2019_v41 = vsub.s32 2, %v1996_v30  ;;  %v7149_v42 = vld [vmem:[%s9678_s22] ss:$0 sm:$0xff]  ;;  %s9681_s22 = sld [smem:[#allocation20_spill]] }
  0xc7   : > { %7622 = vmatprep.subr.bf16.mxu1 %v8260_v43  ;;  %v1998_v43 = vrot.slane %v1982_v37, %v1997_v33 }
  0xc9   : > { %7601 = vmatpush3.bf16.msra.mxu0 %v8261_v44  ;;  %v2002_v44 = vrot.slane %v1982_v37, %v2001_v34 }
  0xca   : > { %7623 = vmatpush3.bf16.msra.mxu1 %v8262_v45  ;;  %7602 = vmatprep.subr.bf16.mxu0 %v8263_v46 }
  0xcb   : > { %7624 = vmatprep.subr.bf16.mxu1 %v8264_v47  ;;  %v2037_v47 = vsub.s32 3, %v1996_v30 }
  0xcd   : > { %7603 = vmatpush3.bf16.msra.mxu0 %v8265_v48  ;;  %v2038_v58 = vrot.slane %v1982_v37, %v2037_v47 }
  0xce   : > { %7625 = vmatpush3.bf16.msra.mxu1 %v8266_v49  ;;  %7604 = vmatprep.subr.bf16.mxu0 %v8267_v50 }
  0xcf   : > { %7626 = vmatprep.subr.bf16.mxu1 %v8268_v51  ;;  %v2020_v51 = vrot.slane %v1982_v37, %v2019_v41 }
  0xd1   : > { %7605 = vmatpush3.bf16.msra.mxu0 %v8269_v52 }
  0xd2   : > { %7627 = vmatpush3.bf16.msra.mxu1 %v8270_v53  ;;  %7606 = vmatprep.subr.bf16.mxu0 %v8271_v54 }
  0xd3   : > { %7628 = vmatprep.subr.bf16.mxu1 %v8272_v55 }
  0xd5   : > { %7607 = vmatpush3.bf16.msra.mxu0 %v8273_v56 }
  0xd6   : > { %7629 = vmatpush3.bf16.msra.mxu1 %v8274_v57  ;;  %7911 = vmatprep.subr.mxu0 %v2599_v21 }
  0xd8   : > { %2529 = vmatmul.mubr.bf16.vlgmr.msra.gmra.mxu0 %v2060_v5 }
  0xd9   : > { %2570 = vmatmul.mubr.bf16.vlgmr.msra.gmra.mxu1 %v2062_v6  ;;  %7912 = vmatpush3.msra.mxu0 %v2599_v21 }
  0xda   : > { %7913 = vmatprep.subr.mxu0 %v2598_v22 }
  0xdb   : > { %7914 = vmatpush3.msra.mxu0 %v2598_v22  ;;  %v7198_v22 = vld [vmem:[%s9680_s18] ss:$0 sm:$0xff]  ;;  %s8495_s18 = smov 64  }
  0xdc   : > { %7915 = vmatprep.subr.mxu0 %v2597_v23 }
  0xdd   : > { %7916 = vmatpush3.msra.mxu0 %v2597_v23 }
  0xde   : > { %7917 = vmatprep.subr.mxu0 %v2596_v24 }
  0xdf   : > { %7918 = vmatpush3.msra.mxu0 %v2596_v24 }
 0x132   : > { %v1989_v2 = vpop.permute.xlu1 %1988 }
 0x133   : > { %v8909_v25 = vpop.permute.xlu0 %2586  ;;  %vm1993_vm6 = vcmp.eq.s32.totalorder %v1989_v2, 1 }
 0x134   : > { %v2003_v52 = vsel %vm1993_vm6, %v1998_v43, %v2002_v44 }
 0x137   : > { %v1992_v35 = vpop.permute.xlu1 %1991 }
 0x138   : > { %v8911_v29 = vpop.permute.xlu0 %2591  ;;  %vm1994_vm8 = vcmp.eq.s32.totalorder %v1992_v35, 1 }
 0x139   : > { %v2004_v63 = vsel %vm1994_vm8, %v1998_v43, %v2002_v44 }
 0x13b   : > { %v2014_v48 = vpop.permute.xlu1 %2013 }
 0x13c   : > { %v2011_v38 = vpop.permute.xlu0 %2010  ;;  %vm2016_vm10 = vcmp.eq.s32.totalorder %v2014_v48, 1 }
 0x13d   : > { %vm2015_vm7 = vcmp.eq.s32.totalorder %v2011_v38, 1  ;;  %v2022_v9 = vsel %vm2016_vm10, %v2020_v51, %v2004_v63 }
 0x13e   : > { %v2021_v60 = vsel %vm2015_vm7, %v2020_v51, %v2003_v52 }
 0x13f   : > { %v2032_v3 = vpop.permute.xlu1 %2031 }
 0x140   : > { %v2029_v54 = vpop.permute.xlu0 %2028  ;;  %vm2034_vm11 = vcmp.eq.s32.totalorder %v2032_v3, 1 }
 0x141   : > { %vm2033_vm9 = vcmp.eq.s32.totalorder %v2029_v54, 1  ;;  %v2040_v14 = vsel %vm2034_vm11, %v2038_v58, %v2022_v9 }
 0x142   : > { %v2039_v6 = vsel %vm2033_vm9, %v2038_v58, %v2021_v60 }
 0x158   : > { %v7520_v26 = vpop.f32.mrf.mxu0 }
 0x159   : > { %v7542_v31 = vpop.f32.mrf.mxu1 }
 0x15a   : > { %v7521_v28 = vpop.f32.mrf.mxu0 }
 0x15b   : > { %v7543_v36 = vpop.f32.mrf.mxu1  ;;  %v7522_v39 = vadd.f32 %v7521_v28, %v7520_v26 }
 0x15c   : > { %v7523_v32 = vpop.f32.mrf.mxu0  ;;  %v7544_v50 = vadd.f32 %v7543_v36, %v7542_v31 }
 0x15d   : > { %v7545_v45 = vpop.f32.mrf.mxu1  ;;  %v1888_v49 = vadd.f32 %v7522_v39, %v7149_v42 }
 0x15e   : > { %v7524_v40 = vpop.f32.mrf.mxu0 }
 0x15f   : > { %v7525_v46 = vadd.f32 %v7524_v40, %v7523_v32  ;;  %v7546_v55 = vpop.f32.mrf.mxu1  ;;  %v1929_v59 = vadd.f32 %v7544_v50, %v1888_v49 }
 0x160   : > { %v7547_v62 = vadd.f32 %v7546_v55, %v7545_v45  ;;  %v7247_v45 = vld [vmem:[%s9681_s22] ss:$0 sm:$0xff] }
 0x161   : > { %v1891_v56 = vadd.f32 %v7525_v46, %v7149_v42 }
 0x163   : > { %v1932_v5 = vadd.f32 %v7547_v62, %v1891_v56 }
 0x178   : > { %v7564_v53 = vpop.f32.mrf.mxu0 }
 0x179   : > { %v7586_v17 = vpop.f32.mrf.mxu1 }
 0x17a   : > { %v7565_v57 = vpop.f32.mrf.mxu0 }
 0x17b   : > { %v7566_v61 = vadd.f32 %v7565_v57, %v7564_v53  ;;  %v7587_v18 = vpop.f32.mrf.mxu1 }
 0x17c   : > { %v7567_v1 = vpop.f32.mrf.mxu0  ;;  %v7588_v21 = vadd.f32 %v7587_v18, %v7586_v17 }
 0x17d   : > { %v1970_v4 = vadd.f32 %v7566_v61, %v1929_v59  ;;  %v7589_v19 = vpop.f32.mrf.mxu1 }
 0x17e   : > { %v7568_v7 = vpop.f32.mrf.mxu0  ;;  %v2490_v2 = vadd.f32 %v7588_v21, %v7198_v22 }
 0x17f   : > { %v1978_v8 = vadd.f32 %v1976_v0, %v1970_v4  ;;  %v7569_v10 = vadd.f32 %v7568_v7, %v7567_v1  ;;  %v7590_v20 = vpop.f32.mrf.mxu1 }
 0x180   : > { %v7591_v28 = vadd.f32 %v7590_v20, %v7589_v19 }
 0x181   : > { %v2041_v12 = vadd.f32 %v2039_v6, %v1978_v8  ;;  %v1973_v13 = vadd.f32 %v7569_v10, %v1932_v5 }
 0x182   : > { %v2493_v37 = vadd.f32 %v7591_v28, %v7198_v22 }
 0x183   : > { %v1979_v15 = vadd.f32 %v1977_v11, %v1973_v13  ;;  %2044 = vst.msk [vmem:[#allocation2] sm:$0xff] %vm2043_vm12, %v2041_v12 }
 0x185   : > { %v2042_v16 = vadd.f32 %v2040_v14, %v1979_v15 }
 0x187   : > { %2045 = vst.msk [vmem:[#allocation2 + $0x8] sm:$0xff] %vm2043_vm12, %v2042_v16 }
 0x198   : > { %v7608_v23 = vpop.f32.mrf.mxu0 }
 0x199   : > { %v7630_v24 = vpop.f32.mrf.mxu1 }
 0x19a   : > { %v7609_v26 = vpop.f32.mrf.mxu0 }
 0x19b   : > { %v7631_v27 = vpop.f32.mrf.mxu1  ;;  %v7610_v30 = vadd.f32 %v7609_v26, %v7608_v23 }
 0x19c   : > { %v7611_v31 = vpop.f32.mrf.mxu0  ;;  %v7632_v34 = vadd.f32 %v7631_v27, %v7630_v24 }
 0x19d   : > { %v7633_v32 = vpop.f32.mrf.mxu1  ;;  %v2531_v33 = vadd.f32 %v7610_v30, %v2490_v2 }
 0x19e   : > { %v7612_v35 = vpop.f32.mrf.mxu0 }
 0x19f   : > { %v7634_v36 = vpop.f32.mrf.mxu1  ;;  %v2572_v38 = vadd.f32 %v7632_v34, %v2531_v33  ;;  %v7613_v39 = vadd.f32 %v7612_v35, %v7611_v31 }
 0x1a0   : > { %v7635_v42 = vadd.f32 %v7634_v36, %v7633_v32 }
 0x1a1   : > { %v2594_v40 = vmul.f32 %v8909_v25, %v2572_v38  ;;  %v2534_v41 = vadd.f32 %v7613_v39, %v2493_v37 }
 0x1a3   : > { %v2575_v43 = vadd.f32 %v7635_v42, %v2534_v41  ;;  %7919 = vmatprep.mubr.msk.f32.mxu0 %vm2043_vm12, %v2594_v40 }
 0x1a5   : > { %v2595_v44 = vmul.f32 %v8911_v29, %v2575_v43 }
 0x1a7   : > { %7920 = vmatmul.mubr.msk.f32.vlgmr.msra.gmra.mxu0 %vm2043_vm12, %v2595_v44 }
 0x267   : > { %v7921_v46 = vpop.f32.mrf.mxu0 }
 0x268   : > { %v2685_v47 = vadd.f32 %v7921_v46, %v7247_v45 }
 0x269   : > { %v2679_v48 = vpop.f32.mrf.mxu0 }
 0x26a   : > { %2690 = vst.msk [vmem:[#allocation3 + $0x8] sm:$0xff] %vm2688_vm13, %v2685_v47  ;;  %v2680_v49 = vadd.f32 %v7247_v45, %v2679_v48  ;;  %2695 = vrot.lane.b32.xlu1 %v2685_v47, %s8495_s18 }
 0x26c   : > { %2689 = vst.msk [vmem:[#allocation3] sm:$0xff] %vm2688_vm13, %v2680_v49  ;;  %2693 = vrot.lane.b32.xlu0 %v2680_v49, %s8495_s18 }
 0x2dc   : > { %v2696_v25 = vpop.permute.xlu1 %2695 }
 0x2dd   : > { %2701 = vst.msk [vmem:[#allocation3 + $0x18] sm:$0xff] %vm2688_vm13, %v2696_v25 }
 0x2de   : > { %v2694_v50 = vpop.permute.xlu0 %2693 }
 0x2df   : > { %2700 = vst.msk [vmem:[#allocation3 + $0x10] sm:$0xff] %vm2688_vm13, %v2694_v50 }
 0x2e0 PF: > { %v8925_v51 = vld [vmem:[#allocation2] sm:$0xff]  ;;  %vm2723_vm14 = vcmask 261120   ;;  %v8927_v29 = vld [vmem:[#allocation2 + $0x8] sm:$0xff]  ;;  %s9682_s22 = sld [smem:[#allocation37_spill]]  ;;  %s9621_s23 = smov 32   ;;  %v8497_v26 = vmov 0.0  }
 0x2e1   : > { %v2724_v52 = vsel %vm2723_vm14, %v8925_v51, 0.0  ;;  %v2727_v53 = vsel %vm2723_vm14, %v8927_v29, 0.0  ;;  %s9683_s18 = sld [smem:[#allocation9_spill]]  ;;  %v7250_v16 = vld [vmem:[%s1423_s29] ss:$0 sm:$0xff]  ;;  %7933 = vmatprep.subr.mxu1 %v8497_v26  ;;  %vm8499_vm15 = vmmov 0  }
 0x2e2   : > { %2725 = vadd.xlane.f32.xlu0 %v2724_v52  ;;  %v7251_v18 = vld [vmem:[%s1426_s14] ss:$0 sm:$0xff]  ;;  %s9619_s14 = smov 96   ;;  %7941 = vmatprep.mubr.msk.f32.mxu1 %vm8499_vm15, %v8497_v26  ;;  %s9687_s1 = sld [smem:[#allocation10_spill]] }
 0x2e3   : > { %s9691_s28 = sld [smem:[#allocation39_spill]] }
 0x2e6   : > { %2728 = vadd.xlane.f32.xlu0 %v2727_v53  ;;  %v2770_v0 = vld [vmem:[%s9682_s22 + $0x18] sm:$0xff]  ;;  %v2769_v1 = vld [vmem:[%s9682_s22 + $0x10] sm:$0xff]  ;;  %v2768_v3 = vld [vmem:[%s9682_s22 + $0x8] sm:$0xff] }
 0x2e7   : > { %7922 = vmatprep.subr.mxu0 %v2770_v0  ;;  %v2767_v4 = vld [vmem:[%s9682_s22] sm:$0xff]  ;;  %v2706_v5 = vld [vmem:[%s9683_s18 + $0x10] sm:$0xff]  ;;  %v2707_v6 = vld [vmem:[%s9683_s18 + $0x18] sm:$0xff]  ;;  %s9684_s22 = sld [smem:[#allocation22_spill]] }
 0x2e8   : > { %7923 = vmatpush3.msra.mxu0 %v2770_v0  ;;  %v2705_v7 = vld [vmem:[%s9683_s18 + $0x8] sm:$0xff]  ;;  %v2704_v8 = vld [vmem:[%s9683_s18] sm:$0xff] }
 0x2e9   : > { %7924 = vmatprep.subr.mxu0 %v2769_v1 }
 0x2ea   : > { %7925 = vmatpush3.msra.mxu0 %v2769_v1  ;;  %v2711_v1 = vld [vmem:[%s9687_s1 + $0x18] sm:$0xff] }
 0x2eb   : > { %7926 = vmatprep.subr.mxu0 %v2768_v3 }
 0x2ec   : > { %7927 = vmatpush3.msra.mxu0 %v2768_v3 }
 0x2ed   : > { %7928 = vmatprep.subr.mxu0 %v2767_v4  ;;  %s9685_s29 = scalar_lea.vmem %s9684_s22, %s8723_s0  ;;  %s8500_s22 = smov 64  }
 0x2ee   : > { %7929 = vmatpush3.msra.mxu0 %v2767_v4  ;;  %v7252_v30 = vld [vmem:[%s9685_s29] ss:$0 sm:$0xff]  ;;  %s9686_s29 = sld [smem:[#allocation11_spill]] }
 0x2ef   : > { %7944 = vmatprep.subr.mxu0 %v8497_v26 }
 0x2f4   : > { %v2712_v53 = vld [vmem:[%s9686_s29] sm:$0xff]  ;;  %s9689_s29 = sld [smem:[#allocation24_spill]] }
 0x2fc   : > { %2869 = vrot.lane.b32.xlu0 %v2707_v6, %s9621_s23 }
 0x36b   : > { %v2726_v54 = vpop.xlane.xlu0 %2725 }
 0x36c   : > { %v2731_v55 = vmul.f32 0.03125, %v2726_v54 }
 0x36e   : > { %v2733_v56 = vsub.f32 %v8925_v51, %v2731_v55 }
 0x36f   : > { %v2729_v57 = vpop.xlane.xlu0 %2728 }
 0x370   : > { %v2732_v58 = vmul.f32 0.03125, %v2729_v57  ;;  %v2735_v59 = vmul.f32 %v2733_v56, %v2733_v56 }
 0x372   : > { %v2734_v60 = vsub.f32 %v8927_v29, %v2732_v58  ;;  %v2737_v61 = vsel %vm2723_vm14, %v2735_v59, 0.0 }
 0x373   : > { %2738 = vadd.xlane.f32.xlu1 %v2737_v61  ;;  %v2870_v33 = vpop.permute.xlu0 %2869 }
 0x374   : > { %v2736_v62 = vmul.f32 %v2734_v60, %v2734_v60 }
 0x376   : > { %v2740_v63 = vsel %vm2723_vm14, %v2736_v62, 0.0 }
 0x377   : > { %2741 = vadd.xlane.f32.xlu1 %v2740_v63 }
 0x388   : > { %2867 = vrot.lane.b32.xlu1 %v2706_v5, %s9621_s23 }
 0x38c   : > { %2865 = vrot.lane.b32.xlu1 %v2705_v7, %s9621_s23 }
 0x390   : > { %2863 = vrot.lane.b32.xlu1 %v2704_v8, %s9621_s23 }
 0x3fc   : > { %v2739_v9 = vpop.xlane.xlu1 %2738 }
 0x3fd   : > { %v2743_v10 = vmul.f32 0.03125, %v2739_v9  ;;  %v2708_v9 = vld [vmem:[%s9687_s1] sm:$0xff] }
 0x3ff   : > { %v2745_v11 = vadd.f32 1e-05, %v2743_v10 }
 0x400   : > { %v2742_v12 = vpop.xlane.xlu1 %2741 }
 0x401   : > { %8403 = vrsqrt.f32 %v2745_v11  ;;  %v2744_v13 = vmul.f32 0.03125, %v2742_v12 }
 0x403   : > { %v2746_v14 = vadd.f32 1e-05, %v2744_v13 }
 0x404   : > { %v2868_v27 = vpop.permute.xlu1 %2867 }
 0x405   : > { %8405 = vrsqrt.f32 %v2746_v14 }
 0x408   : > { %v2866_v28 = vpop.permute.xlu1 %2865 }
 0x40c   : > { %v2864_v36 = vpop.permute.xlu1 %2863 }
 0x40e   : > { %v8404_v15 = vpop.eup %8403 }
 0x40f   : > { %v2749_v17 = vmul.f32 %v8404_v15, %v2733_v56 }
 0x411   : > { %v2757_v19 = vmul.f32 %v7250_v16, %v2749_v17 }
 0x412   : > { %v8406_v20 = vpop.eup %8405 }
 0x413   : > { %v2750_v21 = vmul.f32 %v8406_v20, %v2734_v60  ;;  %v2765_v22 = vadd.f32 %v7251_v18, %v2757_v19 }
 0x415   : > { %v2758_v23 = vmul.f32 %v7250_v16, %v2750_v21  ;;  %7930 = vmatprep.mubr.msk.f32.mxu0 %vm2723_vm14, %v2765_v22 }
 0x417   : > { %v2766_v24 = vadd.f32 %v7251_v18, %v2758_v23 }
 0x419   : > { %7931 = vmatmul.mubr.msk.f32.vlgmr.msra.gmra.mxu0 %vm2723_vm14, %v2766_v24 }
 0x41a   : > { %7952 = vmatprep.mubr.msk.f32.mxu0 %vm8499_vm15, %v8497_v26  ;;  %7945 = vmatpush3.msra.mxu0 %v2711_v1 }
 0x41b   : > { %7946 = vmatprep.subr.mxu0 %v8497_v26 }
 0x4d9   : > { %v7932_v2 = vpop.f32.mrf.mxu0 }
 0x4da   : > { %v8972_v37 = vadd.f32 %v7932_v2, %v7252_v30 }
 0x4db   : > { %v2850_v31 = vpop.f32.mrf.mxu0 }
 0x4dc   : > { %v8962_v32 = vadd.f32 %v7252_v30, %v2850_v31  ;;  %v3163_v40 = vmul.f32 %v2870_v33, %v8972_v37  ;;  %v3162_v41 = vmul.f32 %v2868_v27, %v8972_v37  ;;  %v3160_v42 = vmul.f32 %v2864_v36, %v8972_v37 }
 0x4dd   : > { %v3161_v43 = vmul.f32 %v2866_v28, %v8972_v37 }
 0x4de   : > { %v2878_v34 = vmul.f32 %v2870_v33, %v8962_v32  ;;  %v2877_v35 = vmul.f32 %v2868_v27, %v8962_v32  ;;  %v2875_v38 = vmul.f32 %v2864_v36, %v8962_v32  ;;  %v2876_v39 = vmul.f32 %v2866_v28, %v8962_v32 }
 0x4e0   : > { %2903 = vrot.lane.b32.xlu1 %v2877_v35, %s9619_s14  ;;  %2905 = vrot.lane.b32.xlu0 %v2878_v34, %s9619_s14 }
 0x4e4   : > { %2899 = vrot.lane.b32.xlu1 %v2875_v38, %s9619_s14  ;;  %2901 = vrot.lane.b32.xlu0 %v2876_v39, %s9619_s14 }
 0x4e8   : > { %3176 = vrot.lane.b32.xlu1 %v3162_v41, %s9619_s14  ;;  %3178 = vrot.lane.b32.xlu0 %v3163_v40, %s9619_s14 }
 0x4ec   : > { %3172 = vrot.lane.b32.xlu1 %v3160_v42, %s9619_s14  ;;  %3174 = vrot.lane.b32.xlu0 %v3161_v43, %s9619_s14 }
 0x4f0   : > { %2885 = vrot.lane.b32.xlu1 %v2707_v6, %s8500_s22  ;;  %v2709_v6 = vld [vmem:[%s9687_s1 + $0x8] sm:$0xff] }
 0x4f4   : > { %2883 = vrot.lane.b32.xlu1 %v2706_v5, %s8500_s22  ;;  %v2710_v5 = vld [vmem:[%s9687_s1 + $0x10] sm:$0xff] }
 0x4f5   : > { %7947 = vmatpush3.msra.mxu0 %v2710_v5 }
 0x4f6   : > { %7948 = vmatprep.subr.mxu0 %v8497_v26 }
 0x4f7   : > { %7949 = vmatpush3.msra.mxu0 %v2709_v6 }
 0x4f8   : > { %2881 = vrot.lane.b32.xlu1 %v2705_v7, %s8500_s22  ;;  %7950 = vmatprep.subr.mxu0 %v8497_v26 }
 0x4f9   : > { %7951 = vmatpush3.msra.mxu0 %v2708_v9 }
 0x4fa   : > { %7955 = vmatprep.subr.mxu0 %v8497_v26 }
 0x4fc   : > { %2879 = vrot.lane.b32.xlu1 %v2704_v8, %s8500_s22 }
 0x552   : > { %v2906_v44 = vpop.permute.xlu0 %2905  ;;  %v2904_v45 = vpop.permute.xlu1 %2903 }
 0x553   : > { %7934 = vmatpush3.xpose.msk.msra.mxu1 %vm2723_vm14, %v2906_v44 }
 0x554   : > { %7935 = vmatprep.subr.mxu1 %v8497_v26 }
 0x556   : > { %v2902_v46 = vpop.permute.xlu0 %2901  ;;  %v2900_v47 = vpop.permute.xlu1 %2899 }
 0x557   : > { %7936 = vmatpush3.xpose.msk.msra.mxu1 %vm2723_vm14, %v2904_v45 }
 0x558   : > { %7937 = vmatprep.subr.mxu1 %v8497_v26 }
 0x55a   : > { %v3179_v48 = vpop.permute.xlu0 %3178  ;;  %v3177_v49 = vpop.permute.xlu1 %3176 }
 0x55b   : > { %7938 = vmatpush3.xpose.msk.msra.mxu1 %vm2723_vm14, %v2902_v46 }
 0x55c   : > { %7939 = vmatprep.subr.mxu1 %v8497_v26 }
 0x55e   : > { %v3175_v25 = vpop.permute.xlu0 %3174  ;;  %v3173_v50 = vpop.permute.xlu1 %3172 }
 0x55f   : > { %7940 = vmatpush3.xpose.msk.msra.mxu1 %vm2723_vm14, %v2900_v47 }
 0x560   : > { %7966 = vmatprep.subr.mxu1 %v8497_v26 }
 0x562   : > { %7942 = vmatmul.mubr.msk.f32.vlgmr.msra.gmra.mxu1 %vm2723_vm14, %v8962_v32  ;;  %v2886_v58 = vpop.permute.xlu1 %2885 }
 0x563   : > { %7967 = vmatpush3.xpose.msk.msra.mxu1 %vm2723_vm14, %v3179_v48  ;;  %7974 = vmatprep.mubr.msk.f32.mxu1 %vm8499_vm15, %v8497_v26  ;;  %v2894_v4 = vmul.f32 %v2886_v58, %v8962_v32  ;;  %v3167_v12 = vmul.f32 %v2886_v58, %v8972_v37 }
 0x564   : > { %7968 = vmatprep.subr.mxu1 %v8497_v26 }
 0x566   : > { %v2884_v62 = vpop.permute.xlu1 %2883 }
 0x567   : > { %7969 = vmatpush3.xpose.msk.msra.mxu1 %vm2723_vm14, %v3177_v49  ;;  %v2893_v7 = vmul.f32 %v2884_v62, %v8962_v32  ;;  %v3166_v14 = vmul.f32 %v2884_v62, %v8972_v37 }
 0x568   : > { %7970 = vmatprep.subr.mxu1 %v8497_v26 }
 0x56a   : > { %v2882_v3 = vpop.permute.xlu1 %2881 }
 0x56b   : > { %7971 = vmatpush3.xpose.msk.msra.mxu1 %vm2723_vm14, %v3175_v25  ;;  %v2892_v11 = vmul.f32 %v2882_v3, %v8962_v32  ;;  %v3165_v15 = vmul.f32 %v2882_v3, %v8972_v37 }
 0x56c   : > { %7972 = vmatprep.subr.mxu1 %v8497_v26 }
 0x56e   : > { %v2880_v8 = vpop.permute.xlu1 %2879 }
 0x56f   : > { %7973 = vmatpush3.xpose.msk.msra.mxu1 %vm2723_vm14, %v3173_v50  ;;  %v2891_v10 = vmul.f32 %v2880_v8, %v8962_v32  ;;  %v3164_v13 = vmul.f32 %v2880_v8, %v8972_v37 }
 0x572   : > { %7975 = vmatmul.mubr.msk.f32.vlgmr.msra.gmra.mxu1 %vm2723_vm14, %v8972_v37 }
 0x622   : > { %v2984_v52 = vpop.f32.mrf.mxu1 }
 0x623   : > { %v2988_v54 = vmul.f32 0.35355338, %v2984_v52 }
 0x624   : > { %v7943_v55 = vpop.f32.mrf.mxu1 }
 0x625   : > { %v2989_v56 = vadd.f32 %v2988_v54, %v2712_v53 }
 0x627   : > { %v2990_v57 = vsel %vm2723_vm14, %v2989_v56, -inf }
 0x628   : > { %2991 = vmax.xlane.f32.xlu0 %v2990_v57 }
 0x632   : > { %v3257_v59 = vpop.f32.mrf.mxu1 }
 0x633   : > { %v3261_v60 = vmul.f32 0.35355338, %v3257_v59 }
 0x634   : > { %v7976_v61 = vpop.f32.mrf.mxu1 }
 0x635   : > { %v3262_v63 = vadd.f32 %v3261_v60, %v2712_v53 }
 0x637   : > { %v3263_v0 = vsel %vm2723_vm14, %v3262_v63, -inf }
 0x638   : > { %3264 = vmax.xlane.f32.xlu1 %v3263_v0 }
 0x63e   : > { %3081 = vrot.lane.b32.xlu0 %v2894_v4, %s8500_s22  ;;  %v3576_v4 = vld [vmem:[%s9691_s28 + $0x18] sm:$0xff] }
 0x642   : > { %3079 = vrot.lane.b32.xlu0 %v2893_v7, %s8500_s22  ;;  %v3573_v7 = vld [vmem:[%s9691_s28] sm:$0xff] }
 0x646   : > { %3075 = vrot.lane.b32.xlu0 %v2891_v10, %s8500_s22 }
 0x649   : > { %3077 = vrot.lane.b32.xlu1 %v2892_v11, %s8500_s22 }
 0x64a   : > { %3354 = vrot.lane.b32.xlu0 %v3167_v12, %s8500_s22 }
 0x64d   : > { %3348 = vrot.lane.b32.xlu1 %v3164_v13, %s8500_s22 }
 0x64e   : > { %3352 = vrot.lane.b32.xlu0 %v3166_v14, %s8500_s22 }
 0x652   : > { %3350 = vrot.lane.b32.xlu0 %v3165_v15, %s8500_s22  ;;  %s9688_s22 = sld [smem:[#allocation38_spill]] }
 0x658   : > { %v3436_v38 = vld [vmem:[%s9688_s22 + $0x18] sm:$0xff]  ;;  %v3435_v39 = vld [vmem:[%s9688_s22 + $0x10] sm:$0xff]  ;;  %v3434_v40 = vld [vmem:[%s9688_s22 + $0x8] sm:$0xff] }
 0x659   : > { %7999 = vmatprep.subr.mxu1 %v3436_v38  ;;  %v3433_v41 = vld [vmem:[%s9688_s22] sm:$0xff]  ;;  %s9690_s22 = scalar_lea.vmem %s9689_s29, %s8723_s0  ;;  %s9692_s29 = sld [smem:[#allocation12_spill]] }
 0x65a   : > { %8000 = vmatpush3.msra.mxu1 %v3436_v38  ;;  %v7271_v50 = vld [vmem:[%s9690_s22] ss:$0 sm:$0xff]  ;;  %s9693_s22 = sld [smem:[#allocation36_spill]] }
 0x65b   : > { %8001 = vmatprep.subr.mxu1 %v3435_v39 }
 0x65c   : > { %8002 = vmatpush3.msra.mxu1 %v3435_v39 }
 0x65d   : > { %8003 = vmatprep.subr.mxu1 %v3434_v40 }
 0x65e   : > { %8004 = vmatpush3.msra.mxu1 %v3434_v40 }
 0x65f   : > { %8005 = vmatprep.subr.mxu1 %v3433_v41  ;;  %v2716_v8 = vld [vmem:[%s9692_s29 + $0x18] sm:$0xff]  ;;  %v9099_v10 = vld [vmem:[%s9692_s29 + $0x10] sm:$0xff]  ;;  %v2714_v12 = vld [vmem:[%s9692_s29 + $0x8] sm:$0xff] }
 0x660   : > { %8006 = vmatpush3.msra.mxu1 %v3433_v41  ;;  %s7277_s14 = sshll.u32 %s9693_s22, 4  ;;  %p7466_p5 = scmp.ne.s32.totalorder %s9693_s22, 1 }
 0x661   : > { %8021 = vmatprep.subr.mxu1 %v8497_v26  ;;  %s9093_s16 = scalar_lea.vmem [#allocation3], %s7277_s14  ;;  %s9695_s14 = sld [smem:[#allocation27_spill]] }
 0x662   : > { %s9710_s22 = sld [smem:[#allocation34_spill]] (!%p7466_p5) }
 0x6b1   : > { %v2992_v16 = vpop.xlane.xlu0 %2991 }
 0x6b2   : > { %v2993_v17 = vsub.f32 %v2989_v56, %v2992_v16 }
 0x6b4   : > { %v2994_v18 = vmul.f32 1.442695, %v2993_v17 }
 0x6b5   : > { %v3082_v19 = vpop.permute.xlu0 %3081 }
 0x6b6   : > { %8407 = vpow2.f32 %v2994_v18 }
 0x6b9   : > { %v3080_v22 = vpop.permute.xlu0 %3079 }
 0x6bd   : > { %v3076_v24 = vpop.permute.xlu0 %3075 }
 0x6c1   : > { %v3265_v20 = vpop.xlane.xlu1 %3264  ;;  %v3355_v33 = vpop.permute.xlu0 %3354 }
 0x6c2   : > { %v3266_v28 = vsub.f32 %v3262_v63, %v3265_v20 }
 0x6c3   : > { %v8408_v21 = vpop.eup %8407 }
 0x6c4   : > { %7953 = vmatmul.mubr.msk.f32.vlgmr.msra.gmra.mxu0 %vm2723_vm14, %v8408_v21  ;;  %v3267_v30 = vmul.f32 1.442695, %v3266_v28 }
 0x6c5   : > { %7956 = vmatpush3.msra.mxu0 %v3082_v19  ;;  %7963 = vmatprep.mubr.msk.f32.mxu0 %vm8499_vm15, %v8497_v26  ;;  %v3078_v23 = vpop.permute.xlu1 %3077  ;;  %v3353_v34 = vpop.permute.xlu0 %3352 }
 0x6c6   : > { %7957 = vmatprep.subr.mxu0 %v8497_v26 }
 0x6c7   : > { %7958 = vmatpush3.msra.mxu0 %v3080_v22  ;;  %v7272_v22 = vld [vmem:[%s1429_s3] ss:$0 sm:$0xff]  ;;  %s9697_s3 = smov 32  }
 0x6c8   : > { %7959 = vmatprep.subr.mxu0 %v8497_v26 }
 0x6c9   : > { %7960 = vmatpush3.msra.mxu0 %v3078_v23  ;;  %v3351_v36 = vpop.permute.xlu0 %3350  ;;  %v3349_v37 = vpop.permute.xlu1 %3348 }
 0x6ca   : > { %7961 = vmatprep.subr.mxu0 %v8497_v26 }
 0x6cb   : > { %7962 = vmatpush3.msra.mxu0 %v3076_v24 }
 0x6cc   : > { %7977 = vmatprep.subr.mxu0 %v8497_v26 }
 0x784   : > { %v3065_v27 = vpop.f32.mrf.mxu0 }
 0x785   : > { %8409 = vrcp.f32 %v3065_v27 }
 0x786   : > { %v7954_v2 = vpop.f32.mrf.mxu0  ;;  %8411 = vpow2.f32 %v3267_v30 }
 0x792   : > { %v8410_v31 = vpop.eup %8409 }
 0x793   : > { %v3070_v32 = vmul.f32 %v8410_v31, %v8408_v21  ;;  %v8412_v35 = vpop.eup %8411 }
 0x795   : > { %7964 = vmatmul.mubr.msk.f32.vlgmr.msra.gmra.mxu0 %vm2723_vm14, %v3070_v32 }
 0x796   : > { %7978 = vmatpush3.msra.mxu0 %v2711_v1  ;;  %7985 = vmatprep.mubr.msk.f32.mxu0 %vm8499_vm15, %v8497_v26 }
 0x797   : > { %7979 = vmatprep.subr.mxu0 %v8497_v26 }
 0x798   : > { %7980 = vmatpush3.msra.mxu0 %v2710_v5  ;;  %v3575_v5 = vld [vmem:[%s9691_s28 + $0x10] sm:$0xff] }
 0x799   : > { %7981 = vmatprep.subr.mxu0 %v8497_v26 }
 0x79a   : > { %7982 = vmatpush3.msra.mxu0 %v2709_v6  ;;  %v3574_v6 = vld [vmem:[%s9691_s28 + $0x8] sm:$0xff]  ;;  %s9700_s28 = smov 96  }
 0x79b   : > { %7983 = vmatprep.subr.mxu0 %v8497_v26 }
 0x79c   : > { %7984 = vmatpush3.msra.mxu0 %v2708_v9  ;;  %v9096_v9 = vld [vmem:[%s9093_s16] sm:$0xff] }
 0x79d   : > { %7986 = vmatmul.mubr.msk.f32.vlgmr.msra.gmra.mxu0 %vm2723_vm14, %v8412_v35  ;;  %7988 = vmatprep.subr.mxu0 %v8497_v26  ;;  %v3672_v11 = vmul.f32 %v9096_v9, %v2716_v8  ;;  %v3671_v13 = vmul.f32 %v9096_v9, %v9099_v10  ;;  %v3670_v14 = vmul.f32 %v9096_v9, %v2714_v12 }
 0x79e   : > { %7989 = vmatpush3.msra.mxu0 %v3355_v33  ;;  %7996 = vmatprep.mubr.msk.f32.mxu0 %vm8499_vm15, %v8497_v26  ;;  %v2713_v33 = vld [vmem:[%s9692_s29] sm:$0xff] }
 0x79f   : > { %7990 = vmatprep.subr.mxu0 %v8497_v26 }
 0x7a0   : > { %7991 = vmatpush3.msra.mxu0 %v3353_v34  ;;  %v3669_v34 = vmul.f32 %v9096_v9, %v2713_v33 }
 0x7a1   : > { %7992 = vmatprep.subr.mxu0 %v8497_v26 }
 0x7a2   : > { %7993 = vmatpush3.msra.mxu0 %v3351_v36 }
 0x7a3   : > { %7994 = vmatprep.subr.mxu0 %v8497_v26 }
 0x7a4   : > { %7995 = vmatpush3.msra.mxu0 %v3349_v37 }
 0x7a5   : > { %8010 = vmatprep.subr.mxu0 %v3576_v4 }
 0x855   : > { %v3156_v42 = vpop.f32.mrf.mxu0 }
 0x856   : > { %8007 = vmatprep.mubr.msk.f32.mxu1 %vm2723_vm14, %v3156_v42 }
 0x857   : > { %v7965_v43 = vpop.f32.mrf.mxu0 }
 0x85d   : > { %v3338_v44 = vpop.f32.mrf.mxu0 }
 0x85e   : > { %8413 = vrcp.f32 %v3338_v44 }
 0x85f   : > { %v7987_v45 = vpop.f32.mrf.mxu0 }
 0x86b   : > { %v8414_v46 = vpop.eup %8413 }
 0x86c   : > { %v3343_v47 = vmul.f32 %v8414_v46, %v8412_v35  ;;  %v9129_v35 = vld [vmem:[%s9093_s16 + $0x8] sm:$0xff]  ;;  %s9699_s16 = sld [smem:[#allocation13_spill]] }
 0x86d   : > { %v3952_v39 = vmul.f32 %v9129_v35, %v2716_v8  ;;  %v3951_v41 = vmul.f32 %v9129_v35, %v9099_v10  ;;  %v3950_v42 = vmul.f32 %v9129_v35, %v2714_v12  ;;  %v3949_v43 = vmul.f32 %v9129_v35, %v2713_v33 }
 0x86e   : > { %7997 = vmatmul.mubr.msk.f32.vlgmr.msra.gmra.mxu0 %vm2723_vm14, %v3343_v47 }
 0x86f   : > { %8011 = vmatpush3.msra.mxu0 %v3576_v4 }
 0x870   : > { %8012 = vmatprep.subr.mxu0 %v3575_v5 }
 0x871   : > { %8013 = vmatpush3.msra.mxu0 %v3575_v5 }
 0x872   : > { %8014 = vmatprep.subr.mxu0 %v3574_v6 }
 0x873   : > { %8015 = vmatpush3.msra.mxu0 %v3574_v6 }
 0x874   : > { %8016 = vmatprep.subr.mxu0 %v3573_v7 }
 0x875   : > { %8017 = vmatpush3.msra.mxu0 %v3573_v7 }
 0x876   : > { %8032 = vmatprep.subr.mxu0 %v8497_v26 }
 0x92e   : > { %v3429_v48 = vpop.f32.mrf.mxu0 }
 0x92f   : > { %8008 = vmatmul.mubr.msk.f32.vlgmr.msra.gmra.mxu1 %vm2723_vm14, %v3429_v48 }
 0x930   : > { %v7998_v49 = vpop.f32.mrf.mxu0  ;;  %8029 = vmatprep.mubr.msk.f32.mxu1 %vm8499_vm15, %v8497_v26  ;;  %8022 = vmatpush3.xpose.msk.msra.mxu1 %vm2723_vm14, %v3672_v11 }
 0x931   : > { %8023 = vmatprep.subr.mxu1 %v8497_v26 }
 0x934   : > { %8024 = vmatpush3.xpose.msk.msra.mxu1 %vm2723_vm14, %v3671_v13 }
 0x935   : > { %8025 = vmatprep.subr.mxu1 %v8497_v26 }
 0x938   : > { %8026 = vmatpush3.xpose.msk.msra.mxu1 %vm2723_vm14, %v3670_v14 }
 0x939   : > { %8027 = vmatprep.subr.mxu1 %v8497_v26 }
 0x93c   : > { %8028 = vmatpush3.xpose.msk.msra.mxu1 %vm2723_vm14, %v3669_v34 }
 0x93d   : > { %8054 = vmatprep.subr.mxu1 %v8497_v26 }
 0x9ef   : > { %v8009_v25 = vpop.f32.mrf.mxu1 }
 0x9f0   : > { %v3519_v52 = vadd.f32 %v8009_v25, %v8927_v29 }
 0x9f1   : > { %v3509_v53 = vpop.f32.mrf.mxu1 }
 0x9f2   : > { %v9072_v54 = vadd.f32 %v7271_v50, %v3519_v52  ;;  %v3518_v55 = vadd.f32 %v3509_v53, %v8925_v51  ;;  %v9152_v52 = vld [vmem:[%s9699_s16 + $0x18] sm:$0xff]  ;;  %v9155_v53 = vld [vmem:[%s9699_s16 + $0x10] sm:$0xff] }
 0x9f4   : > { %v9075_v56 = vadd.f32 %v7271_v50, %v3518_v55  ;;  %v3534_v57 = vsel %vm2723_vm14, %v9072_v54, 0.0 }
 0x9f5   : > { %3535 = vadd.xlane.f32.xlu1 %v3534_v57 }
 0x9f6   : > { %v3531_v58 = vsel %vm2723_vm14, %v9075_v56, 0.0 }
 0x9f7   : > { %3532 = vadd.xlane.f32.xlu0 %v3531_v58 }
 0xa06   : > { %3683 = vrot.lane.b32.xlu1 %v2716_v8, %s9621_s23 }
 0xa0a   : > { %3679 = vrot.lane.b32.xlu1 %v2714_v12, %s9621_s23  ;;  %s9696_s23 = scalar_lea.vmem %s9695_s14, %s8723_s0  ;;  %s9702_s14 = sld [smem:[#allocation28_spill]] }
 0xa0b   : > { %v7273_v24 = vld [vmem:[%s9696_s23] ss:$0 sm:$0xff]  ;;  %s9698_s23 = scalar_lea.vmem %s8624_s25, %s8723_s0 }
 0xa0c   : > { %v7274_v37 = vld [vmem:[%s9698_s23] ss:$0 sm:$0xff] }
 0xa0e   : > { %3677 = vrot.lane.b32.xlu1 %v2713_v33, %s9697_s3 }
 0xa10   : > { %s9704_s23 = scalar_lea.vmem %s9702_s14, %s8723_s0  ;;  %s9712_s14 = sld [smem:[#allocation33_spill]] (!%p7466_p5) }
 0xa7e   : > { %v3536_v59 = vpop.xlane.xlu1 %3535 }
 0xa7f   : > { %v3538_v29 = vmul.f32 0.03125, %v3536_v59  ;;  %v2718_v59 = vld [vmem:[%s9699_s16 + $0x8] sm:$0xff] }
 0xa80   : > { %v3533_v60 = vpop.xlane.xlu0 %3532 }
 0xa81   : > { %v3537_v61 = vmul.f32 0.03125, %v3533_v60  ;;  %v3540_v62 = vsub.f32 %v9072_v54, %v3538_v29  ;;  %v2717_v29 = vld [vmem:[%s9699_s16] sm:$0xff] }
 0xa82   : > { %v3684_v57 = vpop.permute.xlu1 %3683 }
 0xa83   : > { %v3539_v51 = vsub.f32 %v9075_v56, %v3537_v61  ;;  %v3542_v1 = vmul.f32 %v3540_v62, %v3540_v62  ;;  %v3692_v58 = vmul.f32 %v3684_v57, %v9096_v9  ;;  %v3956_v5 = vmul.f32 %v3684_v57, %v9129_v35 }
 0xa85   : > { %v3541_v63 = vmul.f32 %v3539_v51, %v3539_v51  ;;  %v3546_v3 = vsel %vm2723_vm14, %v3542_v1, 0.0 }
 0xa87   : > { %v3543_v0 = vsel %vm2723_vm14, %v3541_v63, 0.0 }
 0xa88   : > { %3544 = vadd.xlane.f32.xlu0 %v3543_v0 }
 0xa8c   : > { %3547 = vadd.xlane.f32.xlu0 %v3546_v3 }
 0xb11   : > { %v3545_v15 = vpop.xlane.xlu0 %3544 }
 0xb12   : > { %v3549_v16 = vmul.f32 0.03125, %v3545_v15 }
 0xb14   : > { %v3551_v17 = vadd.f32 1e-05, %v3549_v16 }
 0xb15   : > { %v3548_v18 = vpop.xlane.xlu0 %3547 }
 0xb16   : > { %8415 = vrsqrt.f32 %v3551_v17  ;;  %v3550_v19 = vmul.f32 0.03125, %v3548_v18 }
 0xb18   : > { %v3552_v20 = vadd.f32 1e-05, %v3550_v19 }
 0xb1a   : > { %8417 = vrsqrt.f32 %v3552_v20 }
 0xb23   : > { %v8416_v21 = vpop.eup %8415 }
 0xb24   : > { %v3555_v23 = vmul.f32 %v8416_v21, %v3539_v51  ;;  %v3680_v51 = vpop.permute.xlu1 %3679 }
 0xb25   : > { %v3690_v1 = vmul.f32 %v3680_v51, %v9096_v9 }
 0xb26   : > { %v3563_v27 = vmul.f32 %v7272_v22, %v3555_v23 }
 0xb27   : > { %v8418_v2 = vpop.eup %8417 }
 0xb28   : > { %v3556_v28 = vmul.f32 %v8418_v2, %v3540_v62  ;;  %v3571_v30 = vadd.f32 %v7273_v24, %v3563_v27  ;;  %v3678_v3 = vpop.permute.xlu1 %3677  ;;  %v4216_v2 = vld [vmem:[%s8742_s19 + $0x18] sm:$0xff] }
 0xb29   : > { %v3689_v4 = vmul.f32 %v3678_v3, %v9096_v9 }
 0xb2a   : > { %v3564_v31 = vmul.f32 %v7272_v22, %v3556_v28  ;;  %8018 = vmatprep.mubr.msk.f32.mxu0 %vm2723_vm14, %v3571_v30  ;;  %v4215_v28 = vld [vmem:[%s8742_s19 + $0x10] sm:$0xff]  ;;  %v4214_v30 = vld [vmem:[%s8742_s19 + $0x8] sm:$0xff] }
 0xb2c   : > { %v3572_v32 = vadd.f32 %v7273_v24, %v3564_v31  ;;  %v4213_v31 = vld [vmem:[%s8742_s19] sm:$0xff]  ;;  %s9701_s19 = scalar_lea.vmem %s8634_s6, %s8723_s0 }
 0xb2e   : > { %8019 = vmatmul.mubr.msk.f32.vlgmr.msra.gmra.mxu0 %vm2723_vm14, %v3572_v32 }
 0xb2f   : > { %8040 = vmatprep.mubr.msk.f32.mxu0 %vm8499_vm15, %v8497_v26  ;;  %8033 = vmatpush3.msra.mxu0 %v9152_v52 }
 0xb30   : > { %8034 = vmatprep.subr.mxu0 %v8497_v26 }
 0xb31   : > { %8035 = vmatpush3.msra.mxu0 %v9155_v53 }
 0xb32   : > { %8036 = vmatprep.subr.mxu0 %v8497_v26 }
 0xb33   : > { %8037 = vmatpush3.msra.mxu0 %v2718_v59 }
 0xb34   : > { %8038 = vmatprep.subr.mxu0 %v8497_v26 }
 0xb35   : > { %8039 = vmatpush3.msra.mxu0 %v2717_v29 }
 0xb36   : > { %8043 = vmatprep.subr.mxu0 %v8497_v26 }
 0xbee   : > { %v8020_v36 = vpop.f32.mrf.mxu0 }
 0xbef   : > { %v3662_v44 = vadd.f32 %v8020_v36, %v7274_v37 }
 0xbf0   : > { %v3656_v38 = vpop.f32.mrf.mxu0 }
 0xbf1   : > { %v3657_v40 = vadd.f32 %v7274_v37, %v3656_v38 }
 0xbf3   : > { %8030 = vmatmul.mubr.msk.f32.vlgmr.msra.gmra.mxu1 %vm2723_vm14, %v3657_v40  ;;  %v7294_v40 = vld [vmem:[%s9701_s19] ss:$0 sm:$0xff]  ;;  %s9711_s19 = smov (!%p7466_p5), %s9710_s22 }
 0xbf4   : > { %8055 = vmatpush3.xpose.msk.msra.mxu1 %vm2723_vm14, %v3952_v39  ;;  %8062 = vmatprep.mubr.msk.f32.mxu1 %vm8499_vm15, %v8497_v26 }
 0xbf5   : > { %8056 = vmatprep.subr.mxu1 %v8497_v26 }
 0xbf8   : > { %8057 = vmatpush3.xpose.msk.msra.mxu1 %vm2723_vm14, %v3951_v41 }
 0xbf9   : > { %8058 = vmatprep.subr.mxu1 %v8497_v26 }
 0xbfc   : > { %8059 = vmatpush3.xpose.msk.msra.mxu1 %vm2723_vm14, %v3950_v42 }
 0xbfd   : > { %8060 = vmatprep.subr.mxu1 %v8497_v26 }
 0xc00   : > { %8061 = vmatpush3.xpose.msk.msra.mxu1 %vm2723_vm14, %v3949_v43 }
 0xc01   : > { %8087 = vmatprep.subr.mxu1 %v4216_v2 }
 0xc03   : > { %8063 = vmatmul.mubr.msk.f32.vlgmr.msra.gmra.mxu1 %vm2723_vm14, %v3662_v44 }
 0xc04   : > { %8088 = vmatpush3.msra.mxu1 %v4216_v2  ;;  %v7295_v2 = vld [vmem:[%s9704_s23] ss:$0 sm:$0xff] }
 0xc05   : > { %8089 = vmatprep.subr.mxu1 %v4215_v28 }
 0xc06   : > { %8090 = vmatpush3.msra.mxu1 %v4215_v28 }
 0xc07   : > { %8091 = vmatprep.subr.mxu1 %v4214_v30 }
 0xc08   : > { %8092 = vmatpush3.msra.mxu1 %v4214_v30 }
 0xc09   : > { %8093 = vmatprep.subr.mxu1 %v4213_v31 }
 0xc0a   : > { %8094 = vmatpush3.msra.mxu1 %v4213_v31 }
 0xcb3   : > { %v3774_v45 = vpop.f32.mrf.mxu1 }
 0xcb4   : > { %v3778_v46 = vmul.f32 0.35355338, %v3774_v45 }
 0xcb5   : > { %v8031_v47 = vpop.f32.mrf.mxu1 }
 0xcb6   : > { %v3779_v48 = vsel %vm2723_vm14, %v3778_v46, -inf }
 0xcb7   : > { %3780 = vmax.xlane.f32.xlu0 %v3779_v48 }
 0xcc3   : > { %v4038_v49 = vpop.f32.mrf.mxu1 }
 0xcc4   : > { %v4042_v25 = vmul.f32 0.35355338, %v4038_v49 }
 0xcc5   : > { %v8064_v50 = vpop.f32.mrf.mxu1 }
 0xcc6   : > { %v4043_v55 = vsel %vm2723_vm14, %v4042_v25, -inf }
 0xcc7   : > { %4044 = vmax.xlane.f32.xlu1 %v4043_v55 }
 0xccd   : > { %3681 = vrot.lane.b32.xlu0 %v9099_v10, %s9697_s3  ;;  %v3953_v10 = vmul.f32 %v3678_v3, %v9129_v35  ;;  %v4355_v3 = vld [vmem:[%s8748_s4 + $0x8] sm:$0xff]  ;;  %s9703_s3 = sld [smem:[#allocation29_spill]] }
 0xcd1   : > { %3870 = vrot.lane.b32.xlu0 %v3692_v58, %s9700_s28  ;;  %v4362_v58 = vld [vmem:[%s8748_s4 + $0x80] sm:$0xff] }
 0xd40   : > { %v3781_v60 = vpop.xlane.xlu0 %3780 }
 0xd41   : > { %v3782_v61 = vsub.f32 %v3778_v46, %v3781_v60 }
 0xd43   : > { %v3783_v62 = vmul.f32 1.442695, %v3782_v61  ;;  %v4367_v61 = vld [vmem:[%s8748_s4 + $0xc8] sm:$0xff] }
 0xd44   : > { %v3682_v63 = vpop.permute.xlu0 %3681 }
 0xd45   : > { %8419 = vpow2.f32 %v3783_v62  ;;  %v3691_v0 = vmul.f32 %v3682_v63, %v9096_v9  ;;  %v3955_v7 = vmul.f32 %v3682_v63, %v9129_v35  ;;  %v3954_v9 = vmul.f32 %v3680_v51, %v9129_v35 }
 0xd47   : > { %3868 = vrot.lane.b32.xlu0 %v3691_v0, %s9700_s28  ;;  %v4354_v0 = vld [vmem:[%s8748_s4] sm:$0xff] }
 0xd48   : > { %v3871_v8 = vpop.permute.xlu0 %3870 }
 0xd4b   : > { %3866 = vrot.lane.b32.xlu0 %v3690_v1, %s9700_s28  ;;  %v4358_v1 = vld [vmem:[%s8748_s4 + $0x40] sm:$0xff] }
 0xd4f   : > { %3864 = vrot.lane.b32.xlu0 %v3689_v4, %s9700_s28  ;;  %v7298_v4 = vcombine.high %v4354_v0, %v4358_v1 }
 0xd50   : > { %v4045_v14 = vpop.xlane.xlu1 %4044 }
 0xd51   : > { %v4046_v17 = vsub.f32 %v4042_v25, %v4045_v14  ;;  %v4369_v14 = vld [vmem:[%s8748_s4 + $0xd8] sm:$0xff] }
 0xd52   : > { %v8420_v6 = vpop.eup %8419 }
 0xd53   : > { %8041 = vmatmul.mubr.msk.f32.vlgmr.msra.gmra.mxu0 %vm2723_vm14, %v8420_v6  ;;  %4134 = vrot.lane.b32.xlu0 %v3956_v5, %s9700_s28  ;;  %v4047_v18 = vmul.f32 1.442695, %v4046_v17  ;;  %v4359_v5 = vld [vmem:[%s8748_s4 + $0x48] sm:$0xff] }
 0xd54   : > { %8044 = vmatpush3.msra.mxu0 %v3871_v8  ;;  %8051 = vmatprep.mubr.msk.f32.mxu0 %vm8499_vm15, %v8497_v26  ;;  %v7300_v8 = vcombine.high %v4355_v3, %v4359_v5 }
 0xd55   : > { %8045 = vmatprep.subr.mxu0 %v8497_v26 }
 0xd57   : > { %4132 = vrot.lane.b32.xlu0 %v3955_v7, %s9700_s28  ;;  %v7299_v7 = vcombine.low %v4355_v3, %v4359_v5  ;;  %v4821_v3 = vld [vmem:[%s8748_s4 + $0x30] sm:$0xff]  ;;  %v4822_v5 = vld [vmem:[%s8748_s4 + $0x38] sm:$0xff] }
 0xd5b   : > { %4130 = vrot.lane.b32.xlu0 %v3954_v9, %s9700_s28  ;;  %v4364_v9 = vld [vmem:[%s8748_s4 + $0x90] sm:$0xff] }
 0xd5f   : > { %4128 = vrot.lane.b32.xlu0 %v3953_v10, %s9700_s28  ;;  %v4368_v10 = vld [vmem:[%s8748_s4 + $0xd0] sm:$0xff]  ;;  %s9705_s28 = scalar_lea.vmem %s9703_s3, %s8723_s0 }
 0xdb9   : > { %v3869_v11 = vpop.permute.xlu0 %3868 }
 0xdba   : > { %8046 = vmatpush3.msra.mxu0 %v3869_v11  ;;  %v4365_v11 = vld [vmem:[%s8748_s4 + $0x98] sm:$0xff] }
 0xdbb   : > { %8047 = vmatprep.subr.mxu0 %v8497_v26  ;;  %v7312_v17 = vcombine.high %v4365_v11, %v4369_v14 }
 0xdbd   : > { %v3867_v12 = vpop.permute.xlu0 %3866 }
 0xdbe   : > { %8048 = vmatpush3.msra.mxu0 %v3867_v12  ;;  %v7309_v12 = vcombine.low %v4364_v9, %v4368_v10 }
 0xdbf   : > { %8049 = vmatprep.subr.mxu0 %v8497_v26 }
 0xdc1   : > { %v3865_v13 = vpop.permute.xlu0 %3864 }
 0xdc2   : > { %8050 = vmatpush3.msra.mxu0 %v3865_v13  ;;  %v7310_v13 = vcombine.high %v4364_v9, %v4368_v10 }
 0xdc3   : > { %8065 = vmatprep.subr.mxu0 %v8497_v26 }
 0xdc5   : > { %v4135_v19 = vpop.permute.xlu0 %4134 }
 0xdc9   : > { %v4133_v22 = vpop.permute.xlu0 %4132 }
 0xdcd   : > { %v4131_v24 = vpop.permute.xlu0 %4130 }
 0xdd1   : > { %v4129_v27 = vpop.permute.xlu0 %4128 }
 0xe13   : > { %v3854_v15 = vpop.f32.mrf.mxu0 }
 0xe14   : > { %8421 = vrcp.f32 %v3854_v15  ;;  %v8501_v15 = vmov 0  }
 0xe15   : > { %v8042_v16 = vpop.f32.mrf.mxu0  ;;  %8423 = vpow2.f32 %v4047_v18 }
 0xe16   : > { %v7311_v16 = vcombine.low %v4365_v11, %v4369_v14  ;;  %v8276_v14 = vld [vmem:[%s8756_s7 + $0x2f8] sm:$0xff]  }
 0xe21   : > { %v8422_v20 = vpop.eup %8421 }
 0xe22   : > { %v3859_v21 = vmul.f32 %v8422_v20, %v8420_v6  ;;  %v8424_v23 = vpop.eup %8423  ;;  %v7297_v6 = vcombine.low %v4354_v0, %v4358_v1 }
 0xe24   : > { %8052 = vmatmul.mubr.msk.f32.vlgmr.msra.gmra.mxu0 %vm2723_vm14, %v3859_v21 }
 0xe25   : > { %8066 = vmatpush3.msra.mxu0 %v9152_v52  ;;  %8073 = vmatprep.mubr.msk.f32.mxu0 %vm8499_vm15, %v8497_v26 }
 0xe26   : > { %8067 = vmatprep.subr.mxu0 %v8497_v26 }
 0xe27   : > { %8068 = vmatpush3.msra.mxu0 %v9155_v53 }
 0xe28   : > { %8069 = vmatprep.subr.mxu0 %v8497_v26 }
 0xe29   : > { %8070 = vmatpush3.msra.mxu0 %v2718_v59  ;;  %v4366_v59 = vld [vmem:[%s8748_s4 + $0xc0] sm:$0xff] }
 0xe2a   : > { %8071 = vmatprep.subr.mxu0 %v8497_v26  ;;  %v7306_v60 = vcombine.high %v4362_v58, %v4366_v59  ;;  %v7305_v62 = vcombine.low %v4362_v58, %v4366_v59 }
 0xe2b   : > { %8072 = vmatpush3.msra.mxu0 %v2717_v29  ;;  %v4363_v29 = vld [vmem:[%s8748_s4 + $0x88] sm:$0xff] }
 0xe2c   : > { %8074 = vmatmul.mubr.msk.f32.vlgmr.msra.gmra.mxu0 %vm2723_vm14, %v8424_v23  ;;  %8076 = vmatprep.subr.mxu0 %v8497_v26  ;;  %v7307_v51 = vcombine.low %v4363_v29, %v4367_v61  ;;  %v7308_v63 = vcombine.high %v4363_v29, %v4367_v61  ;;  %v4829_v29 = vld [vmem:[%s8748_s4 + $0xb0] sm:$0xff]  ;;  %v4830_v61 = vld [vmem:[%s8748_s4 + $0xb8] sm:$0xff] }
 0xe2d   : > { %8077 = vmatpush3.msra.mxu0 %v4135_v19  ;;  %8084 = vmatprep.mubr.msk.f32.mxu0 %vm8499_vm15, %v8497_v26 }
 0xe2e   : > { %8078 = vmatprep.subr.mxu0 %v8497_v26  ;;  %4550 = vmatprep.subr.bf16.mxu1 %v7308_v63 }
 0xe2f   : > { %8079 = vmatpush3.msra.mxu0 %v4133_v22 }
 0xe30   : > { %8080 = vmatprep.subr.mxu0 %v8497_v26 }
 0xe31   : > { %8081 = vmatpush3.msra.mxu0 %v4131_v24 }
 0xe32   : > { %8082 = vmatprep.subr.mxu0 %v8497_v26 }
 0xe33   : > { %8083 = vmatpush3.msra.mxu0 %v4129_v27 }
 0xe34   : > { %4507 = vmatprep.subr.bf16.mxu0 %v7306_v60  ;;  %v4833_v60 = vld [vmem:[%s8748_s4 + $0xf0] sm:$0xff] }
 0xe35   : > { %v7330_v0 = vcombine.high %v4829_v29, %v4833_v60 }
 0xee4   : > { %v3945_v32 = vpop.f32.mrf.mxu0 }
 0xee5   : > { %8095 = vmatprep.mubr.msk.f32.mxu1 %vm2723_vm14, %v3945_v32  ;;  %v7296_v32 = vld [vmem:[%s9705_s28] ss:$0 sm:$0xff] }
 0xee6   : > { %v8053_v33 = vpop.f32.mrf.mxu0 }
 0xeec   : > { %v4118_v26 = vpop.f32.mrf.mxu0 }
 0xeed   : > { %8425 = vrcp.f32 %v4118_v26  ;;  %v4356_v26 = vld [vmem:[%s8748_s4 + $0x10] sm:$0xff] }
 0xeee   : > { %v8075_v34 = vpop.f32.mrf.mxu0 }
 0xeef   : > { %v4360_v34 = vld [vmem:[%s8748_s4 + $0x50] sm:$0xff] }
 0xefa   : > { %v8426_v35 = vpop.eup %8425 }
 0xefb   : > { %v4123_v36 = vmul.f32 %v8426_v35, %v8424_v23  ;;  %v4357_v35 = vld [vmem:[%s8748_s4 + $0x18] sm:$0xff] }
 0xefd   : > { %8085 = vmatmul.mubr.msk.f32.vlgmr.msra.gmra.mxu0 %vm2723_vm14, %v4123_v36  ;;  %v4361_v36 = vld [vmem:[%s8748_s4 + $0x58] sm:$0xff] }
 0xefe   : > { %4508 = vmatpush1.bf16.msra.mxu0 %v7305_v62  ;;  %4527 = vmatprep.mubr.bf16.mxu0 %v8501_v15  ;;  %v4834_v62 = vld [vmem:[%s8748_s4 + $0xf8] sm:$0xff] }
 0xeff   : > { %4509 = vmatprep.subr.bf16.mxu0 %v7298_v4  ;;  %v7332_v1 = vcombine.high %v4830_v61, %v4834_v62  ;;  %v4825_v4 = vld [vmem:[%s8748_s4 + $0x70] sm:$0xff] }
 0xf00   : > { %v7322_v9 = vcombine.high %v4821_v3, %v4825_v4  ;;  %v7321_v11 = vcombine.low %v4821_v3, %v4825_v4 }
 0xf02   : > { %4510 = vmatpush1.bf16.msra.mxu0 %v7297_v6  ;;  %v4826_v6 = vld [vmem:[%s8748_s4 + $0x78] sm:$0xff] }
 0xf03   : > { %4593 = vmatprep.subr.bf16.mxu0 %v7310_v13  ;;  %v7324_v10 = vcombine.high %v4822_v5, %v4826_v6  ;;  %v8275_v13 = vld [vmem:[%s8756_s7 + $0x278] sm:$0xff]  }
 0xfbd   : > { %v4209_v37 = vpop.f32.mrf.mxu0 }
 0xfbe   : > { %8096 = vmatmul.mubr.msk.f32.vlgmr.msra.gmra.mxu1 %vm2723_vm14, %v4209_v37 }
 0xfbf   : > { %v8086_v38 = vpop.f32.mrf.mxu0  ;;  %4551 = vmatpush1.bf16.msra.mxu1 %v7307_v51  ;;  %4570 = vmatprep.mubr.bf16.mxu1 %v8501_v15 }
 0xfc0   : > { %4552 = vmatprep.subr.bf16.mxu1 %v7300_v8  ;;  %v7331_v8 = vcombine.low %v4830_v61, %v4834_v62 }
 0xfc3   : > { %4553 = vmatpush1.bf16.msra.mxu1 %v7299_v7  ;;  %v7329_v7 = vcombine.low %v4829_v29, %v4833_v60 }
 0xfc4   : > { %4636 = vmatprep.subr.bf16.mxu1 %v7312_v17  ;;  %v8278_v17 = vld [vmem:[%s8756_s7 + $0x2b8] sm:$0xff]  }
0x107e   : > { %v8097_v39 = vpop.f32.mrf.mxu1 }
0x107f   : > { %v4299_v41 = vadd.f32 %v8097_v39, %v9072_v54 }
0x1080   : > { %v4289_v42 = vpop.f32.mrf.mxu1 }
0x1081   : > { %v9217_v43 = vadd.f32 %v7294_v40, %v4299_v41  ;;  %v4298_v44 = vadd.f32 %v4289_v42, %v9075_v56  ;;  %v7304_v41 = vcombine.high %v4357_v35, %v4361_v36  ;;  %v4827_v42 = vld [vmem:[%s8748_s4 + $0xa0] sm:$0xff] }
0x1083   : > { %v9220_v45 = vadd.f32 %v7294_v40, %v4298_v44  ;;  %v4314_v46 = vsel %vm2723_vm14, %v9217_v43, 0.0  ;;  %v7302_v40 = vcombine.high %v4356_v26, %v4360_v34  ;;  %v4831_v44 = vld [vmem:[%s8748_s4 + $0xe0] sm:$0xff] }
0x1084   : > { %4315 = vadd.xlane.f32.xlu1 %v4314_v46  ;;  %v4828_v46 = vld [vmem:[%s8748_s4 + $0xa8] sm:$0xff] }
0x1085   : > { %v4311_v47 = vsel %vm2723_vm14, %v9220_v45, 0.0 }
0x1086   : > { %4312 = vadd.xlane.f32.xlu0 %v4311_v47  ;;  %v4832_v47 = vld [vmem:[%s8748_s4 + $0xe8] sm:$0xff] }
0x110d   : > { %v4316_v48 = vpop.xlane.xlu1 %4315 }
0x110e   : > { %v4318_v54 = vmul.f32 0.03125, %v4316_v48  ;;  %v7301_v48 = vcombine.low %v4356_v26, %v4360_v34  ;;  %v8289_v26 = vld [vmem:[%s8756_s7 + $0x220] sm:$0xff]  }
0x110f   : > { %v4313_v49 = vpop.xlane.xlu0 %4312  ;;  %v8290_v34 = vld [vmem:[%s8756_s7 + $0x2a0] sm:$0xff]  }
0x1110   : > { %v4317_v25 = vmul.f32 0.03125, %v4313_v49  ;;  %v4320_v56 = vsub.f32 %v9217_v43, %v4318_v54  ;;  %v7303_v54 = vcombine.low %v4357_v35, %v4361_v36  ;;  %v7326_v49 = vcombine.high %v4827_v42, %v4831_v44  ;;  %v8291_v35 = vld [vmem:[%s8756_s7 + $0x258] sm:$0xff]  }
0x1111   : > { %v8292_v36 = vld [vmem:[%s8756_s7 + $0x2d8] sm:$0xff]  }
0x1112   : > { %v4319_v50 = vsub.f32 %v9220_v45, %v4317_v25  ;;  %v4322_v55 = vmul.f32 %v4320_v56, %v4320_v56  ;;  %v7328_v25 = vcombine.high %v4828_v46, %v4832_v47 }
0x1114   : > { %v4321_v52 = vmul.f32 %v4319_v50, %v4319_v50  ;;  %v4326_v57 = vsel %vm2723_vm14, %v4322_v55, 0.0  ;;  %v7325_v55 = vcombine.low %v4827_v42, %v4831_v44  ;;  %v8298_v42 = vld [vmem:[%s8756_s7 + $0x290] sm:$0xff]   ;;  %v8299_v44 = vld [vmem:[%s8756_s7 + $0x248] sm:$0xff]  }
0x1116   : > { %v4323_v53 = vsel %vm2723_vm14, %v4321_v52, 0.0  ;;  %v4820_v52 = vld [vmem:[%s8748_s4 + $0x28] sm:$0xff] }
0x1117   : > { %4324 = vadd.xlane.f32.xlu1 %v4323_v53  ;;  %v4824_v53 = vld [vmem:[%s8748_s4 + $0x68] sm:$0xff] }
0x1118   : > { %v7320_v59 = vcombine.high %v4820_v52, %v4824_v53  ;;  %v7319_v63 = vcombine.low %v4820_v52, %v4824_v53  ;;  %v8308_v52 = vld [vmem:[%s8756_s7 + $0x3f8] sm:$0xff]  }
0x111b   : > { %4327 = vadd.xlane.f32.xlu1 %v4326_v57  ;;  %v7327_v57 = vcombine.low %v4828_v46, %v4832_v47  ;;  %v8300_v46 = vld [vmem:[%s8756_s7 + $0x2c8] sm:$0xff]  }
0x111c   : > { %v8301_v47 = vld [vmem:[%s8756_s7 + $0x208] sm:$0xff]  }
0x11a0   : > { %v4325_v18 = vpop.xlane.xlu1 %4324 }
0x11a1   : > { %v4329_v19 = vmul.f32 0.03125, %v4325_v18  ;;  %v8279_v18 = vld [vmem:[%s8756_s7 + $0x270] sm:$0xff]  }
0x11a3   : > { %v4331_v20 = vadd.f32 1e-05, %v4329_v19  ;;  %v4372_v19 = vlaneseq }
0x11a4   : > { %v4328_v21 = vpop.xlane.xlu1 %4327 }
0x11a5   : > { %8427 = vrsqrt.f32 %v4331_v20  ;;  %v4330_v22 = vmul.f32 0.03125, %v4328_v21  ;;  %v8281_v20 = vld [vmem:[%s8756_s7 + $0x230] sm:$0xff]  }
0x11a6   : > { %v8282_v21 = vld [vmem:[%s8756_s7 + $0x2b0] sm:$0xff]  }
0x11a7   : > { %v4332_v23 = vadd.f32 1e-05, %v4330_v22  ;;  %v8283_v22 = vld [vmem:[%s8756_s7 + $0x268] sm:$0xff]  }
0x11a9   : > { %8429 = vrsqrt.f32 %v4332_v23  ;;  %v8284_v23 = vld [vmem:[%s8756_s7 + $0x2e8] sm:$0xff]  }
0x11b2   : > { %v8428_v24 = vpop.eup %8427 }
0x11b3   : > { %v4335_v27 = vmul.f32 %v8428_v24, %v4319_v50  ;;  %v4823_v50 = vld [vmem:[%s8748_s4 + $0x60] sm:$0xff]  ;;  %v9304_v24 = vshrl.u32 %v4372_v19, 7 }
0x11b5   : > { %v4343_v30 = vmul.f32 %v7295_v2, %v4335_v27  ;;  %v8285_v27 = vld [vmem:[%s8756_s7 + $0x228] sm:$0xff]   ;;  %v9341_v53 = vsub.s32 0, %v9304_v24  ;;  %v9358_v3 = vsub.s32 5, %v9304_v24  ;;  %v9361_v4 = vsub.s32 7, %v9304_v24 }
0x11b6   : > { %v8430_v28 = vpop.eup %8429 }
0x11b7   : > { %v4336_v31 = vmul.f32 %v8430_v28, %v4320_v56  ;;  %v4351_v37 = vadd.f32 %v7296_v32, %v4343_v30  ;;  %v4819_v56 = vld [vmem:[%s8748_s4 + $0x20] sm:$0xff]  ;;  %v9309_v28 = vsub.s32 6, %v9304_v24  ;;  %s9707_s4 = sld [smem:[#allocation30_spill]] (!%p7466_p5) }
0x11b8   : > { %v7318_v58 = vcombine.high %v4819_v56, %v4823_v50  ;;  %v7317_v51 = vcombine.low %v4819_v56, %v4823_v50  ;;  %v9312_v30 = vld [vmem:[%s8752_s5] sm:$0xff]  ;;  %v8307_v50 = vld [vmem:[%s8756_s7 + $0x378] sm:$0xff]  }
0x11b9   : > { %v4344_v33 = vmul.f32 %v7295_v2, %v4336_v31  ;;  %v8286_v2 = vld [vmem:[%s8756_s7 + $0x2a8] sm:$0xff]   ;;  %v9316_v31 = vrot.slane %v9312_v30, %v9309_v28  ;;  %v8306_v56 = vld [vmem:[%s8756_s7 + $0x280] sm:$0xff]  }
0x11bb   : > { %v4352_v38 = vadd.f32 %v7296_v32, %v4344_v33  ;;  %v8287_v32 = vld [vmem:[%s8756_s7 + $0x260] sm:$0xff]  }
0x11bc   : > { %v8288_v33 = vld [vmem:[%s8756_s7 + $0x2e0] sm:$0xff]  }
0x11bd   : > { %v9254_v39 = vpack.c.bf16 %v4352_v38, %v4351_v37  ;;  %v8293_v37 = vld [vmem:[%s8756_s7 + $0x218] sm:$0xff]  }
0x11be   : > { %v8294_v38 = vld [vmem:[%s8756_s7 + $0x298] sm:$0xff]  }
0x11bf   : > { %7313 = vmatmul.mubr.msk.bf16.vlgmr.msra.gmra.mxu0 %vm2723_vm14, %v9254_v39  ;;  %7314 = vmatmul.mubr.msk.bf16.vlgmr.msra.gmra.mxu1 %vm2723_vm14, %v9254_v39 }
0x11c0   : > { %4594 = vmatpush1.bf16.msra.mxu0 %v7309_v12  ;;  %4637 = vmatpush1.bf16.msra.mxu1 %v7311_v16  ;;  %v7323_v12 = vcombine.low %v4822_v5, %v4826_v6  ;;  %v8277_v16 = vld [vmem:[%s8756_s7 + $0x238] sm:$0xff]  }
0x11c1   : > { %4595 = vmatprep.subr.bf16.mxu0 %v7302_v40  ;;  %4638 = vmatprep.subr.bf16.mxu1 %v7304_v41  ;;  %v8296_v40 = vld [vmem:[%s8756_s7 + $0x2d0] sm:$0xff]  }
0x11c2   : > { %4613 = vmatprep.mubr.bf16.mxu0 %v8501_v15  ;;  %4656 = vmatprep.mubr.bf16.mxu1 %v8501_v15  ;;  %v8297_v41 = vld [vmem:[%s8756_s7 + $0x210] sm:$0xff]  }
0x11c4   : > { %4596 = vmatpush1.bf16.msra.mxu0 %v7301_v48  ;;  %4639 = vmatpush1.bf16.msra.mxu1 %v7303_v54  ;;  %v8302_v48 = vld [vmem:[%s8756_s7 + $0x288] sm:$0xff]   ;;  %v8303_v54 = vld [vmem:[%s8756_s7 + $0x240] sm:$0xff]  }
0x11c5   : > { %4969 = vmatprep.subr.bf16.mxu0 %v7326_v49  ;;  %5012 = vmatprep.subr.bf16.mxu1 %v7328_v25  ;;  %v8304_v49 = vld [vmem:[%s8756_s7 + $0x2c0] sm:$0xff]  }
0x11c6   : > { %v8305_v25 = vld [vmem:[%s8756_s7 + $0x200] sm:$0xff]  }
0x11c7   : > { %7315 = vmatmul.mubr.msk.bf16.vlgmr.msra.gmra.mxu0 %vm2723_vm14, %v9254_v39  ;;  %7316 = vmatmul.mubr.msk.bf16.vlgmr.msra.gmra.mxu1 %vm2723_vm14, %v9254_v39 }
0x11c8   : > { %4970 = vmatpush1.bf16.msra.mxu0 %v7325_v55  ;;  %5013 = vmatpush1.bf16.msra.mxu1 %v7327_v57  ;;  %v9344_v55 = vsub.s32 2, %v9304_v24  ;;  %v4375_v57 = vrot.slane %v9312_v30, %v9341_v53 }
0x11c9   : > { %4971 = vmatprep.subr.bf16.mxu0 %v7318_v58  ;;  %5014 = vmatprep.subr.bf16.mxu1 %v7320_v59 }
0x11ca   : > { %4989 = vmatprep.mubr.bf16.mxu0 %v8501_v15  ;;  %5032 = vmatprep.mubr.bf16.mxu1 %v8501_v15  ;;  %v4383_v58 = vrot.slane %v9312_v30, %v9344_v55 }
0x11cc   : > { %4972 = vmatpush1.bf16.msra.mxu0 %v7317_v51  ;;  %5015 = vmatpush1.bf16.msra.mxu1 %v7319_v63  ;;  %v9355_v63 = vsub.s32 4, %v9304_v24 }
0x11cd   : > { %5055 = vmatprep.subr.bf16.mxu0 %v7330_v0  ;;  %5098 = vmatprep.subr.bf16.mxu1 %v7332_v1 }
0x11cf   : > { %7333 = vmatmul.mubr.msk.bf16.vlgmr.msra.gmra.mxu0 %vm2723_vm14, %v9254_v39  ;;  %7334 = vmatmul.mubr.msk.bf16.vlgmr.msra.gmra.mxu1 %vm2723_vm14, %v9254_v39 }
0x11d0   : > { %5056 = vmatpush1.bf16.msra.mxu0 %v7329_v7  ;;  %5099 = vmatpush1.bf16.msra.mxu1 %v7331_v8 }
0x11d1   : > { %5057 = vmatprep.subr.bf16.mxu0 %v7322_v9  ;;  %5100 = vmatprep.subr.bf16.mxu1 %v7324_v10  ;;  %v4391_v9 = vrot.slane %v9312_v30, %v9355_v63 }
0x11d2   : > { %5075 = vmatprep.mubr.bf16.mxu0 %v8501_v15  ;;  %5118 = vmatprep.mubr.bf16.mxu1 %v8501_v15  ;;  %v8280_v15 = vld [vmem:[%s8756_s7 + $0x2f0] sm:$0xff]  }
0x11d4   : > { %5058 = vmatpush1.bf16.msra.mxu0 %v7321_v11  ;;  %5101 = vmatpush1.bf16.msra.mxu1 %v7323_v12 }
0x11d5   : > { %7726 = vmatprep.subr.bf16.mxu0 %v8275_v13  ;;  %7748 = vmatprep.subr.bf16.mxu1 %v8276_v14 }
0x11d7   : > { %7335 = vmatmul.mubr.msk.bf16.vlgmr.msra.gmra.mxu0 %vm2723_vm14, %v9254_v39  ;;  %7336 = vmatmul.mubr.msk.bf16.vlgmr.msra.gmra.mxu1 %vm2723_vm14, %v9254_v39  ;;  %v8295_v39 = vld [vmem:[%s8756_s7 + $0x250] sm:$0xff]  }
0x11d8   : > { %7727 = vmatpush3.bf16.msra.mxu0 %v8277_v16  ;;  %7749 = vmatpush3.bf16.msra.mxu1 %v8278_v17  ;;  %v4395_v17 = vrot.slane %v9312_v30, %v9358_v3 }
0x11d9   : > { %7728 = vmatprep.subr.bf16.mxu0 %v8279_v18  ;;  %7750 = vmatprep.subr.bf16.mxu1 %v8280_v15  ;;  %v4403_v18 = vrot.slane %v9312_v30, %v9361_v4 }
0x11dc   : > { %7729 = vmatpush3.bf16.msra.mxu0 %v8281_v20  ;;  %7751 = vmatpush3.bf16.msra.mxu1 %v8282_v21 }
0x11dd   : > { %7730 = vmatprep.subr.bf16.mxu0 %v8283_v22  ;;  %7752 = vmatprep.subr.bf16.mxu1 %v8284_v23 }
0x11e0   : > { %7731 = vmatpush3.bf16.msra.mxu0 %v8285_v27  ;;  %7753 = vmatpush3.bf16.msra.mxu1 %v8286_v2 }
0x11e1   : > { %7732 = vmatprep.subr.bf16.mxu0 %v8287_v32  ;;  %7754 = vmatprep.subr.bf16.mxu1 %v8288_v33 }
0x11e4   : > { %7733 = vmatpush3.bf16.msra.mxu0 %v8289_v26  ;;  %7755 = vmatpush3.bf16.msra.mxu1 %v8290_v34 }
0x11e5   : > { %7734 = vmatprep.subr.bf16.mxu0 %v8291_v35  ;;  %7756 = vmatprep.subr.bf16.mxu1 %v8292_v36  ;;  %v9380_v35 = vsub.s32 1, %v9304_v24  ;;  %v9383_v36 = vsub.s32 3, %v9304_v24 }
0x11e8   : > { %7735 = vmatpush3.bf16.msra.mxu0 %v8293_v37  ;;  %7757 = vmatpush3.bf16.msra.mxu1 %v8294_v38 }
0x11e9   : > { %7736 = vmatprep.subr.bf16.mxu0 %v8295_v39  ;;  %7758 = vmatprep.subr.bf16.mxu1 %v8296_v40 }
0x11ec   : > { %7737 = vmatpush3.bf16.msra.mxu0 %v8297_v41  ;;  %7759 = vmatpush3.bf16.msra.mxu1 %v8298_v42 }
0x11ed   : > { %7738 = vmatprep.subr.bf16.mxu0 %v8299_v44  ;;  %7760 = vmatprep.subr.bf16.mxu1 %v8300_v46 }
0x11f0   : > { %7739 = vmatpush3.bf16.msra.mxu0 %v8301_v47  ;;  %7761 = vmatpush3.bf16.msra.mxu1 %v8302_v48  ;;  %v9386_v47 = vld [vmem:[%s8752_s5 + $0x8] sm:$0xff]  ;;  %s9706_s5 = scalar_lea.vmem %s8654_s20, %s8723_s0  ;;  %s9708_s0 = sld [smem:[#allocation32_spill]] (!%p7466_p5) }
0x11f1   : > { %7740 = vmatprep.subr.bf16.mxu0 %v8303_v54  ;;  %7762 = vmatprep.subr.bf16.mxu1 %v8304_v49  ;;  %v4852_v24 = vrot.slane %v9386_v47, %v9383_v36 }
0x11f4   : > { %7741 = vmatpush3.bf16.msra.mxu0 %v8305_v25  ;;  %7763 = vmatpush3.bf16.msra.mxu1 %v8306_v56  ;;  %v4844_v25 = vrot.slane %v9386_v47, %v9380_v35 }
0x11f5   : > { %7770 = vmatprep.subr.bf16.mxu0 %v8307_v50  ;;  %7792 = vmatprep.subr.bf16.mxu1 %v8308_v52 }
0x127f   : > { %v4529_v59 = vpop.f32.mrf.mxu0  ;;  %v4572_v29 = vpop.f32.mrf.mxu1 }
0x1280   : > { %v4530_v60 = vadd.f32 %v4529_v59, %v4375_v57  ;;  %v4573_v61 = vadd.f32 %v4572_v29, %v4383_v58  ;;  %v4848_v59 = vrot.slane %v9386_v47, %v9344_v55 }
0x1281   : > { %v9350_v62 = vpop.f32.mrf.mxu0  ;;  %v9352_v51 = vpop.f32.mrf.mxu1 }
0x1282   : > { %v4667_v10 = vmax.f32 %v4530_v60, 0.0  ;;  %v4669_v11 = vmax.f32 %v4573_v61, 0.0 }
0x1283   : > { %v4533_v0 = vpop.f32.mrf.mxu0  ;;  %v4576_v1 = vpop.f32.mrf.mxu1 }
0x1284   : > { %v4534_v5 = vadd.f32 %v4533_v0, %v4375_v57  ;;  %v4577_v6 = vadd.f32 %v4576_v1, %v4383_v58  ;;  %v4840_v58 = vrot.slane %v9386_v47, %v9341_v53 }
0x1285   : > { %v9363_v7 = vpop.f32.mrf.mxu0  ;;  %v9365_v8 = vpop.f32.mrf.mxu1 }
0x1286   : > { %v4675_v12 = vmax.f32 %v4534_v5, 0.0  ;;  %v4677_v13 = vmax.f32 %v4577_v6, 0.0 }
0x1287   : > { %v4615_v14 = vpop.f32.mrf.mxu0  ;;  %v4658_v16 = vpop.f32.mrf.mxu1 }
0x1288   : > { %v9373_v15 = vpack.c.bf16 %v4675_v12, %v4667_v10  ;;  %v9375_v19 = vpack.c.bf16 %v4677_v13, %v4669_v11  ;;  %v4616_v20 = vadd.f32 %v4615_v14, %v4391_v9  ;;  %v4659_v21 = vadd.f32 %v4658_v16, %v9316_v31 }
0x1289   : > { %v4617_v22 = vpop.f32.mrf.mxu0  ;;  %v4660_v23 = vpop.f32.mrf.mxu1 }
0x128a   : > { %v4618_v27 = vadd.f32 %v4617_v22, %v4395_v17  ;;  %v4661_v2 = vadd.f32 %v4660_v23, %v4403_v18  ;;  %v4671_v37 = vmax.f32 %v4616_v20, 0.0  ;;  %v4673_v38 = vmax.f32 %v4659_v21, 0.0 }
0x128b   : > { %v4619_v32 = vpop.f32.mrf.mxu0  ;;  %v4662_v33 = vpop.f32.mrf.mxu1 }
0x128c   : > { %v4620_v26 = vadd.f32 %v4619_v32, %v4391_v9  ;;  %v4663_v34 = vadd.f32 %v4662_v33, %v9316_v31  ;;  %v4672_v48 = vmax.f32 %v4618_v27, 0.0  ;;  %v4674_v54 = vmax.f32 %v4661_v2, 0.0 }
0x128d   : > { %v4621_v39 = vpop.f32.mrf.mxu0  ;;  %v4664_v40 = vpop.f32.mrf.mxu1  ;;  %v4860_v27 = vrot.slane %v9386_v47, %v9358_v3  ;;  %v4868_v2 = vrot.slane %v9386_v47, %v9361_v4 }
0x128e   : > { %v4679_v41 = vmax.f32 %v4620_v26, 0.0  ;;  %v4681_v42 = vmax.f32 %v4663_v34, 0.0  ;;  %v4622_v44 = vadd.f32 %v4621_v39, %v4395_v17  ;;  %v4665_v46 = vadd.f32 %v4664_v40, %v4403_v18 }
0x128f   : > { %v4991_v49 = vpop.f32.mrf.mxu0  ;;  %v5034_v31 = vpop.f32.mrf.mxu1 }
0x1290   : > { %v9392_v56 = vpack.c.bf16 %v4679_v41, %v4671_v37  ;;  %v9394_v50 = vpack.c.bf16 %v4681_v42, %v4673_v38  ;;  %v4680_v52 = vmax.f32 %v4622_v44, 0.0  ;;  %v4682_v57 = vmax.f32 %v4665_v46, 0.0  ;;  %v8309_v44 = vld [vmem:[%s8756_s7 + $0x338] sm:$0xff]  }
0x1291   : > { %v4993_v29 = vpop.f32.mrf.mxu0  ;;  %v5036_v60 = vpop.f32.mrf.mxu1  ;;  %v4992_v12 = vadd.f32 %v4991_v49, %v4840_v58  ;;  %v5035_v13 = vadd.f32 %v5034_v31, %v4848_v59  ;;  %v8310_v46 = vld [vmem:[%s8756_s7 + $0x3b8] sm:$0xff]  }
0x1292   : > { %v9400_v61 = vpack.c.bf16 %v4680_v52, %v4672_v48  ;;  %v9402_v0 = vpack.c.bf16 %v4682_v57, %v4674_v54  ;;  %v4994_v6 = vadd.f32 %v4993_v29, %v4844_v25  ;;  %v5037_v9 = vadd.f32 %v5036_v60, %v4852_v24 }
0x1293   : > { %v4995_v1 = vpop.f32.mrf.mxu0  ;;  %v5038_v5 = vpop.f32.mrf.mxu1  ;;  %v5129_v37 = vmax.f32 %v4992_v12, 0.0  ;;  %v5131_v38 = vmax.f32 %v5035_v13, 0.0 }
0x1294   : > { %v4996_v10 = vadd.f32 %v4995_v1, %v4840_v58  ;;  %v5039_v11 = vadd.f32 %v5038_v5, %v4848_v59  ;;  %v5130_v32 = vmax.f32 %v4994_v6, 0.0  ;;  %v5132_v33 = vmax.f32 %v5037_v9, 0.0  ;;  %v8313_v1 = vld [vmem:[%s8756_s7 + $0x330] sm:$0xff]   ;;  %v8315_v6 = vld [vmem:[%s8756_s7 + $0x368] sm:$0xff]  }
0x1295   : > { %v4997_v14 = vpop.f32.mrf.mxu0  ;;  %v5040_v16 = vpop.f32.mrf.mxu1  ;;  %v8314_v5 = vld [vmem:[%s8756_s7 + $0x3b0] sm:$0xff]   ;;  %v8316_v9 = vld [vmem:[%s8756_s7 + $0x3e8] sm:$0xff]  }
0x1296   : > { %v4998_v17 = vadd.f32 %v4997_v14, %v4844_v25  ;;  %v5041_v18 = vadd.f32 %v5040_v16, %v4852_v24  ;;  %v5137_v20 = vmax.f32 %v4996_v10, 0.0  ;;  %v5139_v21 = vmax.f32 %v5039_v11, 0.0  ;;  %v8311_v25 = vld [vmem:[%s8756_s7 + $0x370] sm:$0xff]  }
0x1297   : > { %v9404_v22 = vpop.f32.mrf.mxu0  ;;  %v9406_v23 = vpop.f32.mrf.mxu1  ;;  %v8312_v24 = vld [vmem:[%s8756_s7 + $0x3f0] sm:$0xff]  }
0x1298   : > { %v5138_v26 = vmax.f32 %v4998_v17, 0.0  ;;  %v5140_v34 = vmax.f32 %v5041_v18, 0.0  ;;  %v5145_v48 = vpack.c.bf16 %v5137_v20, %v5129_v37  ;;  %v5147_v54 = vpack.c.bf16 %v5139_v21, %v5131_v38  ;;  %v8317_v17 = vld [vmem:[%s8756_s7 + $0x328] sm:$0xff]   ;;  %v8319_v20 = vld [vmem:[%s8756_s7 + $0x360] sm:$0xff]   ;;  %v8327_v37 = vld [vmem:[%s8756_s7 + $0x350] sm:$0xff]  }
0x1299   : > { %v5079_v39 = vpop.f32.mrf.mxu0  ;;  %v5122_v40 = vpop.f32.mrf.mxu1  ;;  %v8318_v18 = vld [vmem:[%s8756_s7 + $0x3a8] sm:$0xff]   ;;  %v8320_v21 = vld [vmem:[%s8756_s7 + $0x3e0] sm:$0xff]   ;;  %v8328_v38 = vld [vmem:[%s8756_s7 + $0x3d0] sm:$0xff]  }
0x129a   : > { %v5146_v41 = vpack.c.bf16 %v5138_v26, %v5130_v32  ;;  %v5148_v42 = vpack.c.bf16 %v5140_v34, %v5132_v33  ;;  %v5080_v52 = vadd.f32 %v5079_v39, %v4860_v27  ;;  %v5123_v57 = vadd.f32 %v5122_v40, %v4868_v2  ;;  %v8323_v32 = vld [vmem:[%s8756_s7 + $0x358] sm:$0xff]   ;;  %v8329_v39 = vld [vmem:[%s8756_s7 + $0x310] sm:$0xff]  }
0x129b   : > { %v9414_v49 = vpop.f32.mrf.mxu0  ;;  %v9416_v31 = vpop.f32.mrf.mxu1  ;;  %v8324_v33 = vld [vmem:[%s8756_s7 + $0x3d8] sm:$0xff]   ;;  %v8330_v40 = vld [vmem:[%s8756_s7 + $0x390] sm:$0xff]  }
0x129c   : > { %5697 = vmatprep.mubr.bf16.mxu0 %v5146_v41  ;;  %5738 = vmatprep.mubr.bf16.mxu1 %v5148_v42  ;;  %v5134_v10 = vmax.f32 %v5080_v52, 0.0  ;;  %v5136_v11 = vmax.f32 %v5123_v57, 0.0  ;;  %v8325_v26 = vld [vmem:[%s8756_s7 + $0x318] sm:$0xff]   ;;  %v8331_v41 = vld [vmem:[%s8756_s7 + $0x348] sm:$0xff]  }
0x129d   : > { %v5083_v58 = vpop.f32.mrf.mxu0  ;;  %v5126_v59 = vpop.f32.mrf.mxu1  ;;  %5698 = vmatmul.mubr.bf16.vlgmr.msra.gmra.mxu0 %v5145_v48  ;;  %5739 = vmatmul.mubr.bf16.vlgmr.msra.gmra.mxu1 %v5147_v54  ;;  %v8326_v34 = vld [vmem:[%s8756_s7 + $0x398] sm:$0xff]   ;;  %v8332_v42 = vld [vmem:[%s8756_s7 + $0x3c8] sm:$0xff]   ;;  %v4379_v48 = vrot.slane %v9312_v30, %v9380_v35 }
0x129e   : > { %v5084_v29 = vadd.f32 %v5083_v58, %v4860_v27  ;;  %v5127_v60 = vadd.f32 %v5126_v59, %v4868_v2  ;;  %7771 = vmatpush3.bf16.msra.mxu0 %v8309_v44  ;;  %7793 = vmatpush3.bf16.msra.mxu1 %v8310_v46  ;;  %v8321_v27 = vld [vmem:[%s8756_s7 + $0x320] sm:$0xff]   ;;  %v4856_v44 = vrot.slane %v9386_v47, %v9355_v63  ;;  %v8333_v54 = vld [vmem:[%s8756_s7 + $0x308] sm:$0xff]  }
0x129f   : > { %7772 = vmatprep.subr.bf16.mxu0 %v8311_v25  ;;  %7794 = vmatprep.subr.bf16.mxu1 %v8312_v24  ;;  %v8322_v2 = vld [vmem:[%s8756_s7 + $0x3a0] sm:$0xff]   ;;  %v4864_v46 = vrot.slane %v9386_v47, %v9309_v28  ;;  %v8334_v25 = vld [vmem:[%s8756_s7 + $0x388] sm:$0xff]   ;;  %v4387_v24 = vrot.slane %v9312_v30, %v9383_v36  ;;  %v4536_v59 = vadd.f32 %v9363_v7, %v4379_v48  ;;  %v8339_v7 = vld [vmem:[%s8756_s7 + $0x78] sm:$0xff]  }
0x12a0   : > { %v5142_v12 = vmax.f32 %v5084_v29, 0.0  ;;  %v5144_v13 = vmax.f32 %v5127_v60, 0.0  ;;  %v5082_v52 = vadd.f32 %v9414_v49, %v4856_v44  ;;  %v8335_v58 = vld [vmem:[%s8756_s7 + $0x340] sm:$0xff]   ;;  %v5078_v60 = vadd.f32 %v9404_v22, %v4856_v44  ;;  %v8357_v44 = vld [vmem:[%s8756_s7 + $0x18] sm:$0xff]  }
0x12a1   : > { %v5125_v57 = vadd.f32 %v9416_v31, %v4864_v46  ;;  %v8336_v47 = vld [vmem:[%s8756_s7 + $0x3c0] sm:$0xff]   ;;  %v4579_v29 = vadd.f32 %v9365_v8, %v4387_v24  ;;  %v4532_v30 = vadd.f32 %v9350_v62, %v4379_v48  ;;  %v8340_v8 = vld [vmem:[%s8756_s7 + $0xf8] sm:$0xff]   ;;  %v4676_v22 = vmax.f32 %v4536_v59, 0.0  ;;  %v8359_v48 = vld [vmem:[%s8756_s7 + $0x50] sm:$0xff]  }
0x12a2   : > { %v5150_v14 = vpack.c.bf16 %v5142_v12, %v5134_v10  ;;  %v5152_v16 = vpack.c.bf16 %v5144_v13, %v5136_v11  ;;  %7773 = vmatpush3.bf16.msra.mxu0 %v8313_v1  ;;  %7795 = vmatpush3.bf16.msra.mxu1 %v8314_v5  ;;  %v5121_v1 = vadd.f32 %v9406_v23, %v4864_v46  ;;  %v8337_v49 = vld [vmem:[%s8756_s7 + $0x300] sm:$0xff]   ;;  %v5133_v10 = vmax.f32 %v5078_v60, 0.0  ;;  %v8341_v12 = vld [vmem:[%s8756_s7 + $0x38] sm:$0xff]  }
0x12a3   : > { %7774 = vmatprep.subr.bf16.mxu0 %v8315_v6  ;;  %7796 = vmatprep.subr.bf16.mxu1 %v8316_v9  ;;  %v8338_v31 = vld [vmem:[%s8756_s7 + $0x380] sm:$0xff]   ;;  %v4575_v5 = vadd.f32 %v9352_v51, %v4387_v24  ;;  %v5141_v6 = vmax.f32 %v5082_v52, 0.0  ;;  %v5143_v9 = vmax.f32 %v5125_v57, 0.0  ;;  %v4678_v23 = vmax.f32 %v4579_v29, 0.0  ;;  %v8358_v46 = vld [vmem:[%s8756_s7 + $0x98] sm:$0xff]   ;;  %v8362_v24 = vld [vmem:[%s8756_s7 + $0x90] sm:$0xff]  }
0x12a4   : > { %5779 = vmatprep.mubr.bf16.mxu0 %v5150_v14  ;;  %5820 = vmatprep.mubr.bf16.mxu1 %v5152_v16  ;;  %v5135_v62 = vmax.f32 %v5121_v1, 0.0  ;;  %v4668_v11 = vmax.f32 %v4532_v30, 0.0  ;;  %v8342_v16 = vld [vmem:[%s8756_s7 + $0xb8] sm:$0xff]   ;;  %v8363_v52 = vld [vmem:[%s8756_s7 + $0x48] sm:$0xff]   ;;  %v8367_v59 = vld [vmem:[%s8756_s7 + $0x40] sm:$0xff]  }
0x12a5   : > { %v4670_v13 = vmax.f32 %v4575_v5, 0.0  ;;  %v5149_v51 = vpack.c.bf16 %v5141_v6, %v5133_v10  ;;  %v8364_v57 = vld [vmem:[%s8756_s7 + $0xc8] sm:$0xff]   ;;  %v8368_v29 = vld [vmem:[%s8756_s7 + $0xc0] sm:$0xff]   ;;  %v8371_v30 = vld [vmem:[%s8756_s7 + $0x178] sm:$0xff]  }
0x12a6   : > { %7775 = vmatpush3.bf16.msra.mxu0 %v8317_v17  ;;  %7797 = vmatpush3.bf16.msra.mxu1 %v8318_v18  ;;  %v5151_v14 = vpack.c.bf16 %v5143_v9, %v5135_v62  ;;  %v4684_v17 = vpack.c.bf16 %v4676_v22, %v4668_v11  ;;  %v8343_v18 = vld [vmem:[%s8756_s7 + $0x70] sm:$0xff]   ;;  %v8369_v60 = vld [vmem:[%s8756_s7] sm:$0xff]   ;;  %v8374_v5 = vld [vmem:[%s8756_s7 + $0x1b8] sm:$0xff]  }
0x12a7   : > { %7776 = vmatprep.subr.bf16.mxu0 %v8319_v20  ;;  %7798 = vmatprep.subr.bf16.mxu1 %v8320_v21  ;;  %v8344_v20 = vld [vmem:[%s8756_s7 + $0xf0] sm:$0xff]   ;;  %v4686_v21 = vpack.c.bf16 %v4678_v23, %v4670_v13  ;;  %v8370_v1 = vld [vmem:[%s8756_s7 + $0x80] sm:$0xff]   ;;  %v8379_v22 = vld [vmem:[%s8756_s7 + $0x168] sm:$0xff]  }
0x12a8   : > { %v8375_v6 = vld [vmem:[%s8756_s7 + $0x170] sm:$0xff]   ;;  %v8382_v23 = vld [vmem:[%s8756_s7 + $0x1a8] sm:$0xff]   ;;  %v8384_v10 = vld [vmem:[%s8756_s7 + $0x1e0] sm:$0xff]  }
0x12a9   : > { %v8376_v9 = vld [vmem:[%s8756_s7 + $0x1f0] sm:$0xff]   ;;  %v8386_v62 = vld [vmem:[%s8756_s7 + $0x1a0] sm:$0xff]   ;;  %v8387_v11 = vld [vmem:[%s8756_s7 + $0x158] sm:$0xff]  }
0x12aa   : > { %7777 = vmatpush3.bf16.msra.mxu0 %v8321_v27  ;;  %7799 = vmatpush3.bf16.msra.mxu1 %v8322_v2  ;;  %v8345_v27 = vld [vmem:[%s8756_s7 + $0x30] sm:$0xff]   ;;  %v8389_v13 = vld [vmem:[%s8756_s7 + $0x118] sm:$0xff]  }
0x12ab   : > { %7778 = vmatprep.subr.bf16.mxu0 %v8323_v32  ;;  %7800 = vmatprep.subr.bf16.mxu1 %v8324_v33  ;;  %v8346_v2 = vld [vmem:[%s8756_s7 + $0xb0] sm:$0xff]   ;;  %v8347_v32 = vld [vmem:[%s8756_s7 + $0x68] sm:$0xff]  }
0x12ac   : > { %v8348_v33 = vld [vmem:[%s8756_s7 + $0xe8] sm:$0xff]  }
0x12ae   : > { %7779 = vmatpush3.bf16.msra.mxu0 %v8325_v26  ;;  %7801 = vmatpush3.bf16.msra.mxu1 %v8326_v34  ;;  %v8349_v26 = vld [vmem:[%s8756_s7 + $0x28] sm:$0xff]  }
0x12af   : > { %7780 = vmatprep.subr.bf16.mxu0 %v8327_v37  ;;  %7802 = vmatprep.subr.bf16.mxu1 %v8328_v38  ;;  %v8350_v34 = vld [vmem:[%s8756_s7 + $0xa8] sm:$0xff]   ;;  %v8351_v37 = vld [vmem:[%s8756_s7 + $0x60] sm:$0xff]  }
0x12b0   : > { %v8352_v38 = vld [vmem:[%s8756_s7 + $0xe0] sm:$0xff]  }
0x12b2   : > { %7781 = vmatpush3.bf16.msra.mxu0 %v8329_v39  ;;  %7803 = vmatpush3.bf16.msra.mxu1 %v8330_v40  ;;  %v8353_v39 = vld [vmem:[%s8756_s7 + $0x20] sm:$0xff]  }
0x12b3   : > { %7782 = vmatprep.subr.bf16.mxu0 %v8331_v41  ;;  %7804 = vmatprep.subr.bf16.mxu1 %v8332_v42  ;;  %v8354_v40 = vld [vmem:[%s8756_s7 + $0xa0] sm:$0xff]   ;;  %v8355_v41 = vld [vmem:[%s8756_s7 + $0x58] sm:$0xff]  }
0x12b4   : > { %v8356_v42 = vld [vmem:[%s8756_s7 + $0xd8] sm:$0xff]  }
0x12b6   : > { %7783 = vmatpush3.bf16.msra.mxu0 %v8333_v54  ;;  %7805 = vmatpush3.bf16.msra.mxu1 %v8334_v25  ;;  %v8360_v54 = vld [vmem:[%s8756_s7 + $0xd0] sm:$0xff]  }
0x12b7   : > { %7784 = vmatprep.subr.bf16.mxu0 %v8335_v58  ;;  %7806 = vmatprep.subr.bf16.mxu1 %v8336_v47  ;;  %v8361_v25 = vld [vmem:[%s8756_s7 + $0x10] sm:$0xff]   ;;  %v8365_v58 = vld [vmem:[%s8756_s7 + $0x8] sm:$0xff]  }
0x12b8   : > { %v8366_v47 = vld [vmem:[%s8756_s7 + $0x88] sm:$0xff]  }
0x12ba   : > { %7785 = vmatpush3.bf16.msra.mxu0 %v8337_v49  ;;  %7807 = vmatpush3.bf16.msra.mxu1 %v8338_v31  ;;  %v8372_v49 = vld [vmem:[%s8756_s7 + $0x1f8] sm:$0xff]  }
0x12bb   : > { %7814 = vmatprep.subr.bf16.mxu0 %v8339_v7  ;;  %7836 = vmatprep.subr.bf16.mxu1 %v8340_v8  ;;  %v8373_v31 = vld [vmem:[%s8756_s7 + $0x138] sm:$0xff]   ;;  %v8377_v7 = vld [vmem:[%s8756_s7 + $0x130] sm:$0xff]  }
0x12bc   : > { %v8378_v8 = vld [vmem:[%s8756_s7 + $0x1b0] sm:$0xff]  }
0x12bd   : > { %5780 = vmatmul.mubr.bf16.vlgmr.msra.gmra.mxu0 %v5149_v51  ;;  %5821 = vmatmul.mubr.bf16.vlgmr.msra.gmra.mxu1 %v5151_v14  ;;  %v8390_v51 = vld [vmem:[%s8756_s7 + $0x198] sm:$0xff]   ;;  %v8391_v14 = vld [vmem:[%s8756_s7 + $0x150] sm:$0xff]  }
0x12be   : > { %7815 = vmatpush3.bf16.msra.mxu0 %v8341_v12  ;;  %6245 = vmatprep.mubr.bf16.mxu0 %v4684_v17  ;;  %v8388_v12 = vld [vmem:[%s8756_s7 + $0x1d8] sm:$0xff]   ;;  %v8393_v17 = vld [vmem:[%s8756_s7 + $0x110] sm:$0xff]  }
0x12bf   : > { %7837 = vmatpush3.bf16.msra.mxu1 %v8342_v16  ;;  %6286 = vmatprep.mubr.bf16.mxu1 %v4686_v21  ;;  %v8392_v16 = vld [vmem:[%s8756_s7 + $0x1d0] sm:$0xff]   ;;  %v8396_v21 = vld [vmem:[%s8756_s7 + $0x1c8] sm:$0xff]  }
0x12c0   : > { %7816 = vmatprep.subr.bf16.mxu0 %v8343_v18  ;;  %7838 = vmatprep.subr.bf16.mxu1 %v8344_v20  ;;  %v8394_v18 = vld [vmem:[%s8756_s7 + $0x190] sm:$0xff]   ;;  %v8395_v20 = vld [vmem:[%s8756_s7 + $0x148] sm:$0xff]  }
0x12c2   : > { %7817 = vmatpush3.bf16.msra.mxu0 %v8345_v27  ;;  %v8397_v27 = vld [vmem:[%s8756_s7 + $0x108] sm:$0xff]  }
0x12c3   : > { %7839 = vmatpush3.bf16.msra.mxu1 %v8346_v2  ;;  %7818 = vmatprep.subr.bf16.mxu0 %v8347_v32  ;;  %v8398_v2 = vld [vmem:[%s8756_s7 + $0x188] sm:$0xff]   ;;  %v8399_v32 = vld [vmem:[%s8756_s7 + $0x140] sm:$0xff]  }
0x12c4   : > { %7840 = vmatprep.subr.bf16.mxu1 %v8348_v33  ;;  %v8400_v33 = vld [vmem:[%s8756_s7 + $0x1c0] sm:$0xff]  }
0x12c6   : > { %7819 = vmatpush3.bf16.msra.mxu0 %v8349_v26  ;;  %v8401_v26 = vld [vmem:[%s8756_s7 + $0x100] sm:$0xff]  }
0x12c7   : > { %7841 = vmatpush3.bf16.msra.mxu1 %v8350_v34  ;;  %7820 = vmatprep.subr.bf16.mxu0 %v8351_v37  ;;  %v8402_v34 = vld [vmem:[%s8756_s7 + $0x180] sm:$0xff]  }
0x12c8   : > { %7842 = vmatprep.subr.bf16.mxu1 %v8352_v38 }
0x12ca   : > { %7821 = vmatpush3.bf16.msra.mxu0 %v8353_v39 }
0x12cb   : > { %7843 = vmatpush3.bf16.msra.mxu1 %v8354_v40  ;;  %7822 = vmatprep.subr.bf16.mxu0 %v8355_v41 }
0x12cc   : > { %7844 = vmatprep.subr.bf16.mxu1 %v8356_v42 }
0x12ce   : > { %7823 = vmatpush3.bf16.msra.mxu0 %v8357_v44 }
0x12cf   : > { %7845 = vmatpush3.bf16.msra.mxu1 %v8358_v46  ;;  %7824 = vmatprep.subr.bf16.mxu0 %v8359_v48 }
0x12d0   : > { %7846 = vmatprep.subr.bf16.mxu1 %v8360_v54 }
0x12d2   : > { %7825 = vmatpush3.bf16.msra.mxu0 %v8361_v25 }
0x12d3   : > { %7847 = vmatpush3.bf16.msra.mxu1 %v8362_v24  ;;  %7826 = vmatprep.subr.bf16.mxu0 %v8363_v52 }
0x12d4   : > { %7848 = vmatprep.subr.bf16.mxu1 %v8364_v57 }
0x12d6   : > { %7827 = vmatpush3.bf16.msra.mxu0 %v8365_v58 }
0x12d7   : > { %7849 = vmatpush3.bf16.msra.mxu1 %v8366_v47  ;;  %7828 = vmatprep.subr.bf16.mxu0 %v8367_v59 }
0x12d8   : > { %7850 = vmatprep.subr.bf16.mxu1 %v8368_v29 }
0x12da   : > { %7829 = vmatpush3.bf16.msra.mxu0 %v8369_v60 }
0x12db   : > { %7851 = vmatpush3.bf16.msra.mxu1 %v8370_v1  ;;  %7858 = vmatprep.subr.bf16.mxu0 %v8371_v30 }
0x12dc   : > { %7880 = vmatprep.subr.bf16.mxu1 %v8372_v49 }
0x12dd   : > { %6246 = vmatmul.mubr.bf16.vlgmr.msra.gmra.mxu0 %v9373_v15  ;;  %v8380_v15 = vld [vmem:[%s8756_s7 + $0x1e8] sm:$0xff]  }
0x12de   : > { %6287 = vmatmul.mubr.bf16.vlgmr.msra.gmra.mxu1 %v9375_v19  ;;  %7859 = vmatpush3.bf16.msra.mxu0 %v8373_v31  ;;  %v8381_v19 = vld [vmem:[%s8756_s7 + $0x128] sm:$0xff]  }
0x12df   : > { %6327 = vmatprep.mubr.bf16.mxu0 %v9400_v61  ;;  %7881 = vmatpush3.bf16.msra.mxu1 %v8374_v5  ;;  %v8383_v61 = vld [vmem:[%s8756_s7 + $0x160] sm:$0xff]  }
0x12e0   : > { %6368 = vmatprep.mubr.bf16.mxu1 %v9402_v0  ;;  %7860 = vmatprep.subr.bf16.mxu0 %v8375_v6  ;;  %v8385_v0 = vld [vmem:[%s8756_s7 + $0x120] sm:$0xff]   ;;  %s9709_s7 = sld [smem:[#allocation31_spill]] (!%p7466_p5) }
0x12e1   : > { %7882 = vmatprep.subr.bf16.mxu1 %v8376_v9 }
0x12e2   : > { %7861 = vmatpush3.bf16.msra.mxu0 %v8377_v7 }
0x12e3   : > { %7883 = vmatpush3.bf16.msra.mxu1 %v8378_v8  ;;  %7862 = vmatprep.subr.bf16.mxu0 %v8379_v22 }
0x12e4   : > { %7884 = vmatprep.subr.bf16.mxu1 %v8380_v15 }
0x12e6   : > { %7863 = vmatpush3.bf16.msra.mxu0 %v8381_v19 }
0x12e7   : > { %7885 = vmatpush3.bf16.msra.mxu1 %v8382_v23  ;;  %7864 = vmatprep.subr.bf16.mxu0 %v8383_v61 }
0x12e8   : > { %7886 = vmatprep.subr.bf16.mxu1 %v8384_v10 }
0x12ea   : > { %7865 = vmatpush3.bf16.msra.mxu0 %v8385_v0 }
0x12eb   : > { %7887 = vmatpush3.bf16.msra.mxu1 %v8386_v62  ;;  %7866 = vmatprep.subr.bf16.mxu0 %v8387_v11 }
0x12ec   : > { %7888 = vmatprep.subr.bf16.mxu1 %v8388_v12 }
0x12ee   : > { %7867 = vmatpush3.bf16.msra.mxu0 %v8389_v13 }
0x12ef   : > { %7889 = vmatpush3.bf16.msra.mxu1 %v8390_v51  ;;  %7868 = vmatprep.subr.bf16.mxu0 %v8391_v14 }
0x12f0   : > { %7890 = vmatprep.subr.bf16.mxu1 %v8392_v16 }
0x12f2   : > { %7869 = vmatpush3.bf16.msra.mxu0 %v8393_v17 }
0x12f3   : > { %7891 = vmatpush3.bf16.msra.mxu1 %v8394_v18  ;;  %7870 = vmatprep.subr.bf16.mxu0 %v8395_v20 }
0x12f4   : > { %7892 = vmatprep.subr.bf16.mxu1 %v8396_v21 }
0x12f6   : > { %7871 = vmatpush3.bf16.msra.mxu0 %v8397_v27 }
0x12f7   : > { %7893 = vmatpush3.bf16.msra.mxu1 %v8398_v2  ;;  %7872 = vmatprep.subr.bf16.mxu0 %v8399_v32 }
0x12f8   : > { %7894 = vmatprep.subr.bf16.mxu1 %v8400_v33 }
0x12fa   : > { %7873 = vmatpush3.bf16.msra.mxu0 %v8401_v26 }
0x12fb   : > { %7895 = vmatpush3.bf16.msra.mxu1 %v8402_v34 }
0x12fd   : > { %6328 = vmatmul.mubr.bf16.vlgmr.msra.gmra.mxu0 %v9392_v56 }
0x12fe   : > { %6369 = vmatmul.mubr.bf16.vlgmr.msra.gmra.mxu1 %v9394_v50 }
0x135d   : > { %v7742_v37 = vpop.f32.mrf.mxu0  ;;  %v7764_v38 = vpop.f32.mrf.mxu1 }
0x135f   : > { %v7743_v39 = vpop.f32.mrf.mxu0  ;;  %v7765_v40 = vpop.f32.mrf.mxu1 }
0x1360   : > { %v7744_v56 = vadd.f32 %v7743_v39, %v7742_v37  ;;  %v7766_v29 = vadd.f32 %v7765_v40, %v7764_v38 }
0x1361   : > { %v7745_v41 = vpop.f32.mrf.mxu0  ;;  %v7767_v42 = vpop.f32.mrf.mxu1 }
0x1362   : > { %v5741_v30 = vadd.f32 %v7766_v29, %v7744_v56 }
0x1363   : > { %v7746_v44 = vpop.f32.mrf.mxu0  ;;  %v7768_v48 = vpop.f32.mrf.mxu1 }
0x1364   : > { %v7747_v49 = vadd.f32 %v7746_v44, %v7745_v41  ;;  %v7769_v31 = vadd.f32 %v7768_v48, %v7767_v42  ;;  %v7465_v42 = vld [vmem:[%s9706_s5] ss:$0 sm:$0xff] }
0x1366   : > { %v5744_v8 = vadd.f32 %v7769_v31, %v7747_v49 }
0x137d   : > { %v7786_v46 = vpop.f32.mrf.mxu0  ;;  %v7808_v54 = vpop.f32.mrf.mxu1 }
0x137f   : > { %v7787_v25 = vpop.f32.mrf.mxu0  ;;  %v7809_v24 = vpop.f32.mrf.mxu1 }
0x1380   : > { %v7788_v1 = vadd.f32 %v7787_v25, %v7786_v46  ;;  %v7810_v22 = vadd.f32 %v7809_v24, %v7808_v54 }
0x1381   : > { %v7789_v52 = vpop.f32.mrf.mxu0  ;;  %v7811_v57 = vpop.f32.mrf.mxu1 }
0x1382   : > { %v5782_v9 = vadd.f32 %v7788_v1, %v5741_v30 }
0x1383   : > { %v7790_v58 = vpop.f32.mrf.mxu0  ;;  %v7812_v59 = vpop.f32.mrf.mxu1 }
0x1384   : > { %v7791_v7 = vadd.f32 %v7790_v58, %v7789_v52  ;;  %v5823_v61 = vadd.f32 %v7810_v22, %v5782_v9  ;;  %v7813_v0 = vadd.f32 %v7812_v59, %v7811_v57 }
0x1386   : > { %v5785_v10 = vadd.f32 %v7791_v7, %v5744_v8 }
0x1388   : > { %v5826_v51 = vadd.f32 %v7813_v0, %v5785_v10 }
0x139d   : > { %v7830_v47 = vpop.f32.mrf.mxu0 }
0x139e   : > { %v7852_v50 = vpop.f32.mrf.mxu1 }
0x139f   : > { %v7831_v60 = vpop.f32.mrf.mxu0 }
0x13a0   : > { %v7853_v5 = vpop.f32.mrf.mxu1  ;;  %v7832_v15 = vadd.f32 %v7831_v60, %v7830_v47 }
0x13a1   : > { %v7833_v6 = vpop.f32.mrf.mxu0  ;;  %v7854_v14 = vadd.f32 %v7853_v5, %v7852_v50 }
0x13a2   : > { %v7855_v19 = vpop.f32.mrf.mxu1  ;;  %v6248_v62 = vadd.f32 %v7832_v15, %v5823_v61 }
0x13a3   : > { %v7834_v23 = vpop.f32.mrf.mxu0 }
0x13a4   : > { %v7835_v11 = vadd.f32 %v7834_v23, %v7833_v6  ;;  %v7856_v12 = vpop.f32.mrf.mxu1  ;;  %v6289_v18 = vadd.f32 %v7854_v14, %v6248_v62 }
0x13a5   : > { %v7857_v32 = vadd.f32 %v7856_v12, %v7855_v19 }
0x13a6   : > { %v6251_v20 = vadd.f32 %v7835_v11, %v5826_v51 }
0x13a8   : > { %v6292_v38 = vadd.f32 %v7857_v32, %v6251_v20 }
0x13bd   : > { %v7874_v13 = vpop.f32.mrf.mxu0 }
0x13be   : > { %v7896_v16 = vpop.f32.mrf.mxu1 }
0x13bf   : > { %v7875_v17 = vpop.f32.mrf.mxu0 }
0x13c0   : > { %v7876_v21 = vadd.f32 %v7875_v17, %v7874_v13  ;;  %v7897_v27 = vpop.f32.mrf.mxu1 }
0x13c1   : > { %v7877_v2 = vpop.f32.mrf.mxu0  ;;  %v7898_v26 = vadd.f32 %v7897_v27, %v7896_v16 }
0x13c2   : > { %v6330_v33 = vadd.f32 %v7876_v21, %v6289_v18  ;;  %v7899_v34 = vpop.f32.mrf.mxu1 }
0x13c3   : > { %v7878_v37 = vpop.f32.mrf.mxu0 }
0x13c4   : > { %v6371_v39 = vadd.f32 %v7898_v26, %v6330_v33  ;;  %v7879_v40 = vadd.f32 %v7878_v37, %v7877_v2  ;;  %v7900_v41 = vpop.f32.mrf.mxu1 }
0x13c5   : > { %v7901_v48 = vadd.f32 %v7900_v41, %v7899_v34 }
0x13c6   : > { %v6377_v44 = vadd.f32 %v6371_v39, %v9220_v45  ;;  %v6333_v46 = vadd.f32 %v7879_v40, %v6292_v38 }
0x13c8   : > { %v6386_v54 = vadd.f32 %v7465_v42, %v6377_v44  ;;  %v6374_v25 = vadd.f32 %v7901_v48, %v6333_v46 }
0x13ca   : > { %6388 = vst.msk [vmem:[#allocation2] sm:$0xff] %vm2723_vm14, %v6386_v54  ;;  %v6378_v24 = vadd.f32 %v6374_v25, %v9217_v43  ;;  %6393 = sbr.rel (%p7466_p5) target bundleno = 5560 (0x15b8), region = 184 }
0x13cc   : > { %v6387_v52 = vadd.f32 %v7465_v42, %v6378_v24 }
0x13ce   : > { %6389 = vst.msk [vmem:[#allocation2 + $0x8] sm:$0xff] %vm2723_vm14, %v6387_v52 }
0x13cf   : > { %v6403_v45 = vld [vmem:[%s9707_s4 + $0x40] sm:$0xff]  ;;  %v8502_v56 = vmov 0   ;;  %v6404_v50 = vld [vmem:[%s9707_s4 + $0x48] sm:$0xff]  ;;  %v6394_v5 = vpack.c.bf16 %v6387_v52, %v6386_v54  ;;  %v6405_v9 = vld [vmem:[%s9707_s4 + $0x50] sm:$0xff]  ;;  %v8503_v20 = vmov 0.0   ;;  %vm8504_vm0 = vmmov 0  }
0x13d0   : > { %v6407_v57 = vld [vmem:[%s9707_s4 + $0x60] sm:$0xff]  ;;  %6568 = vmatprep.mubr.bf16.mxu1 %v8502_v56  ;;  %v6408_v60 = vld [vmem:[%s9707_s4 + $0x68] sm:$0xff]  ;;  %v6409_v7 = vld [vmem:[%s9707_s4 + $0x70] sm:$0xff]  ;;  %8098 = vmatprep.subr.bf16.mxu0 %v8503_v20 }
0x13d1   : > { %v6395_v58 = vld [vmem:[%s9707_s4] sm:$0xff]  ;;  %v7476_v47 = vcombine.high %v6403_v45, %v6407_v57  ;;  %v7475_v59 = vcombine.low %v6403_v45, %v6407_v57  ;;  %v7478_v30 = vcombine.high %v6404_v50, %v6408_v60  ;;  %v6396_v49 = vld [vmem:[%s9707_s4 + $0x8] sm:$0xff]  ;;  %v7477_v6 = vcombine.low %v6404_v50, %v6408_v60  ;;  %v6397_v19 = vld [vmem:[%s9707_s4 + $0x10] sm:$0xff]  ;;  %8114 = vmatprep.mubr.msk.bf16.mxu0 %vm8504_vm0, %v8503_v20 }
0x13d2   : > { %v6399_v43 = vld [vmem:[%s9707_s4 + $0x20] sm:$0xff]  ;;  %v6400_v31 = vld [vmem:[%s9707_s4 + $0x28] sm:$0xff]  ;;  %v7480_v15 = vcombine.high %v6405_v9, %v6409_v7  ;;  %v6401_v23 = vld [vmem:[%s9707_s4 + $0x30] sm:$0xff]  ;;  %v7479_v61 = vcombine.low %v6405_v9, %v6409_v7 }
0x13d3   : > { %v7468_v29 = vcombine.high %v6395_v58, %v6399_v43  ;;  %6548 = vmatprep.subr.bf16.mxu1 %v7476_v47  ;;  %v7467_v1 = vcombine.low %v6395_v58, %v6399_v43  ;;  %v7470_v8 = vcombine.high %v6396_v49, %v6400_v31  ;;  %v7469_v22 = vcombine.low %v6396_v49, %v6400_v31  ;;  %v6406_v0 = vld [vmem:[%s9707_s4 + $0x58] sm:$0xff]  ;;  %v8432_v21 = vld [vmem:[%s9708_s0 + $0x30] sm:$0xff]   ;;  %v8433_v27 = vld [vmem:[%s9708_s0 + $0x28] sm:$0xff]  }
0x13d4   : > { %6549 = vmatpush1.bf16.msra.mxu1 %v7475_v59  ;;  %v7472_v10 = vcombine.high %v6397_v19, %v6401_v23  ;;  %v6410_v62 = vld [vmem:[%s9707_s4 + $0x78] sm:$0xff]  ;;  %v7471_v11 = vcombine.low %v6397_v19, %v6401_v23  ;;  %v8434_v2 = vld [vmem:[%s9708_s0 + $0x20] sm:$0xff]   ;;  %v8436_v33 = vld [vmem:[%s9708_s0 + $0x10] sm:$0xff]  }
0x13d5   : > { %6550 = vmatprep.subr.bf16.mxu1 %v7468_v29  ;;  %v7482_v12 = vcombine.high %v6406_v0, %v6410_v62  ;;  %v6398_v13 = vld [vmem:[%s9707_s4 + $0x18] sm:$0xff]  ;;  %v7481_v14 = vcombine.low %v6406_v0, %v6410_v62  ;;  %v8437_v26 = vld [vmem:[%s9708_s0 + $0x8] sm:$0xff]   ;;  %v8438_v34 = vld [vmem:[%s9708_s0] sm:$0xff]  }
0x13d6   : > { %v6402_v51 = vld [vmem:[%s9707_s4 + $0x38] sm:$0xff]  ;;  %v6411_v37 = vld [vmem:[%s9709_s7] sm:$0xff] }
0x13d7   : > { %v7474_v16 = vcombine.high %v6398_v13, %v6402_v51  ;;  %v7473_v17 = vcombine.low %v6398_v13, %v6402_v51  ;;  %v8431_v18 = vld [vmem:[%s9708_s0 + $0x38] sm:$0xff]   ;;  %v6416_v38 = vrot.slane %v6411_v37, %v9341_v53  ;;  %v6420_v39 = vrot.slane %v6411_v37, %v9380_v35 }
0x13d8   : > { %6551 = vmatpush1.bf16.msra.mxu1 %v7467_v1  ;;  %8099 = vmatpush3.bf16.msra.mxu0 %v8431_v18  ;;  %v8435_v32 = vld [vmem:[%s9708_s0 + $0x18] sm:$0xff]   ;;  %v6424_v54 = vrot.slane %v6411_v37, %v9344_v55  ;;  %v6428_v53 = vrot.slane %v6411_v37, %v9383_v36  ;;  %v6432_v55 = vrot.slane %v6411_v37, %v9355_v63 }
0x13d9   : > { %6591 = vmatprep.subr.bf16.mxu1 %v7478_v30  ;;  %8100 = vmatprep.subr.bf16.mxu0 %v8503_v20  ;;  %v6436_v36 = vrot.slane %v6411_v37, %v9358_v3  ;;  %v6440_v49 = vrot.slane %v6411_v37, %v9309_v28 }
0x13db   : > { %7483 = vmatmul.mubr.msk.bf16.vlgmr.msra.gmra.mxu1 %vm2723_vm14, %v6394_v5 }
0x13dc   : > { %6592 = vmatpush1.bf16.msra.mxu1 %v7477_v6  ;;  %6611 = vmatprep.mubr.bf16.mxu1 %v8502_v56 }
0x13dd   : > { %6593 = vmatprep.subr.bf16.mxu1 %v7470_v8  ;;  %8101 = vmatpush3.bf16.msra.mxu0 %v8432_v21 }
0x13de   : > { %8102 = vmatprep.subr.bf16.mxu0 %v8503_v20 }
0x13e0   : > { %6594 = vmatpush1.bf16.msra.mxu1 %v7469_v22 }
0x13e1   : > { %6634 = vmatprep.subr.bf16.mxu1 %v7480_v15  ;;  %8103 = vmatpush3.bf16.msra.mxu0 %v8433_v27 }
0x13e2   : > { %8104 = vmatprep.subr.bf16.mxu0 %v8503_v20 }
0x13e3   : > { %7484 = vmatmul.mubr.msk.bf16.vlgmr.msra.gmra.mxu1 %vm2723_vm14, %v6394_v5 }
0x13e4   : > { %6635 = vmatpush1.bf16.msra.mxu1 %v7479_v61  ;;  %6654 = vmatprep.mubr.bf16.mxu1 %v8502_v56 }
0x13e5   : > { %6636 = vmatprep.subr.bf16.mxu1 %v7472_v10  ;;  %8105 = vmatpush3.bf16.msra.mxu0 %v8434_v2 }
0x13e6   : > { %8106 = vmatprep.subr.bf16.mxu0 %v8503_v20 }
0x13e8   : > { %6637 = vmatpush1.bf16.msra.mxu1 %v7471_v11 }
0x13e9   : > { %6677 = vmatprep.subr.bf16.mxu1 %v7482_v12  ;;  %8107 = vmatpush3.bf16.msra.mxu0 %v8435_v32 }
0x13ea   : > { %8108 = vmatprep.subr.bf16.mxu0 %v8503_v20 }
0x13eb   : > { %7485 = vmatmul.mubr.msk.bf16.vlgmr.msra.gmra.mxu1 %vm2723_vm14, %v6394_v5 }
0x13ec   : > { %6678 = vmatpush1.bf16.msra.mxu1 %v7481_v14  ;;  %6697 = vmatprep.mubr.bf16.mxu1 %v8502_v56 }
0x13ed   : > { %6679 = vmatprep.subr.bf16.mxu1 %v7474_v16  ;;  %8109 = vmatpush3.bf16.msra.mxu0 %v8436_v33 }
0x13ee   : > { %8110 = vmatprep.subr.bf16.mxu0 %v8503_v20 }
0x13f0   : > { %6680 = vmatpush1.bf16.msra.mxu1 %v7473_v17 }
0x13f1   : > { %8111 = vmatpush3.bf16.msra.mxu0 %v8437_v26 }
0x13f2   : > { %8112 = vmatprep.subr.bf16.mxu0 %v8503_v20 }
0x13f3   : > { %7486 = vmatmul.mubr.msk.bf16.vlgmr.msra.gmra.mxu1 %vm2723_vm14, %v6394_v5  ;;  %v6444_v5 = vrot.slane %v6411_v37, %v9361_v4 }
0x13f5   : > { %8113 = vmatpush3.bf16.msra.mxu0 %v8438_v34 }
0x149b   : > { %v6570_v40 = vpop.f32.mrf.mxu1 }
0x149c   : > { %v6571_v41 = vadd.f32 %v6570_v40, %v6416_v38 }
0x149d   : > { %v6572_v42 = vpop.f32.mrf.mxu1 }
0x149e   : > { %6875 = vst [vmem:[%s9710_s22] sm:$0xff] %v6571_v41  ;;  %v6573_v44 = vadd.f32 %v6572_v42, %v6420_v39 }
0x149f   : > { %v6574_v46 = vpop.f32.mrf.mxu1 }
0x14a0   : > { %6876 = vst [vmem:[%s9711_s19 + $0x8] sm:$0xff] %v6573_v44  ;;  %v6575_v48 = vadd.f32 %v6574_v46, %v6416_v38 }
0x14a1   : > { %v6576_v25 = vpop.f32.mrf.mxu1 }
0x14a2   : > { %6882 = vst [vmem:[%s9711_s19 + $0x40] sm:$0xff] %v6575_v48  ;;  %v6577_v24 = vadd.f32 %v6576_v25, %v6420_v39 }
0x14a3   : > { %v6613_v35 = vpop.f32.mrf.mxu1 }
0x14a4   : > { %6883 = vst [vmem:[%s9711_s19 + $0x48] sm:$0xff] %v6577_v24  ;;  %v6614_v52 = vadd.f32 %v6613_v35, %v6424_v54 }
0x14a5   : > { %v6615_v45 = vpop.f32.mrf.mxu1 }
0x14a6   : > { %6877 = vst [vmem:[%s9711_s19 + $0x10] sm:$0xff] %v6614_v52  ;;  %v6616_v57 = vadd.f32 %v6615_v45, %v6428_v53  ;;  %v8505_v45 = vmov -1.0  }
0x14a7   : > { %v6617_v58 = vpop.f32.mrf.mxu1 }
0x14a8   : > { %6878 = vst [vmem:[%s9711_s19 + $0x18] sm:$0xff] %v6616_v57  ;;  %v6618_v47 = vadd.f32 %v6617_v58, %v6424_v54 }
0x14a9   : > { %v6619_v59 = vpop.f32.mrf.mxu1 }
0x14aa   : > { %6884 = vst [vmem:[%s9711_s19 + $0x50] sm:$0xff] %v6618_v47  ;;  %v6620_v43 = vadd.f32 %v6619_v59, %v6428_v53 }
0x14ab   : > { %v6656_v56 = vpop.f32.mrf.mxu1 }
0x14ac   : > { %6885 = vst [vmem:[%s9711_s19 + $0x58] sm:$0xff] %v6620_v43  ;;  %v6657_v29 = vadd.f32 %v6656_v56, %v6432_v55 }
0x14ad   : > { %v6658_v50 = vpop.f32.mrf.mxu1 }
0x14ae   : > { %6879 = vst [vmem:[%s9711_s19 + $0x20] sm:$0xff] %v6657_v29  ;;  %v6659_v60 = vadd.f32 %v6658_v50, %v6436_v36 }
0x14af   : > { %v6660_v1 = vpop.f32.mrf.mxu1 }
0x14b0   : > { %6880 = vst [vmem:[%s9711_s19 + $0x28] sm:$0xff] %v6659_v60  ;;  %v6661_v30 = vadd.f32 %v6660_v1, %v6432_v55 }
0x14b1   : > { %v6662_v63 = vpop.f32.mrf.mxu1 }
0x14b2   : > { %6886 = vst [vmem:[%s9711_s19 + $0x60] sm:$0xff] %v6661_v30  ;;  %v6663_v31 = vadd.f32 %v6662_v63, %v6436_v36 }
0x14b3   : > { %v6699_v3 = vpop.f32.mrf.mxu1 }
0x14b4   : > { %6887 = vst [vmem:[%s9711_s19 + $0x68] sm:$0xff] %v6663_v31  ;;  %v6700_v6 = vadd.f32 %v6699_v3, %v6440_v49 }
0x14b5   : > { %v6701_v9 = vpop.f32.mrf.mxu1 }
0x14b6   : > { %6881 = vst [vmem:[%s9711_s19 + $0x30] sm:$0xff] %v6700_v6  ;;  %v6702_v7 = vadd.f32 %v6701_v9, %v6444_v5 }
0x14b7   : > { %v6703_v8 = vpop.f32.mrf.mxu1 }
0x14b8   : > { %v6710_v22 = vmul.f32 0.70710677, %v6702_v7  ;;  %v6704_v15 = vadd.f32 %v6703_v8, %v6440_v49  ;;  %v6708_v56 = vmul.f32 0.5, %v6702_v7  ;;  %v7487_v49 = vld [vmem:[%s9712_s14] ss:$0 sm:$0xff] }
0x14b9   : > { %v6705_v19 = vpop.f32.mrf.mxu1 }
0x14ba   : > { %v6716_v23 = vand.u32 2147483647, %v6710_v22  ;;  %6888 = vst [vmem:[%s9711_s19 + $0x70] sm:$0xff] %v6704_v15  ;;  %v6706_v61 = vadd.f32 %v6705_v19, %v6444_v5  ;;  %vm6712_vm1 = vcmp.ge.f32.partialorder %v6710_v22, 0.0 }
0x14bb   : > { %v6714_v57 = vsel %vm6712_vm1, 1.0, %v8505_v45 }
0x14bc   : > { %v6718_v28 = vmul.f32 0.3275911, %v6716_v23  ;;  %v6711_v10 = vmul.f32 0.70710677, %v6706_v61  ;;  %v6744_v12 = vsub.f32 0.0, %v6716_v23  ;;  %v6709_v29 = vmul.f32 0.5, %v6706_v61 }
0x14be   : > { %v6720_v0 = vadd.f32 1.0, %v6718_v28  ;;  %v6717_v62 = vand.u32 2147483647, %v6711_v10  ;;  %v6746_v13 = vmul.f32 %v6744_v12, %v6716_v23  ;;  %vm6713_vm2 = vcmp.ge.f32.partialorder %v6711_v10, 0.0 }
0x14bf   : > { %v6715_v59 = vsel %vm6713_vm2, 1.0, %v8505_v45 }
0x14c0   : > { %8439 = vrcp.f32 %v6720_v0  ;;  %v6719_v11 = vmul.f32 0.3275911, %v6717_v62  ;;  %v6745_v51 = vsub.f32 0.0, %v6717_v62  ;;  %v6748_v17 = vmul.f32 1.442695, %v6746_v13 }
0x14c2   : > { %v6721_v4 = vadd.f32 1.0, %v6719_v11  ;;  %v6747_v18 = vmul.f32 %v6745_v51, %v6717_v62 }
0x14c4   : > { %8441 = vrcp.f32 %v6721_v4  ;;  %v6750_v32 = vmul.f32 1.442695, %v6747_v18 }
0x14c5   : > { %8443 = vpow2.f32 %v6748_v17 }
0x14c6   : > { %8445 = vpow2.f32 %v6750_v32 }
0x14cd   : > { %v8440_v14 = vpop.eup %8439 }
0x14ce   : > { %v6726_v16 = vmul.f32 1.0614054, %v8440_v14 }
0x14d0   : > { %v6728_v20 = vadd.f32 -1.4531521, %v6726_v16 }
0x14d1   : > { %v8442_v21 = vpop.eup %8441 }
0x14d2   : > { %v6730_v27 = vmul.f32 %v8440_v14, %v6728_v20  ;;  %v6727_v2 = vmul.f32 1.0614054, %v8442_v21  ;;  %v8444_v54 = vpop.eup %8443 }
0x14d3   : > { %v8446_v52 = vpop.eup %8445 }
0x14d4   : > { %v6732_v33 = vadd.f32 1.4214138, %v6730_v27  ;;  %v6729_v26 = vadd.f32 -1.4531521, %v6727_v2 }
0x14d6   : > { %v6734_v34 = vmul.f32 %v8440_v14, %v6732_v33  ;;  %v6731_v37 = vmul.f32 %v8442_v21, %v6729_v26 }
0x14d8   : > { %v6736_v38 = vadd.f32 -0.28449672, %v6734_v34  ;;  %v6733_v39 = vadd.f32 1.4214138, %v6731_v37 }
0x14da   : > { %v6738_v40 = vmul.f32 %v8440_v14, %v6736_v38  ;;  %v6735_v41 = vmul.f32 %v8442_v21, %v6733_v39 }
0x14dc   : > { %v6740_v42 = vadd.f32 0.2548296, %v6738_v40  ;;  %v6737_v44 = vadd.f32 -0.28449672, %v6735_v41 }
0x14de   : > { %v6742_v46 = vmul.f32 %v8440_v14, %v6740_v42  ;;  %v6739_v48 = vmul.f32 %v8442_v21, %v6737_v44 }
0x14e0   : > { %v6752_v25 = vmul.f32 %v8444_v54, %v6742_v46  ;;  %v6741_v24 = vadd.f32 0.2548296, %v6739_v48 }
0x14e2   : > { %v6754_v53 = vsub.f32 1.0, %v6752_v25  ;;  %v6743_v35 = vmul.f32 %v8442_v21, %v6741_v24 }
0x14e4   : > { %v6756_v58 = vmul.f32 %v6754_v53, %v6714_v57  ;;  %v6753_v47 = vmul.f32 %v8446_v52, %v6743_v35 }
0x14e6   : > { %v6755_v55 = vsub.f32 1.0, %v6753_v47  ;;  %v6758_v43 = vadd.f32 1.0, %v6756_v58 }
0x14e8   : > { %v6757_v36 = vmul.f32 %v6755_v55, %v6715_v59  ;;  %v6760_v60 = vmul.f32 %v6758_v43, %v6708_v56 }
0x14ea   : > { %v6759_v50 = vadd.f32 1.0, %v6757_v36 }
0x14ec   : > { %v6761_v1 = vmul.f32 %v6759_v50, %v6709_v29 }
0x14ee   : > { %v6762_v30 = vpack.c.bf16 %v6761_v1, %v6760_v60 }
0x14f0   : > { %8115 = vmatmul.mubr.bf16.vlgmr.msra.gmra.mxu0 %v6762_v30 }
0x15b0   : > { %v6868_v63 = vpop.f32.mrf.mxu0 }
0x15b1   : > { %v6869_v31 = vadd.f32 %v7487_v49, %v6868_v63 }
0x15b2   : > { %v8116_v5 = vpop.f32.mrf.mxu0 }
0x15b3   : > { %6889 = vst [vmem:[%s9711_s19 + $0x38] sm:$0xff] %v6869_v31 }
0x15b4   : > { %v6871_v3 = vpop.f32.mrf.mxu0 }
0x15b5   : > { %v6872_v6 = vadd.f32 %v7487_v49, %v6871_v3 }
0x15b6   : > { %v8117_v9 = vpop.f32.mrf.mxu0 }
0x15b7   : > { %6890 = vst [vmem:[%s9711_s19 + $0x78] sm:$0xff] %v6872_v6 }
0x15b8 PF: > { %s9713_s3 = sld [smem:[#allocation35_spill]] }
0x15be   : > { %s89_s22 = sadd.s32 1, %s9713_s3  }
0x15bf   : > { %p86_p6 = scmp.ge.s32.totalorder %s89_s22, 4  }
0x15c1   :  { %88 = sbr.rel (!%p86_p6) target bundleno = 81 (0x51), region = 302 }

</bundles_post_ra>
